<compile_context>
chip_gen: v7x
topology: tpu7x:2x2x1
jax: 0.10.0
libtpu: 0.0.40
codegen_flags: <defaults>
</compile_context>

<pallas_src>
import functools

import jax
import jax.numpy as jnp
from jax import lax
from jax.experimental import pallas as pl
from jax.experimental.pallas import tpu as pltpu

EPS = 1e-5  # PyTorch InstanceNorm2d default eps


# ----------------------------------------------------------------------------
# In-kernel helpers (pure value math)
# ----------------------------------------------------------------------------
def _instance_norm(v, g, b):
    """v: (C, A, B) f32, g/b: (C,1,1).  One-pass mean/var over (A, B)."""
    n = v.shape[1] * v.shape[2]
    s1 = jnp.sum(v, axis=2, keepdims=True)
    s1 = jnp.sum(s1, axis=1, keepdims=True)          # (C,1,1)
    s2 = jnp.sum(v * v, axis=2, keepdims=True)
    s2 = jnp.sum(s2, axis=1, keepdims=True)          # (C,1,1)
    mean = s1 * (1.0 / n)
    var = s2 * (1.0 / n) - mean * mean
    inv = lax.rsqrt(var + EPS)
    return (v - mean) * (inv * g) + b


def _reflect_pad_hw(y, pad):
    """Reflection pad (PyTorch ReflectionPad2d semantics) of a (C, H, W) value."""
    if pad == 0:
        return y
    C, H, W = y.shape
    rows = ([y[:, r:r + 1, :] for r in range(pad, 0, -1)] + [y] +
            [y[:, H - 1 - r:H - r, :] for r in range(1, pad + 1)])
    y = jnp.concatenate(rows, axis=1)                # (C, H+2p, W)
    cols = ([y[:, :, c:c + 1] for c in range(pad, 0, -1)] + [y] +
            [y[:, :, W - 1 - c:W - c] for c in range(1, pad + 1)])
    return jnp.concatenate(cols, axis=2)             # (C, H+2p, W+2p)


# ----------------------------------------------------------------------------
# Fused Pallas kernel (one batch element per grid step)
# ----------------------------------------------------------------------------
def _bottleneck_kernel(x_ref, w1_ref, g1_ref, b1_ref,
                       wdw_ref, g2_ref, b2_ref,
                       w3_ref, g3_ref, b3_ref,
                       o_ref, *, k, stride, residual):
    """x_ref : (1, Cin, H, W)        input block (NCHW, one batch element)
       w1_ref: (Cin, cm, 1, 1)       conv1 weight  (w1[ci, co])
       wdw_ref:(k*k, cm, 1, 1)       depthwise weight (tap-major)
       w3_ref: (cm, out_c, 1, 1)     conv3 weight  (w3[ci, co])
       g*/b* : (C, 1, 1)             InstanceNorm affine params
       o_ref : (1, out_c, Ho, Wo)
    """
    f32 = jnp.float32
    cin = x_ref.shape[1]
    H, W = x_ref.shape[2], x_ref.shape[3]
    out_c, Ho, Wo = o_ref.shape[1], o_ref.shape[2], o_ref.shape[3]
    pad = k // 2
    Hp, Wp = H + 2 * pad, W + 2 * pad

    # ---- stage 1: 1x1 conv as a VPU broadcast-MAC (tiny K, keep MXU out) ----
    y = w1_ref[0].astype(f32) * x_ref[0, 0].astype(f32)[None, :, :]
    for ci in range(1, cin):
        y = y + w1_ref[ci].astype(f32) * x_ref[0, ci].astype(f32)[None, :, :]
    cm = y.shape[0]

    y = _instance_norm(y, g1_ref[...].astype(f32), b1_ref[...].astype(f32))
    y = jnp.clip(y, 0.0, 6.0)

    # ---- reflection pad (in registers/VMEM, never leaves the chip) ----
    y = _reflect_pad_hw(y, pad)                       # (cm, Hp, Wp)

    # ---- stage 2: depthwise KxK conv (tap MAC) ----
    if stride == 1:
        acc = None
        for kh in range(k):
            for kw in range(k):
                tap = y[:, kh:kh + Ho, kw:kw + Wo]        # plain static slice
                term = tap * wdw_ref[kh * k + kw].astype(f32)
                acc = term if acc is None else acc + term
    else:
        # stride == 2 (never the residual case).  Column (lane-axis) stride is
        # realised with a tiny 0/1 selection matmul so only unit-stride slices
        # and static sublane indexing are needed.
        wp_i = lax.broadcasted_iota(jnp.int32, (Wp, Wo), 0)
        wo_i = lax.broadcasted_iota(jnp.int32, (Wp, Wo), 1)
        sels = [(wp_i == (kw + stride * wo_i)).astype(f32) for kw in range(k)]
        row_list = []
        for ho in range(Ho):
            row_acc = None
            for kh in range(k):
                src = y[:, stride * ho + kh, :]           # (cm, Wp)
                for kw in range(k):
                    wt = wdw_ref[kh * k + kw].astype(f32)[:, 0, :]   # (cm, 1)
                    term = jnp.dot(src, sels[kw],
                                   preferred_element_type=f32) * wt
                    row_acc = term if row_acc is None else row_acc + term
            row_list.append(row_acc[:, None, :])          # (cm, 1, Wo)
        acc = jnp.concatenate(row_list, axis=1)           # (cm, Ho, Wo)

    z = _instance_norm(acc, g2_ref[...].astype(f32), b2_ref[...].astype(f32))
    z = jnp.clip(z, 0.0, 6.0)

    # ---- stage 3: 1x1 conv + IN3 (+ residual straight from the input block) ----
    out = w3_ref[0].astype(f32) * z[0][None, :, :]
    for c in range(1, cm):
        out = out + w3_ref[c].astype(f32) * z[c][None, :, :]
    out = _instance_norm(out, g3_ref[...].astype(f32), b3_ref[...].astype(f32))
    if residual:
        out = out + x_ref[0].astype(f32)                  # (Cin,H,W) == (out_c,Ho,Wo)

    o_ref[0] = out.astype(o_ref.dtype)


# ----------------------------------------------------------------------------
# Wrapper
# ----------------------------------------------------------------------------
def bottleneck_pallas(x, params, kernel_size, stride, t):
    """x: (N, Cin, H, W) NCHW (PyTorch layout, kept end-to-end)."""
    assert stride in (1, 2), "stride must be either 1 or 2"
    N, Cin, H, W = x.shape
    cm = params["g1"].shape[0]
    out_c = params["g3"].shape[0]
    pad = kernel_size // 2
    Hp, Wp = H + 2 * pad, W + 2 * pad
    Ho = (Hp - kernel_size) // stride + 1
    Wo = (Wp - kernel_size) // stride + 1
    residual = (stride == 1) and (Cin == out_c)
    KK = kernel_size * kernel_size

    kernel = functools.partial(_bottleneck_kernel,
                               k=kernel_size, stride=stride, residual=residual)

    return pl.pallas_call(
        kernel,
        out_shape=jax.ShapeDtypeStruct((N, out_c, Ho, Wo), x.dtype),
        grid_spec=pltpu.PrefetchScalarGridSpec(
            num_scalar_prefetch=0,
            grid=(N,),
            in_specs=[
                pl.BlockSpec((1, Cin, H, W), lambda n: (n, 0, 0, 0)),
                pl.BlockSpec((Cin, cm, 1, 1), lambda n: (0, 0, 0, 0)),
                pl.BlockSpec((cm, 1, 1), lambda n: (0, 0, 0)),
                pl.BlockSpec((cm, 1, 1), lambda n: (0, 0, 0)),
                pl.BlockSpec((KK, cm, 1, 1), lambda n: (0, 0, 0, 0)),
                pl.BlockSpec((cm, 1, 1), lambda n: (0, 0, 0)),
                pl.BlockSpec((cm, 1, 1), lambda n: (0, 0, 0)),
                pl.BlockSpec((cm, out_c, 1, 1), lambda n: (0, 0, 0, 0)),
                pl.BlockSpec((out_c, 1, 1), lambda n: (0, 0, 0)),
                pl.BlockSpec((out_c, 1, 1), lambda n: (0, 0, 0)),
            ],
            out_specs=pl.BlockSpec((1, out_c, Ho, Wo), lambda n: (n, 0, 0, 0)),
        ),
        compiler_params=pltpu.CompilerParams(
            dimension_semantics=("parallel",),
            vmem_limit_bytes=64 * 1024 * 1024),
    )(x, params["w1"], params["g1"], params["b1"],
      params["w_dw"], params["g2"], params["b2"],
      params["w3"], params["g3"], params["b3"])


# ----------------------------------------------------------------------------
# Pure-JAX reference (for correctness check), NCHW
# ----------------------------------------------------------------------------
def _inorm_ref(x, g, b):  # x: NCHW, g/b: (C,1,1)
    mean = jnp.mean(x, axis=(2, 3), keepdims=True)
    var = jnp.mean(jnp.square(x - mean), axis=(2, 3), keepdims=True)
    return (x - mean) * lax.rsqrt(var + EPS) * g[None] + b[None]


def bottleneck_ref(x, params, kernel_size, stride, t):
    N, Cin, H, W = x.shape
    cm = params["g1"].shape[0]
    out_c = params["g3"].shape[0]
    residual = (stride == 1) and (Cin == out_c)
    pad = kernel_size // 2

    w1 = params["w1"][:, :, 0, 0]                               # (Cin, cm)
    y = jnp.einsum("nchw,co->nohw", x, w1)
    y = jnp.clip(_inorm_ref(y, params["g1"], params["b1"]), 0.0, 6.0)
    y = jnp.pad(y, ((0, 0), (0, 0), (pad, pad), (pad, pad)), mode="reflect")

    wdw = params["w_dw"][:, :, 0, 0]                            # (KK, cm)
    wdw = wdw.reshape(kernel_size, kernel_size, cm).transpose(2, 0, 1)[:, None]
    y = lax.conv_general_dilated(
        y, wdw, window_strides=(stride, stride), padding="VALID",
        dimension_numbers=("NCHW", "OIHW", "NCHW"), feature_group_count=cm)
    y = jnp.clip(_inorm_ref(y, params["g2"], params["b2"]), 0.0, 6.0)

    w3 = params["w3"][:, :, 0, 0]                               # (cm, out_c)
    y = jnp.einsum("nchw,co->nohw", y, w3)
    y = _inorm_ref(y, params["g3"], params["b3"])
    if residual:
        y = y + x
    return y


# ----------------------------------------------------------------------------
# Deterministic parameter init (shapes mirror the PyTorch module __init__)
# ----------------------------------------------------------------------------
def init_params(key, inp_c, out_c, kernel_size, t):
    cm = t * inp_c
    ks = jax.random.split(key, 9)
    return {
        # conv1: torch (cm, inp_c, 1, 1) -> stored as (inp_c, cm, 1, 1)
        "w1": 0.2 * jax.random.normal(ks[0], (inp_c, cm, 1, 1), jnp.float32),
        "g1": 1.0 + 0.1 * jax.random.normal(ks[1], (cm, 1, 1), jnp.float32),
        "b1": 0.1 * jax.random.normal(ks[2], (cm, 1, 1), jnp.float32),
        # conv2 depthwise: torch (cm, 1, k, k) -> stored tap-major (k*k, cm, 1, 1)
        "w_dw": 0.2 * jax.random.normal(
            ks[3], (kernel_size * kernel_size, cm, 1, 1), jnp.float32),
        "g2": 1.0 + 0.1 * jax.random.normal(ks[4], (cm, 1, 1), jnp.float32),
        "b2": 0.1 * jax.random.normal(ks[5], (cm, 1, 1), jnp.float32),
        # conv3: torch (out_c, cm, 1, 1) -> stored as (cm, out_c, 1, 1)
        "w3": 0.2 * jax.random.normal(ks[6], (cm, out_c, 1, 1), jnp.float32),
        "g3": 1.0 + 0.1 * jax.random.normal(ks[7], (out_c, 1, 1), jnp.float32),
        "b3": 0.1 * jax.random.normal(ks[8], (out_c, 1, 1), jnp.float32),
    }


if __name__ == "__main__":
    key = jax.random.PRNGKey(0)
    kx, kp_a, kp_b = jax.random.split(key, 3)

    N, H, W = 2, 16, 16
    inp_c, kernel_size, stride, t = 4, 3, 1, 2
    x = jax.random.normal(kx, (N, inp_c, H, W), jnp.float32)   # NCHW like PyTorch

    # Case A: Bottleneck(4, 4, 3, stride=1, t=2) -> residual path
    params_a = init_params(kp_a, inp_c, 4, kernel_size, t)
    out_a = jax.block_until_ready(bottleneck_pallas(x, params_a, kernel_size, stride, t))
    ref_a = bottleneck_ref(x, params_a, kernel_size, stride, t)
    assert out_a.shape == ref_a.shape == (N, 4, H, W)
    err_a = float(jnp.max(jnp.abs(out_a - ref_a)))
    assert err_a < 5e-4, f"case A max abs err {err_a}"

    # Case B: Bottleneck(4, 8, 3, stride=1, t=2) -> no residual
    params_b = init_params(kp_b, inp_c, 8, kernel_size, t)
    out_b = jax.block_until_ready(bottleneck_pallas(x, params_b, kernel_size, stride, t))
    ref_b = bottleneck_ref(x, params_b, kernel_size, stride, t)
    assert out_b.shape == ref_b.shape == (N, 8, H, W)
    err_b = float(jnp.max(jnp.abs(out_b - ref_b)))
    assert err_b < 5e-4, f"case B max abs err {err_b}"

    print("KERNEL_OK")
</pallas_src>

<mosaic_0001>
module attributes {stable_mosaic.version = 11 : i64} {
  func.func @_bottleneck_kernel(%arg0: i32, %arg1: memref<1x4x16x16xf32, #tpu.memory_space<vmem>>, %arg2: memref<4x8x1x1xf32, #tpu.memory_space<vmem>>, %arg3: memref<8x1x1xf32, #tpu.memory_space<vmem>>, %arg4: memref<8x1x1xf32, #tpu.memory_space<vmem>>, %arg5: memref<9x8x1x1xf32, #tpu.memory_space<vmem>>, %arg6: memref<8x1x1xf32, #tpu.memory_space<vmem>>, %arg7: memref<8x1x1xf32, #tpu.memory_space<vmem>>, %arg8: memref<8x4x1x1xf32, #tpu.memory_space<vmem>>, %arg9: memref<4x1x1xf32, #tpu.memory_space<vmem>>, %arg10: memref<4x1x1xf32, #tpu.memory_space<vmem>>, %arg11: memref<1x4x16x16xf32, #tpu.memory_space<vmem>>) attributes {dimension_semantics = [#tpu.dimension_semantics<parallel>], iteration_bounds = array<i64: 2>, scalar_prefetch = 0 : i64, scratch_operands = 0 : i64, tpu.core_type = #tpu.core_type<tc>, window_params = [{transform_indices = @transform_0, window_bounds = array<i64: 1, 4, 16, 16>}, {pipeline_mode = #tpu.pipeline_mode<synchronous>, transform_indices = @transform_1, window_bounds = array<i64: 4, 8, 1, 1>}, {pipeline_mode = #tpu.pipeline_mode<synchronous>, transform_indices = @transform_2, window_bounds = array<i64: 8, 1, 1>}, {pipeline_mode = #tpu.pipeline_mode<synchronous>, transform_indices = @transform_3, window_bounds = array<i64: 8, 1, 1>}, {pipeline_mode = #tpu.pipeline_mode<synchronous>, transform_indices = @transform_4, window_bounds = array<i64: 9, 8, 1, 1>}, {pipeline_mode = #tpu.pipeline_mode<synchronous>, transform_indices = @transform_5, window_bounds = array<i64: 8, 1, 1>}, {pipeline_mode = #tpu.pipeline_mode<synchronous>, transform_indices = @transform_6, window_bounds = array<i64: 8, 1, 1>}, {pipeline_mode = #tpu.pipeline_mode<synchronous>, transform_indices = @transform_7, window_bounds = array<i64: 8, 4, 1, 1>}, {pipeline_mode = #tpu.pipeline_mode<synchronous>, transform_indices = @transform_8, window_bounds = array<i64: 4, 1, 1>}, {pipeline_mode = #tpu.pipeline_mode<synchronous>, transform_indices = @transform_9, window_bounds = array<i64: 4, 1, 1>}, {transform_indices = @transform_10, window_bounds = array<i64: 1, 4, 16, 16>}]} {
    %c0 = arith.constant 0 : index
    %c0_0 = arith.constant 0 : index
    %c0_1 = arith.constant 0 : index
    %c0_2 = arith.constant 0 : index
    %0 = vector.load %arg2[%c0, %c0_0, %c0_1, %c0_2] : memref<4x8x1x1xf32, #tpu.memory_space<vmem>>, vector<1x8x1x1xf32>
    %1 = vector.shape_cast %0 : vector<1x8x1x1xf32> to vector<8x1x1xf32>
    %c0_3 = arith.constant 0 : index
    %c0_4 = arith.constant 0 : index
    %c0_5 = arith.constant 0 : index
    %c0_6 = arith.constant 0 : index
    %2 = vector.load %arg1[%c0_3, %c0_4, %c0_5, %c0_6] : memref<1x4x16x16xf32, #tpu.memory_space<vmem>>, vector<1x1x16x16xf32>
    %3 = vector.shape_cast %2 : vector<1x1x16x16xf32> to vector<16x16xf32>
    %4 = vector.shape_cast %3 : vector<16x16xf32> to vector<1x16x16xf32>
    %5 = vector.broadcast %1 : vector<8x1x1xf32> to vector<8x16x16xf32>
    %6 = vector.broadcast %4 : vector<1x16x16xf32> to vector<8x16x16xf32>
    %7 = arith.mulf %5, %6 : vector<8x16x16xf32>
    %c1 = arith.constant 1 : index
    %c0_7 = arith.constant 0 : index
    %c0_8 = arith.constant 0 : index
    %c0_9 = arith.constant 0 : index
    %8 = vector.load %arg2[%c1, %c0_7, %c0_8, %c0_9] : memref<4x8x1x1xf32, #tpu.memory_space<vmem>>, vector<1x8x1x1xf32>
    %9 = vector.shape_cast %8 : vector<1x8x1x1xf32> to vector<8x1x1xf32>
    %c0_10 = arith.constant 0 : index
    %c1_11 = arith.constant 1 : index
    %c0_12 = arith.constant 0 : index
    %c0_13 = arith.constant 0 : index
    %10 = vector.load %arg1[%c0_10, %c1_11, %c0_12, %c0_13] : memref<1x4x16x16xf32, #tpu.memory_space<vmem>>, vector<1x1x16x16xf32>
    %11 = vector.shape_cast %10 : vector<1x1x16x16xf32> to vector<16x16xf32>
    %12 = vector.shape_cast %11 : vector<16x16xf32> to vector<1x16x16xf32>
    %13 = vector.broadcast %9 : vector<8x1x1xf32> to vector<8x16x16xf32>
    %14 = vector.broadcast %12 : vector<1x16x16xf32> to vector<8x16x16xf32>
    %15 = arith.mulf %13, %14 : vector<8x16x16xf32>
    %16 = arith.addf %7, %15 : vector<8x16x16xf32>
    %c2 = arith.constant 2 : index
    %c0_14 = arith.constant 0 : index
    %c0_15 = arith.constant 0 : index
    %c0_16 = arith.constant 0 : index
    %17 = vector.load %arg2[%c2, %c0_14, %c0_15, %c0_16] : memref<4x8x1x1xf32, #tpu.memory_space<vmem>>, vector<1x8x1x1xf32>
    %18 = vector.shape_cast %17 : vector<1x8x1x1xf32> to vector<8x1x1xf32>
    %c0_17 = arith.constant 0 : index
    %c2_18 = arith.constant 2 : index
    %c0_19 = arith.constant 0 : index
    %c0_20 = arith.constant 0 : index
    %19 = vector.load %arg1[%c0_17, %c2_18, %c0_19, %c0_20] : memref<1x4x16x16xf32, #tpu.memory_space<vmem>>, vector<1x1x16x16xf32>
    %20 = vector.shape_cast %19 : vector<1x1x16x16xf32> to vector<16x16xf32>
    %21 = vector.shape_cast %20 : vector<16x16xf32> to vector<1x16x16xf32>
    %22 = vector.broadcast %18 : vector<8x1x1xf32> to vector<8x16x16xf32>
    %23 = vector.broadcast %21 : vector<1x16x16xf32> to vector<8x16x16xf32>
    %24 = arith.mulf %22, %23 : vector<8x16x16xf32>
    %25 = arith.addf %16, %24 : vector<8x16x16xf32>
    %c3 = arith.constant 3 : index
    %c0_21 = arith.constant 0 : index
    %c0_22 = arith.constant 0 : index
    %c0_23 = arith.constant 0 : index
    %26 = vector.load %arg2[%c3, %c0_21, %c0_22, %c0_23] : memref<4x8x1x1xf32, #tpu.memory_space<vmem>>, vector<1x8x1x1xf32>
    %27 = vector.shape_cast %26 : vector<1x8x1x1xf32> to vector<8x1x1xf32>
    %c0_24 = arith.constant 0 : index
    %c3_25 = arith.constant 3 : index
    %c0_26 = arith.constant 0 : index
    %c0_27 = arith.constant 0 : index
    %28 = vector.load %arg1[%c0_24, %c3_25, %c0_26, %c0_27] : memref<1x4x16x16xf32, #tpu.memory_space<vmem>>, vector<1x1x16x16xf32>
    %29 = vector.shape_cast %28 : vector<1x1x16x16xf32> to vector<16x16xf32>
    %30 = vector.shape_cast %29 : vector<16x16xf32> to vector<1x16x16xf32>
    %31 = vector.broadcast %27 : vector<8x1x1xf32> to vector<8x16x16xf32>
    %32 = vector.broadcast %30 : vector<1x16x16xf32> to vector<8x16x16xf32>
    %33 = arith.mulf %31, %32 : vector<8x16x16xf32>
    %34 = arith.addf %25, %33 : vector<8x16x16xf32>
    %c0_28 = arith.constant 0 : index
    %c0_29 = arith.constant 0 : index
    %c0_30 = arith.constant 0 : index
    %35 = vector.load %arg3[%c0_28, %c0_29, %c0_30] : memref<8x1x1xf32, #tpu.memory_space<vmem>>, vector<8x1x1xf32>
    %c0_31 = arith.constant 0 : index
    %c0_32 = arith.constant 0 : index
    %c0_33 = arith.constant 0 : index
    %36 = vector.load %arg4[%c0_31, %c0_32, %c0_33] : memref<8x1x1xf32, #tpu.memory_space<vmem>>, vector<8x1x1xf32>
    %cst = arith.constant dense<0.000000e+00> : vector<8x16xf32>
    %37 = vector.multi_reduction <add>, %34, %cst [2] : vector<8x16x16xf32> to vector<8x16xf32>
    %38 = vector.shape_cast %37 : vector<8x16xf32> to vector<8x16x1xf32>
    %cst_34 = arith.constant dense<0.000000e+00> : vector<8x1xf32>
    %39 = vector.multi_reduction <add>, %38, %cst_34 [1] : vector<8x16x1xf32> to vector<8x1xf32>
    %40 = vector.shape_cast %39 : vector<8x1xf32> to vector<8x1x1xf32>
    %41 = arith.mulf %34, %34 : vector<8x16x16xf32>
    %cst_35 = arith.constant dense<0.000000e+00> : vector<8x16xf32>
    %42 = vector.multi_reduction <add>, %41, %cst_35 [2] : vector<8x16x16xf32> to vector<8x16xf32>
    %43 = vector.shape_cast %42 : vector<8x16xf32> to vector<8x16x1xf32>
    %cst_36 = arith.constant dense<0.000000e+00> : vector<8x1xf32>
    %44 = vector.multi_reduction <add>, %43, %cst_36 [1] : vector<8x16x1xf32> to vector<8x1xf32>
    %45 = vector.shape_cast %44 : vector<8x1xf32> to vector<8x1x1xf32>
    %cst_37 = arith.constant 3.906250e-03 : f32
    %46 = vector.broadcast %cst_37 : f32 to vector<8x1x1xf32>
    %47 = arith.mulf %40, %46 : vector<8x1x1xf32>
    %cst_38 = arith.constant 3.906250e-03 : f32
    %48 = vector.broadcast %cst_38 : f32 to vector<8x1x1xf32>
    %49 = arith.mulf %45, %48 : vector<8x1x1xf32>
    %50 = arith.mulf %47, %47 : vector<8x1x1xf32>
    %51 = arith.subf %49, %50 : vector<8x1x1xf32>
    %cst_39 = arith.constant 9.99999974E-6 : f32
    %52 = vector.broadcast %cst_39 : f32 to vector<8x1x1xf32>
    %53 = arith.addf %51, %52 : vector<8x1x1xf32>
    %54 = math.rsqrt %53 : vector<8x1x1xf32>
    %55 = vector.broadcast %47 : vector<8x1x1xf32> to vector<8x16x16xf32>
    %56 = arith.subf %34, %55 : vector<8x16x16xf32>
    %57 = arith.mulf %54, %35 : vector<8x1x1xf32>
    %58 = vector.broadcast %57 : vector<8x1x1xf32> to vector<8x16x16xf32>
    %59 = arith.mulf %56, %58 : vector<8x16x16xf32>
    %60 = vector.broadcast %36 : vector<8x1x1xf32> to vector<8x16x16xf32>
    %61 = arith.addf %59, %60 : vector<8x16x16xf32>
    %cst_40 = arith.constant 0.000000e+00 : f32
    %cst_41 = arith.constant 6.000000e+00 : f32
    %62 = vector.broadcast %cst_40 : f32 to vector<8x16x16xf32>
    %63 = arith.maximumf %62, %61 : vector<8x16x16xf32>
    %64 = vector.broadcast %cst_41 : f32 to vector<8x16x16xf32>
    %65 = arith.minimumf %64, %63 : vector<8x16x16xf32>
    %66 = vector.extract_strided_slice %65 {offsets = [0, 1, 0], sizes = [8, 1, 16], strides = [1, 1, 1]} : vector<8x16x16xf32> to vector<8x1x16xf32>
    %67 = vector.extract_strided_slice %65 {offsets = [0, 14, 0], sizes = [8, 1, 16], strides = [1, 1, 1]} : vector<8x16x16xf32> to vector<8x1x16xf32>
    %68 = tpu.concatenate %66, %65, %67 in 1 : vector<8x1x16xf32>, vector<8x16x16xf32>, vector<8x1x16xf32> -> vector<8x18x16xf32>
    %69 = vector.extract_strided_slice %68 {offsets = [0, 0, 1], sizes = [8, 18, 1], strides = [1, 1, 1]} : vector<8x18x16xf32> to vector<8x18x1xf32>
    %70 = vector.extract_strided_slice %68 {offsets = [0, 0, 14], sizes = [8, 18, 1], strides = [1, 1, 1]} : vector<8x18x16xf32> to vector<8x18x1xf32>
    %71 = tpu.concatenate %69, %68, %70 in 2 : vector<8x18x1xf32>, vector<8x18x16xf32>, vector<8x18x1xf32> -> vector<8x18x18xf32>
    %72 = vector.extract_strided_slice %71 {offsets = [0, 0, 0], sizes = [8, 16, 16], strides = [1, 1, 1]} : vector<8x18x18xf32> to vector<8x16x16xf32>
    %c0_42 = arith.constant 0 : index
    %c0_43 = arith.constant 0 : index
    %c0_44 = arith.constant 0 : index
    %c0_45 = arith.constant 0 : index
    %73 = vector.load %arg5[%c0_42, %c0_43, %c0_44, %c0_45] : memref<9x8x1x1xf32, #tpu.memory_space<vmem>>, vector<1x8x1x1xf32>
    %74 = vector.shape_cast %73 : vector<1x8x1x1xf32> to vector<8x1x1xf32>
    %75 = vector.broadcast %74 : vector<8x1x1xf32> to vector<8x16x16xf32>
    %76 = arith.mulf %72, %75 : vector<8x16x16xf32>
    %77 = vector.extract_strided_slice %71 {offsets = [0, 0, 1], sizes = [8, 16, 16], strides = [1, 1, 1]} : vector<8x18x18xf32> to vector<8x16x16xf32>
    %c1_46 = arith.constant 1 : index
    %c0_47 = arith.constant 0 : index
    %c0_48 = arith.constant 0 : index
    %c0_49 = arith.constant 0 : index
    %78 = vector.load %arg5[%c1_46, %c0_47, %c0_48, %c0_49] : memref<9x8x1x1xf32, #tpu.memory_space<vmem>>, vector<1x8x1x1xf32>
    %79 = vector.shape_cast %78 : vector<1x8x1x1xf32> to vector<8x1x1xf32>
    %80 = vector.broadcast %79 : vector<8x1x1xf32> to vector<8x16x16xf32>
    %81 = arith.mulf %77, %80 : vector<8x16x16xf32>
    %82 = arith.addf %76, %81 : vector<8x16x16xf32>
    %83 = vector.extract_strided_slice %71 {offsets = [0, 0, 2], sizes = [8, 16, 16], strides = [1, 1, 1]} : vector<8x18x18xf32> to vector<8x16x16xf32>
    %c2_50 = arith.constant 2 : index
    %c0_51 = arith.constant 0 : index
    %c0_52 = arith.constant 0 : index
    %c0_53 = arith.constant 0 : index
    %84 = vector.load %arg5[%c2_50, %c0_51, %c0_52, %c0_53] : memref<9x8x1x1xf32, #tpu.memory_space<vmem>>, vector<1x8x1x1xf32>
    %85 = vector.shape_cast %84 : vector<1x8x1x1xf32> to vector<8x1x1xf32>
    %86 = vector.broadcast %85 : vector<8x1x1xf32> to vector<8x16x16xf32>
    %87 = arith.mulf %83, %86 : vector<8x16x16xf32>
    %88 = arith.addf %82, %87 : vector<8x16x16xf32>
    %89 = vector.extract_strided_slice %71 {offsets = [0, 1, 0], sizes = [8, 16, 16], strides = [1, 1, 1]} : vector<8x18x18xf32> to vector<8x16x16xf32>
    %c3_54 = arith.constant 3 : index
    %c0_55 = arith.constant 0 : index
    %c0_56 = arith.constant 0 : index
    %c0_57 = arith.constant 0 : index
    %90 = vector.load %arg5[%c3_54, %c0_55, %c0_56, %c0_57] : memref<9x8x1x1xf32, #tpu.memory_space<vmem>>, vector<1x8x1x1xf32>
    %91 = vector.shape_cast %90 : vector<1x8x1x1xf32> to vector<8x1x1xf32>
    %92 = vector.broadcast %91 : vector<8x1x1xf32> to vector<8x16x16xf32>
    %93 = arith.mulf %89, %92 : vector<8x16x16xf32>
    %94 = arith.addf %88, %93 : vector<8x16x16xf32>
    %95 = vector.extract_strided_slice %71 {offsets = [0, 1, 1], sizes = [8, 16, 16], strides = [1, 1, 1]} : vector<8x18x18xf32> to vector<8x16x16xf32>
    %c4 = arith.constant 4 : index
    %c0_58 = arith.constant 0 : index
    %c0_59 = arith.constant 0 : index
    %c0_60 = arith.constant 0 : index
    %96 = vector.load %arg5[%c4, %c0_58, %c0_59, %c0_60] : memref<9x8x1x1xf32, #tpu.memory_space<vmem>>, vector<1x8x1x1xf32>
    %97 = vector.shape_cast %96 : vector<1x8x1x1xf32> to vector<8x1x1xf32>
    %98 = vector.broadcast %97 : vector<8x1x1xf32> to vector<8x16x16xf32>
    %99 = arith.mulf %95, %98 : vector<8x16x16xf32>
    %100 = arith.addf %94, %99 : vector<8x16x16xf32>
    %101 = vector.extract_strided_slice %71 {offsets = [0, 1, 2], sizes = [8, 16, 16], strides = [1, 1, 1]} : vector<8x18x18xf32> to vector<8x16x16xf32>
    %c5 = arith.constant 5 : index
    %c0_61 = arith.constant 0 : index
    %c0_62 = arith.constant 0 : index
    %c0_63 = arith.constant 0 : index
    %102 = vector.load %arg5[%c5, %c0_61, %c0_62, %c0_63] : memref<9x8x1x1xf32, #tpu.memory_space<vmem>>, vector<1x8x1x1xf32>
    %103 = vector.shape_cast %102 : vector<1x8x1x1xf32> to vector<8x1x1xf32>
    %104 = vector.broadcast %103 : vector<8x1x1xf32> to vector<8x16x16xf32>
    %105 = arith.mulf %101, %104 : vector<8x16x16xf32>
    %106 = arith.addf %100, %105 : vector<8x16x16xf32>
    %107 = vector.extract_strided_slice %71 {offsets = [0, 2, 0], sizes = [8, 16, 16], strides = [1, 1, 1]} : vector<8x18x18xf32> to vector<8x16x16xf32>
    %c6 = arith.constant 6 : index
    %c0_64 = arith.constant 0 : index
    %c0_65 = arith.constant 0 : index
    %c0_66 = arith.constant 0 : index
    %108 = vector.load %arg5[%c6, %c0_64, %c0_65, %c0_66] : memref<9x8x1x1xf32, #tpu.memory_space<vmem>>, vector<1x8x1x1xf32>
    %109 = vector.shape_cast %108 : vector<1x8x1x1xf32> to vector<8x1x1xf32>
    %110 = vector.broadcast %109 : vector<8x1x1xf32> to vector<8x16x16xf32>
    %111 = arith.mulf %107, %110 : vector<8x16x16xf32>
    %112 = arith.addf %106, %111 : vector<8x16x16xf32>
    %113 = vector.extract_strided_slice %71 {offsets = [0, 2, 1], sizes = [8, 16, 16], strides = [1, 1, 1]} : vector<8x18x18xf32> to vector<8x16x16xf32>
    %c7 = arith.constant 7 : index
    %c0_67 = arith.constant 0 : index
    %c0_68 = arith.constant 0 : index
    %c0_69 = arith.constant 0 : index
    %114 = vector.load %arg5[%c7, %c0_67, %c0_68, %c0_69] : memref<9x8x1x1xf32, #tpu.memory_space<vmem>>, vector<1x8x1x1xf32>
    %115 = vector.shape_cast %114 : vector<1x8x1x1xf32> to vector<8x1x1xf32>
    %116 = vector.broadcast %115 : vector<8x1x1xf32> to vector<8x16x16xf32>
    %117 = arith.mulf %113, %116 : vector<8x16x16xf32>
    %118 = arith.addf %112, %117 : vector<8x16x16xf32>
    %119 = vector.extract_strided_slice %71 {offsets = [0, 2, 2], sizes = [8, 16, 16], strides = [1, 1, 1]} : vector<8x18x18xf32> to vector<8x16x16xf32>
    %c8 = arith.constant 8 : index
    %c0_70 = arith.constant 0 : index
    %c0_71 = arith.constant 0 : index
    %c0_72 = arith.constant 0 : index
    %120 = vector.load %arg5[%c8, %c0_70, %c0_71, %c0_72] : memref<9x8x1x1xf32, #tpu.memory_space<vmem>>, vector<1x8x1x1xf32>
    %121 = vector.shape_cast %120 : vector<1x8x1x1xf32> to vector<8x1x1xf32>
    %122 = vector.broadcast %121 : vector<8x1x1xf32> to vector<8x16x16xf32>
    %123 = arith.mulf %119, %122 : vector<8x16x16xf32>
    %124 = arith.addf %118, %123 : vector<8x16x16xf32>
    %c0_73 = arith.constant 0 : index
    %c0_74 = arith.constant 0 : index
    %c0_75 = arith.constant 0 : index
    %125 = vector.load %arg6[%c0_73, %c0_74, %c0_75] : memref<8x1x1xf32, #tpu.memory_space<vmem>>, vector<8x1x1xf32>
    %c0_76 = arith.constant 0 : index
    %c0_77 = arith.constant 0 : index
    %c0_78 = arith.constant 0 : index
    %126 = vector.load %arg7[%c0_76, %c0_77, %c0_78] : memref<8x1x1xf32, #tpu.memory_space<vmem>>, vector<8x1x1xf32>
    %cst_79 = arith.constant dense<0.000000e+00> : vector<8x16xf32>
    %127 = vector.multi_reduction <add>, %124, %cst_79 [2] : vector<8x16x16xf32> to vector<8x16xf32>
    %128 = vector.shape_cast %127 : vector<8x16xf32> to vector<8x16x1xf32>
    %cst_80 = arith.constant dense<0.000000e+00> : vector<8x1xf32>
    %129 = vector.multi_reduction <add>, %128, %cst_80 [1] : vector<8x16x1xf32> to vector<8x1xf32>
    %130 = vector.shape_cast %129 : vector<8x1xf32> to vector<8x1x1xf32>
    %131 = arith.mulf %124, %124 : vector<8x16x16xf32>
    %cst_81 = arith.constant dense<0.000000e+00> : vector<8x16xf32>
    %132 = vector.multi_reduction <add>, %131, %cst_81 [2] : vector<8x16x16xf32> to vector<8x16xf32>
    %133 = vector.shape_cast %132 : vector<8x16xf32> to vector<8x16x1xf32>
    %cst_82 = arith.constant dense<0.000000e+00> : vector<8x1xf32>
    %134 = vector.multi_reduction <add>, %133, %cst_82 [1] : vector<8x16x1xf32> to vector<8x1xf32>
    %135 = vector.shape_cast %134 : vector<8x1xf32> to vector<8x1x1xf32>
    %cst_83 = arith.constant 3.906250e-03 : f32
    %136 = vector.broadcast %cst_83 : f32 to vector<8x1x1xf32>
    %137 = arith.mulf %130, %136 : vector<8x1x1xf32>
    %cst_84 = arith.constant 3.906250e-03 : f32
    %138 = vector.broadcast %cst_84 : f32 to vector<8x1x1xf32>
    %139 = arith.mulf %135, %138 : vector<8x1x1xf32>
    %140 = arith.mulf %137, %137 : vector<8x1x1xf32>
    %141 = arith.subf %139, %140 : vector<8x1x1xf32>
    %cst_85 = arith.constant 9.99999974E-6 : f32
    %142 = vector.broadcast %cst_85 : f32 to vector<8x1x1xf32>
    %143 = arith.addf %141, %142 : vector<8x1x1xf32>
    %144 = math.rsqrt %143 : vector<8x1x1xf32>
    %145 = vector.broadcast %137 : vector<8x1x1xf32> to vector<8x16x16xf32>
    %146 = arith.subf %124, %145 : vector<8x16x16xf32>
    %147 = arith.mulf %144, %125 : vector<8x1x1xf32>
    %148 = vector.broadcast %147 : vector<8x1x1xf32> to vector<8x16x16xf32>
    %149 = arith.mulf %146, %148 : vector<8x16x16xf32>
    %150 = vector.broadcast %126 : vector<8x1x1xf32> to vector<8x16x16xf32>
    %151 = arith.addf %149, %150 : vector<8x16x16xf32>
    %cst_86 = arith.constant 0.000000e+00 : f32
    %cst_87 = arith.constant 6.000000e+00 : f32
    %152 = vector.broadcast %cst_86 : f32 to vector<8x16x16xf32>
    %153 = arith.maximumf %152, %151 : vector<8x16x16xf32>
    %154 = vector.broadcast %cst_87 : f32 to vector<8x16x16xf32>
    %155 = arith.minimumf %154, %153 : vector<8x16x16xf32>
    %c0_88 = arith.constant 0 : index
    %c0_89 = arith.constant 0 : index
    %c0_90 = arith.constant 0 : index
    %c0_91 = arith.constant 0 : index
    %156 = vector.load %arg8[%c0_88, %c0_89, %c0_90, %c0_91] : memref<8x4x1x1xf32, #tpu.memory_space<vmem>>, vector<1x4x1x1xf32>
    %157 = vector.shape_cast %156 : vector<1x4x1x1xf32> to vector<4x1x1xf32>
    %158 = vector.extract_strided_slice %155 {offsets = [0, 0, 0], sizes = [1, 16, 16], strides = [1, 1, 1]} : vector<8x16x16xf32> to vector<1x16x16xf32>
    %159 = vector.shape_cast %158 : vector<1x16x16xf32> to vector<16x16xf32>
    %160 = vector.shape_cast %159 : vector<16x16xf32> to vector<1x16x16xf32>
    %161 = vector.broadcast %157 : vector<4x1x1xf32> to vector<4x16x16xf32>
    %162 = vector.broadcast %160 : vector<1x16x16xf32> to vector<4x16x16xf32>
    %163 = arith.mulf %161, %162 : vector<4x16x16xf32>
    %c1_92 = arith.constant 1 : index
    %c0_93 = arith.constant 0 : index
    %c0_94 = arith.constant 0 : index
    %c0_95 = arith.constant 0 : index
    %164 = vector.load %arg8[%c1_92, %c0_93, %c0_94, %c0_95] : memref<8x4x1x1xf32, #tpu.memory_space<vmem>>, vector<1x4x1x1xf32>
    %165 = vector.shape_cast %164 : vector<1x4x1x1xf32> to vector<4x1x1xf32>
    %166 = vector.extract_strided_slice %155 {offsets = [1, 0, 0], sizes = [1, 16, 16], strides = [1, 1, 1]} : vector<8x16x16xf32> to vector<1x16x16xf32>
    %167 = vector.shape_cast %166 : vector<1x16x16xf32> to vector<16x16xf32>
    %168 = vector.shape_cast %167 : vector<16x16xf32> to vector<1x16x16xf32>
    %169 = vector.broadcast %165 : vector<4x1x1xf32> to vector<4x16x16xf32>
    %170 = vector.broadcast %168 : vector<1x16x16xf32> to vector<4x16x16xf32>
    %171 = arith.mulf %169, %170 : vector<4x16x16xf32>
    %172 = arith.addf %163, %171 : vector<4x16x16xf32>
    %c2_96 = arith.constant 2 : index
    %c0_97 = arith.constant 0 : index
    %c0_98 = arith.constant 0 : index
    %c0_99 = arith.constant 0 : index
    %173 = vector.load %arg8[%c2_96, %c0_97, %c0_98, %c0_99] : memref<8x4x1x1xf32, #tpu.memory_space<vmem>>, vector<1x4x1x1xf32>
    %174 = vector.shape_cast %173 : vector<1x4x1x1xf32> to vector<4x1x1xf32>
    %175 = vector.extract_strided_slice %155 {offsets = [2, 0, 0], sizes = [1, 16, 16], strides = [1, 1, 1]} : vector<8x16x16xf32> to vector<1x16x16xf32>
    %176 = vector.shape_cast %175 : vector<1x16x16xf32> to vector<16x16xf32>
    %177 = vector.shape_cast %176 : vector<16x16xf32> to vector<1x16x16xf32>
    %178 = vector.broadcast %174 : vector<4x1x1xf32> to vector<4x16x16xf32>
    %179 = vector.broadcast %177 : vector<1x16x16xf32> to vector<4x16x16xf32>
    %180 = arith.mulf %178, %179 : vector<4x16x16xf32>
    %181 = arith.addf %172, %180 : vector<4x16x16xf32>
    %c3_100 = arith.constant 3 : index
    %c0_101 = arith.constant 0 : index
    %c0_102 = arith.constant 0 : index
    %c0_103 = arith.constant 0 : index
    %182 = vector.load %arg8[%c3_100, %c0_101, %c0_102, %c0_103] : memref<8x4x1x1xf32, #tpu.memory_space<vmem>>, vector<1x4x1x1xf32>
    %183 = vector.shape_cast %182 : vector<1x4x1x1xf32> to vector<4x1x1xf32>
    %184 = vector.extract_strided_slice %155 {offsets = [3, 0, 0], sizes = [1, 16, 16], strides = [1, 1, 1]} : vector<8x16x16xf32> to vector<1x16x16xf32>
    %185 = vector.shape_cast %184 : vector<1x16x16xf32> to vector<16x16xf32>
    %186 = vector.shape_cast %185 : vector<16x16xf32> to vector<1x16x16xf32>
    %187 = vector.broadcast %183 : vector<4x1x1xf32> to vector<4x16x16xf32>
    %188 = vector.broadcast %186 : vector<1x16x16xf32> to vector<4x16x16xf32>
    %189 = arith.mulf %187, %188 : vector<4x16x16xf32>
    %190 = arith.addf %181, %189 : vector<4x16x16xf32>
    %c4_104 = arith.constant 4 : index
    %c0_105 = arith.constant 0 : index
    %c0_106 = arith.constant 0 : index
    %c0_107 = arith.constant 0 : index
    %191 = vector.load %arg8[%c4_104, %c0_105, %c0_106, %c0_107] : memref<8x4x1x1xf32, #tpu.memory_space<vmem>>, vector<1x4x1x1xf32>
    %192 = vector.shape_cast %191 : vector<1x4x1x1xf32> to vector<4x1x1xf32>
    %193 = vector.extract_strided_slice %155 {offsets = [4, 0, 0], sizes = [1, 16, 16], strides = [1, 1, 1]} : vector<8x16x16xf32> to vector<1x16x16xf32>
    %194 = vector.shape_cast %193 : vector<1x16x16xf32> to vector<16x16xf32>
    %195 = vector.shape_cast %194 : vector<16x16xf32> to vector<1x16x16xf32>
    %196 = vector.broadcast %192 : vector<4x1x1xf32> to vector<4x16x16xf32>
    %197 = vector.broadcast %195 : vector<1x16x16xf32> to vector<4x16x16xf32>
    %198 = arith.mulf %196, %197 : vector<4x16x16xf32>
    %199 = arith.addf %190, %198 : vector<4x16x16xf32>
    %c5_108 = arith.constant 5 : index
    %c0_109 = arith.constant 0 : index
    %c0_110 = arith.constant 0 : index
    %c0_111 = arith.constant 0 : index
    %200 = vector.load %arg8[%c5_108, %c0_109, %c0_110, %c0_111] : memref<8x4x1x1xf32, #tpu.memory_space<vmem>>, vector<1x4x1x1xf32>
    %201 = vector.shape_cast %200 : vector<1x4x1x1xf32> to vector<4x1x1xf32>
    %202 = vector.extract_strided_slice %155 {offsets = [5, 0, 0], sizes = [1, 16, 16], strides = [1, 1, 1]} : vector<8x16x16xf32> to vector<1x16x16xf32>
    %203 = vector.shape_cast %202 : vector<1x16x16xf32> to vector<16x16xf32>
    %204 = vector.shape_cast %203 : vector<16x16xf32> to vector<1x16x16xf32>
    %205 = vector.broadcast %201 : vector<4x1x1xf32> to vector<4x16x16xf32>
    %206 = vector.broadcast %204 : vector<1x16x16xf32> to vector<4x16x16xf32>
    %207 = arith.mulf %205, %206 : vector<4x16x16xf32>
    %208 = arith.addf %199, %207 : vector<4x16x16xf32>
    %c6_112 = arith.constant 6 : index
    %c0_113 = arith.constant 0 : index
    %c0_114 = arith.constant 0 : index
    %c0_115 = arith.constant 0 : index
    %209 = vector.load %arg8[%c6_112, %c0_113, %c0_114, %c0_115] : memref<8x4x1x1xf32, #tpu.memory_space<vmem>>, vector<1x4x1x1xf32>
    %210 = vector.shape_cast %209 : vector<1x4x1x1xf32> to vector<4x1x1xf32>
    %211 = vector.extract_strided_slice %155 {offsets = [6, 0, 0], sizes = [1, 16, 16], strides = [1, 1, 1]} : vector<8x16x16xf32> to vector<1x16x16xf32>
    %212 = vector.shape_cast %211 : vector<1x16x16xf32> to vector<16x16xf32>
    %213 = vector.shape_cast %212 : vector<16x16xf32> to vector<1x16x16xf32>
    %214 = vector.broadcast %210 : vector<4x1x1xf32> to vector<4x16x16xf32>
    %215 = vector.broadcast %213 : vector<1x16x16xf32> to vector<4x16x16xf32>
    %216 = arith.mulf %214, %215 : vector<4x16x16xf32>
    %217 = arith.addf %208, %216 : vector<4x16x16xf32>
    %c7_116 = arith.constant 7 : index
    %c0_117 = arith.constant 0 : index
    %c0_118 = arith.constant 0 : index
    %c0_119 = arith.constant 0 : index
    %218 = vector.load %arg8[%c7_116, %c0_117, %c0_118, %c0_119] : memref<8x4x1x1xf32, #tpu.memory_space<vmem>>, vector<1x4x1x1xf32>
    %219 = vector.shape_cast %218 : vector<1x4x1x1xf32> to vector<4x1x1xf32>
    %220 = vector.extract_strided_slice %155 {offsets = [7, 0, 0], sizes = [1, 16, 16], strides = [1, 1, 1]} : vector<8x16x16xf32> to vector<1x16x16xf32>
    %221 = vector.shape_cast %220 : vector<1x16x16xf32> to vector<16x16xf32>
    %222 = vector.shape_cast %221 : vector<16x16xf32> to vector<1x16x16xf32>
    %223 = vector.broadcast %219 : vector<4x1x1xf32> to vector<4x16x16xf32>
    %224 = vector.broadcast %222 : vector<1x16x16xf32> to vector<4x16x16xf32>
    %225 = arith.mulf %223, %224 : vector<4x16x16xf32>
    %226 = arith.addf %217, %225 : vector<4x16x16xf32>
    %c0_120 = arith.constant 0 : index
    %c0_121 = arith.constant 0 : index
    %c0_122 = arith.constant 0 : index
    %227 = vector.load %arg9[%c0_120, %c0_121, %c0_122] : memref<4x1x1xf32, #tpu.memory_space<vmem>>, vector<4x1x1xf32>
    %c0_123 = arith.constant 0 : index
    %c0_124 = arith.constant 0 : index
    %c0_125 = arith.constant 0 : index
    %228 = vector.load %arg10[%c0_123, %c0_124, %c0_125] : memref<4x1x1xf32, #tpu.memory_space<vmem>>, vector<4x1x1xf32>
    %cst_126 = arith.constant dense<0.000000e+00> : vector<4x16xf32>
    %229 = vector.multi_reduction <add>, %226, %cst_126 [2] : vector<4x16x16xf32> to vector<4x16xf32>
    %230 = vector.shape_cast %229 : vector<4x16xf32> to vector<4x16x1xf32>
    %cst_127 = arith.constant dense<0.000000e+00> : vector<4x1xf32>
    %231 = vector.multi_reduction <add>, %230, %cst_127 [1] : vector<4x16x1xf32> to vector<4x1xf32>
    %232 = vector.shape_cast %231 : vector<4x1xf32> to vector<4x1x1xf32>
    %233 = arith.mulf %226, %226 : vector<4x16x16xf32>
    %cst_128 = arith.constant dense<0.000000e+00> : vector<4x16xf32>
    %234 = vector.multi_reduction <add>, %233, %cst_128 [2] : vector<4x16x16xf32> to vector<4x16xf32>
    %235 = vector.shape_cast %234 : vector<4x16xf32> to vector<4x16x1xf32>
    %cst_129 = arith.constant dense<0.000000e+00> : vector<4x1xf32>
    %236 = vector.multi_reduction <add>, %235, %cst_129 [1] : vector<4x16x1xf32> to vector<4x1xf32>
    %237 = vector.shape_cast %236 : vector<4x1xf32> to vector<4x1x1xf32>
    %cst_130 = arith.constant 3.906250e-03 : f32
    %238 = vector.broadcast %cst_130 : f32 to vector<4x1x1xf32>
    %239 = arith.mulf %232, %238 : vector<4x1x1xf32>
    %cst_131 = arith.constant 3.906250e-03 : f32
    %240 = vector.broadcast %cst_131 : f32 to vector<4x1x1xf32>
    %241 = arith.mulf %237, %240 : vector<4x1x1xf32>
    %242 = arith.mulf %239, %239 : vector<4x1x1xf32>
    %243 = arith.subf %241, %242 : vector<4x1x1xf32>
    %cst_132 = arith.constant 9.99999974E-6 : f32
    %244 = vector.broadcast %cst_132 : f32 to vector<4x1x1xf32>
    %245 = arith.addf %243, %244 : vector<4x1x1xf32>
    %246 = math.rsqrt %245 : vector<4x1x1xf32>
    %247 = vector.broadcast %239 : vector<4x1x1xf32> to vector<4x16x16xf32>
    %248 = arith.subf %226, %247 : vector<4x16x16xf32>
    %249 = arith.mulf %246, %227 : vector<4x1x1xf32>
    %250 = vector.broadcast %249 : vector<4x1x1xf32> to vector<4x16x16xf32>
    %251 = arith.mulf %248, %250 : vector<4x16x16xf32>
    %252 = vector.broadcast %228 : vector<4x1x1xf32> to vector<4x16x16xf32>
    %253 = arith.addf %251, %252 : vector<4x16x16xf32>
    %c0_133 = arith.constant 0 : index
    %c0_134 = arith.constant 0 : index
    %c0_135 = arith.constant 0 : index
    %c0_136 = arith.constant 0 : index
    %254 = vector.load %arg1[%c0_133, %c0_134, %c0_135, %c0_136] : memref<1x4x16x16xf32, #tpu.memory_space<vmem>>, vector<1x4x16x16xf32>
    %255 = vector.shape_cast %254 : vector<1x4x16x16xf32> to vector<4x16x16xf32>
    %256 = arith.addf %253, %255 : vector<4x16x16xf32>
    %c0_137 = arith.constant 0 : index
    %c0_138 = arith.constant 0 : index
    %c0_139 = arith.constant 0 : index
    %c0_140 = arith.constant 0 : index
    %257 = vector.load %arg11[%c0_137, %c0_138, %c0_139, %c0_140] : memref<1x4x16x16xf32, #tpu.memory_space<vmem>>, vector<1x4x16x16xf32>
    %258 = vector.shape_cast %257 : vector<1x4x16x16xf32> to vector<4x16x16xf32>
    %259 = vector.shape_cast %256 : vector<4x16x16xf32> to vector<1x4x16x16xf32>
    tpu.vector_store %arg11[%c0_137, %c0_138, %c0_139, %c0_140], %259 {strides = array<i32>} : memref<1x4x16x16xf32, #tpu.memory_space<vmem>>, vector<1x4x16x16xf32>,
    return
  }
  func.func @transform_0(%arg0: i32) -> (i32, i32, i32, i32) {
    %c0_i32 = arith.constant 0 : i32
    %c0_i32_0 = arith.constant 0 : i32
    %c0_i32_1 = arith.constant 0 : i32
    %c0_i32_2 = arith.constant 0 : i32
    return %arg0, %c0_i32, %c0_i32_0, %c0_i32_1 : i32, i32, i32, i32
  }
  func.func @transform_1(%arg0: i32) -> (i32, i32, i32, i32) {
    %c0_i32 = arith.constant 0 : i32
    %c0_i32_0 = arith.constant 0 : i32
    %c0_i32_1 = arith.constant 0 : i32
    %c0_i32_2 = arith.constant 0 : i32
    %c0_i32_3 = arith.constant 0 : i32
    return %c0_i32, %c0_i32_0, %c0_i32_1, %c0_i32_2 : i32, i32, i32, i32
  }
  func.func @transform_2(%arg0: i32) -> (i32, i32, i32) {
    %c0_i32 = arith.constant 0 : i32
    %c0_i32_0 = arith.constant 0 : i32
    %c0_i32_1 = arith.constant 0 : i32
    %c0_i32_2 = arith.constant 0 : i32
    return %c0_i32, %c0_i32_0, %c0_i32_1 : i32, i32, i32
  }
  func.func @transform_3(%arg0: i32) -> (i32, i32, i32) {
    %c0_i32 = arith.constant 0 : i32
    %c0_i32_0 = arith.constant 0 : i32
    %c0_i32_1 = arith.constant 0 : i32
    %c0_i32_2 = arith.constant 0 : i32
    return %c0_i32, %c0_i32_0, %c0_i32_1 : i32, i32, i32
  }
  func.func @transform_4(%arg0: i32) -> (i32, i32, i32, i32) {
    %c0_i32 = arith.constant 0 : i32
    %c0_i32_0 = arith.constant 0 : i32
    %c0_i32_1 = arith.constant 0 : i32
    %c0_i32_2 = arith.constant 0 : i32
    %c0_i32_3 = arith.constant 0 : i32
    return %c0_i32, %c0_i32_0, %c0_i32_1, %c0_i32_2 : i32, i32, i32, i32
  }
  func.func @transform_5(%arg0: i32) -> (i32, i32, i32) {
    %c0_i32 = arith.constant 0 : i32
    %c0_i32_0 = arith.constant 0 : i32
    %c0_i32_1 = arith.constant 0 : i32
    %c0_i32_2 = arith.constant 0 : i32
    return %c0_i32, %c0_i32_0, %c0_i32_1 : i32, i32, i32
  }
  func.func @transform_6(%arg0: i32) -> (i32, i32, i32) {
    %c0_i32 = arith.constant 0 : i32
    %c0_i32_0 = arith.constant 0 : i32
    %c0_i32_1 = arith.constant 0 : i32
    %c0_i32_2 = arith.constant 0 : i32
    return %c0_i32, %c0_i32_0, %c0_i32_1 : i32, i32, i32
  }
  func.func @transform_7(%arg0: i32) -> (i32, i32, i32, i32) {
    %c0_i32 = arith.constant 0 : i32
    %c0_i32_0 = arith.constant 0 : i32
    %c0_i32_1 = arith.constant 0 : i32
    %c0_i32_2 = arith.constant 0 : i32
    %c0_i32_3 = arith.constant 0 : i32
    return %c0_i32, %c0_i32_0, %c0_i32_1, %c0_i32_2 : i32, i32, i32, i32
  }
  func.func @transform_8(%arg0: i32) -> (i32, i32, i32) {
    %c0_i32 = arith.constant 0 : i32
    %c0_i32_0 = arith.constant 0 : i32
    %c0_i32_1 = arith.constant 0 : i32
    %c0_i32_2 = arith.constant 0 : i32
    return %c0_i32, %c0_i32_0, %c0_i32_1 : i32, i32, i32
  }
  func.func @transform_9(%arg0: i32) -> (i32, i32, i32) {
    %c0_i32 = arith.constant 0 : i32
    %c0_i32_0 = arith.constant 0 : i32
    %c0_i32_1 = arith.constant 0 : i32
    %c0_i32_2 = arith.constant 0 : i32
    return %c0_i32, %c0_i32_0, %c0_i32_1 : i32, i32, i32
  }
  func.func @transform_10(%arg0: i32) -> (i32, i32, i32, i32) {
    %c0_i32 = arith.constant 0 : i32
    %c0_i32_0 = arith.constant 0 : i32
    %c0_i32_1 = arith.constant 0 : i32
    %c0_i32_2 = arith.constant 0 : i32
    return %arg0, %c0_i32, %c0_i32_0, %c0_i32_1 : i32, i32, i32, i32
  }
}

</mosaic_0001>

<bundles_post_ra>
// kernel: tpu_custom_call.1
= control target key start
LH: loop header
LB: loop body
LE: loop exit
PB: predicated region body
PF: predicated region fallthrough
CT: control target
= control target key end

     0   :  { %s8432_s0 = inlined_call_operand.hbm [shape: f32[2,4,16,16], index: 0, kind: input, shape index: {}]   ;;  %s8433_s1 = inlined_call_operand.hbm [shape: f32[4,8,1,1], index: 1, kind: input, shape index: {}]   ;;  %s8434_s2 = inlined_call_operand.hbm [shape: f32[8,1,1], index: 2, kind: input, shape index: {}]   ;;  %s8435_s3 = inlined_call_operand.hbm [shape: f32[8,1,1], index: 3, kind: input, shape index: {}]   ;;  %s8436_s4 = inlined_call_operand.hbm [shape: f32[9,8,1,1], index: 4, kind: input, shape index: {}]   ;;  %s8437_s5 = inlined_call_operand.hbm [shape: f32[8,1,1], index: 5, kind: input, shape index: {}]   ;;  %s8438_s6 = inlined_call_operand.hbm [shape: f32[8,1,1], index: 6, kind: input, shape index: {}]   ;;  %s8439_s7 = inlined_call_operand.hbm [shape: f32[8,4,1,1], index: 7, kind: input, shape index: {}]   ;;  %s8440_s8 = inlined_call_operand.hbm [shape: f32[4,1,1], index: 8, kind: input, shape index: {}]   ;;  %s8441_s9 = inlined_call_operand.hbm [shape: f32[4,1,1], index: 9, kind: input, shape index: {}]   ;;  %s8442_s10 = inlined_call_operand.hbm [shape: f32[2,4,16,16], index: 10, kind: output, shape index: {}]  }
   0x1   :  { %8517 = sst [smem:[#allocation107_spill]] %s8433_s1 }
   0x2   :  { %8518 = sst [smem:[#allocation108_spill]] %s8442_s10 }
   0x3   :  { %15 = vsyncpa [#allocation3], 0 }
   0x4   :  { %17 = vsyncpa [#allocation3 + $0x1], 0 }
   0x5   :  { %18 = vsyncpa [#allocation6], 0 }
   0x6   :  { %19 = vsyncpa [#allocation9], 0 }
   0x7   :  { %20 = vsyncpa [#allocation12], 0 }
   0x8   :  { %21 = vsyncpa [#allocation15], 0 }
   0x9   :  { %22 = vsyncpa [#allocation18], 0 }
   0xa   :  { %23 = vsyncpa [#allocation4], 0 }
   0xb   :  { %25 = vsyncpa [#allocation4 + $0x1], 0  ;;  %s5890_s13 = smov 0   ;;  %s5892_s14 = smov 0  }
   0xc   :  { %s5894_s15 = smov 0   ;;  %s5896_s16 = smov 0  }
   0xd LB: > { %s5813_s17 = smov [#allocation5]   ;;  %s5911_s19 = sadd.s32 4294967295, %s5811_s16   ;;  %s5811_s16 = sphi %s5896_s16, %s8792_s16   ;;  %s5807_s15 = sphi %s5894_s15, %s8791_s15   ;;  %s5803_s14 = sphi %s5892_s14, %s8790_s14   ;;  %s5799_s13 = sphi %s5890_s13, %s8789_s13  }
   0xe   : > { %s289_s18 = sshll.u32 %s5813_s17, 4  ;;  %p5058_p0 = scmp.ge.s32.totalorder %s5811_s16, 1  ;;  %s5916_s18 = int_to_ptr.vmem [resolvable:$true] %s289_s18 }
   0xf   : > { %p8445_p1 = scmp.eq.s32.totalorder %s5911_s19, 0  ;;  %p277_p2 = scmp.lt.s32.totalorder %s5811_s16, 3 }
  0x10   : > { %s5814_s21 = smov [#allocation8]   ;;  %s5815_s24 = smov [#allocation11]  }
  0x11   : > { %p5918_p3 = pnand %p5058_p0, %p277_p2  ;;  %s315_s22 = sshll.u32 %s5814_s21, 4  ;;  %s5931_s22 = int_to_ptr.vmem [resolvable:$true] %s315_s22 }
  0x12   : > { %s341_s25 = sshll.u32 %s5815_s24, 4  ;;  %s8522_s1 = sld [smem:[#allocation107_spill]]  ;;  %s5933_s25 = int_to_ptr.vmem [resolvable:$true] %s341_s25 }
  0x13   : > { %s8519_s20 = scalar_select %p5918_p3, 1, 0 }
  0x14   : > { %p5293_p5 = pneg %p5918_p3 }
  0x15   : > { %8520 = sst [smem:[#allocation27_spill]] %s8519_s20 }
  0x16   : > { %p5927_p6 = pnand %p5293_p5, %p8445_p1 }
  0x18   : > { %s5443_s28 = scalar_lea.hbm %s8522_s1, 512  ;;  %p5943_p8 = pneg %p5927_p6 }
  0x19   : > { %p5444_p7 = scmp.ne.s32.totalorder %s8522_s1, %s5443_s28  ;;  %p5450_p11 = scmp.lt.u32.totalorder %s5443_s28, %s8522_s1 }
  0x1b   : > { %p5446_p9 = pnand %p5943_p8, %p5444_p7 }
  0x1d   : > { %p5447_p10 = pneg %p5446_p9 }
  0x1f   : > { %p5452_p12 = pnand %p5450_p11, %p5447_p10 }
  0x21   : > { %5455 = shalt.err (!%p5452_p12)
}
  0x22   : > { %s5456_s21 = scalar_lea.vmem %s5916_s18, 512  ;;  %p5464_p5 = scmp.lt.s32.totalorder %s5916_s18, %s5916_s18 }
  0x23   : > { %p5457_p13 = scmp.ne.s32.totalorder %s5916_s18, %s5456_s21  ;;  %p5465_p4 = scmp.lt.s32.totalorder %s5456_s21, %s5456_s21 }
  0x25   : > { %p5459_p0 = pnand %p5457_p13, %p5943_p8  ;;  %p5466_p7 = por %p5465_p4, %p5464_p5 }
  0x27   : > { %p5460_p2 = pneg %p5459_p0 }
  0x29   : > { %p5467_p9 = pnand %p5466_p7, %p5460_p2 }
  0x2b   : > { %5470 = shalt.err (!%p5467_p9)
}
  0x2c   : > { %s5816_s24 = smov 16   ;;  %s5817_s26 = smov 1  }
  0x2d   : > { %5296 = dma.hbm_to_vmem [thread:$0]  (!%p5927_p6), %s8522_s1, 512, %s5916_s18, [#allocation6], %s5816_s24, %s5816_s24, %s5817_s26  }
  0x2e   : > { %s5471_s12 = scalar_lea.hbm %s8435_s3, 128 }
  0x2f   : > { %p5472_p4 = scmp.ne.s32.totalorder %s8435_s3, %s5471_s12  ;;  %p5478_p12 = scmp.lt.u32.totalorder %s5471_s12, %s8435_s3 }
  0x31   : > { %p5474_p10 = pnand %p5472_p4, %p5943_p8 }
  0x33   : > { %p5475_p11 = pneg %p5474_p10 }
  0x35   : > { %p5480_p13 = pnand %p5478_p12, %p5475_p11 }
  0x37   : > { %5483 = shalt.err (!%p5480_p13)
}
  0x38   : > { %s5484_s18 = scalar_lea.vmem %s5931_s22, 128  ;;  %p5492_p7 = scmp.lt.s32.totalorder %s5931_s22, %s5931_s22 }
  0x39   : > { %p5485_p0 = scmp.ne.s32.totalorder %s5931_s22, %s5484_s18  ;;  %p5493_p9 = scmp.lt.s32.totalorder %s5484_s18, %s5484_s18 }
  0x3b   : > { %p5487_p2 = pnand %p5485_p0, %p5943_p8  ;;  %p5494_p4 = por %p5493_p9, %p5492_p7 }
  0x3d   : > { %p5488_p5 = pneg %p5487_p2 }
  0x3f   : > { %p5495_p10 = pnand %p5494_p4, %p5488_p5 }
  0x41   : > { %5498 = shalt.err (!%p5495_p10)
}
  0x42   : > { %5302 = dma.hbm_to_vmem [thread:$0]  (!%p5927_p6), %s8435_s3, 128, %s5931_s22, [#allocation9], %s5816_s24, %s5816_s24, %s5817_s26  }
  0x43   : > { %s5499_s29 = scalar_lea.hbm %s8437_s5, 128 }
  0x44   : > { %p5500_p11 = scmp.ne.s32.totalorder %s8437_s5, %s5499_s29  ;;  %p5506_p0 = scmp.lt.u32.totalorder %s5499_s29, %s8437_s5 }
  0x46   : > { %p5502_p12 = pnand %p5500_p11, %p5943_p8 }
  0x48   : > { %p5503_p13 = pneg %p5502_p12 }
  0x4a   : > { %p5508_p2 = pnand %p5506_p0, %p5503_p13 }
  0x4c   : > { %5511 = shalt.err (!%p5508_p2)
}
  0x4d   : > { %s5512_s22 = scalar_lea.vmem %s5933_s25, 128  ;;  %p5520_p4 = scmp.lt.s32.totalorder %s5933_s25, %s5933_s25 }
  0x4e   : > { %p5513_p5 = scmp.ne.s32.totalorder %s5933_s25, %s5512_s22  ;;  %p5521_p10 = scmp.lt.s32.totalorder %s5512_s22, %s5512_s22 }
  0x50   : > { %p5515_p7 = pnand %p5513_p5, %p5943_p8  ;;  %p5522_p11 = por %p5521_p10, %p5520_p4 }
  0x52   : > { %p5516_p9 = pneg %p5515_p7 }
  0x54   : > { %p5523_p12 = pnand %p5522_p11, %p5516_p9 }
  0x56   : > { %5526 = shalt.err (!%p5523_p12)
}
  0x57   : > { %5308 = dma.hbm_to_vmem [thread:$0]  (!%p5927_p6), %s8437_s5, 128, %s5933_s25, [#allocation12], %s5816_s24, %s5816_s24, %s5817_s26  }
  0x58   : > { %s5818_s20 = smov [#allocation14]   ;;  %s5819_s28 = smov [#allocation7]  }
  0x59   : > { %s367_s27 = sshll.u32 %s5818_s20, 4  ;;  %s302_s29 = sshll.u32 %s5819_s28, 4  ;;  %s368_s27 = int_to_ptr.vmem [resolvable:$true] %s367_s27  ;;  %s303_s29 = int_to_ptr.vmem [resolvable:$true] %s302_s29 }
  0x5a   : > { %s5527_s17 = scalar_lea.hbm %s8439_s7, 512 }
  0x5b   : > { %p5528_p13 = scmp.ne.s32.totalorder %s8439_s7, %s5527_s17  ;;  %p5534_p5 = scmp.lt.u32.totalorder %s5527_s17, %s8439_s7 }
  0x5d   : > { %p5530_p0 = pnand %p5528_p13, %p5943_p8 }
  0x5f   : > { %p5531_p2 = pneg %p5530_p0 }
  0x61   : > { %p5536_p7 = pnand %p5534_p5, %p5531_p2 }
  0x63   : > { %5539 = shalt.err (!%p5536_p7)
}
  0x64   : > { %s5540_s25 = scalar_lea.vmem %s368_s27, 512  ;;  %p5548_p11 = scmp.lt.s32.totalorder %s368_s27, %s368_s27 }
  0x65   : > { %p5541_p9 = scmp.ne.s32.totalorder %s368_s27, %s5540_s25  ;;  %p5549_p12 = scmp.lt.s32.totalorder %s5540_s25, %s5540_s25 }
  0x67   : > { %p5543_p4 = pnand %p5541_p9, %p5943_p8  ;;  %p5550_p1 = por %p5549_p12, %p5548_p11 }
  0x69   : > { %p5544_p10 = pneg %p5543_p4 }
  0x6b   : > { %p5551_p3 = pnand %p5550_p1, %p5544_p10 }
  0x6d   : > { %5554 = shalt.err (!%p5551_p3)
}
  0x6e   : > { %5314 = dma.hbm_to_vmem [thread:$0]  (!%p5927_p6), %s8439_s7, 512, %s368_s27, [#allocation15], %s5816_s24, %s5816_s24, %s5817_s26  }
  0x6f   : > { %s5555_s30 = scalar_lea.hbm %s8434_s2, 128 }
  0x70   : > { %p5556_p1 = scmp.ne.s32.totalorder %s8434_s2, %s5555_s30  ;;  %p5562_p0 = scmp.lt.u32.totalorder %s5555_s30, %s8434_s2 }
  0x72   : > { %p5558_p3 = pnand %p5556_p1, %p5943_p8 }
  0x74   : > { %p5559_p13 = pneg %p5558_p3 }
  0x76   : > { %p5564_p2 = pnand %p5562_p0, %p5559_p13 }
  0x78   : > { %5567 = shalt.err (!%p5564_p2)
}
  0x79   : > { %s5568_s18 = scalar_lea.vmem %s303_s29, 128  ;;  %p5576_p4 = scmp.lt.s32.totalorder %s303_s29, %s303_s29 }
  0x7a   : > { %p5569_p5 = scmp.ne.s32.totalorder %s303_s29, %s5568_s18  ;;  %p5577_p10 = scmp.lt.s32.totalorder %s5568_s18, %s5568_s18 }
  0x7c   : > { %p5571_p7 = pnand %p5569_p5, %p5943_p8  ;;  %p5578_p11 = por %p5577_p10, %p5576_p4 }
  0x7e   : > { %p5572_p9 = pneg %p5571_p7 }
  0x80   : > { %p5579_p12 = pnand %p5578_p11, %p5572_p9 }
  0x82   : > { %5582 = shalt.err (!%p5579_p12)
}
  0x83   : > { %5299 = dma.hbm_to_vmem [thread:$0]  (!%p5927_p6), %s8434_s2, 128, %s303_s29, [#allocation6], %s5816_s24, %s5816_s24, %s5817_s26  }
  0x84   : > { %s5820_s1 = smov [#allocation10]   ;;  %s5821_s20 = smov [#allocation13]  }
  0x85   : > { %s328_s10 = sshll.u32 %s5820_s1, 4  ;;  %s354_s28 = sshll.u32 %s5821_s20, 4  ;;  %s329_s10 = int_to_ptr.vmem [resolvable:$true] %s328_s10  ;;  %s355_s28 = int_to_ptr.vmem [resolvable:$true] %s354_s28 }
  0x86   : > { %s5583_s17 = scalar_lea.hbm %s8436_s4, 1152 }
  0x87   : > { %p5584_p1 = scmp.ne.s32.totalorder %s8436_s4, %s5583_s17  ;;  %p5590_p0 = scmp.lt.u32.totalorder %s5583_s17, %s8436_s4 }
  0x89   : > { %p5586_p3 = pnand %p5584_p1, %p5943_p8 }
  0x8b   : > { %p5587_p13 = pneg %p5586_p3 }
  0x8d   : > { %p5592_p2 = pnand %p5590_p0, %p5587_p13 }
  0x8f   : > { %5595 = shalt.err (!%p5592_p2)
}
  0x90   : > { %s5596_s29 = scalar_lea.vmem %s329_s10, 1152  ;;  %p5604_p4 = scmp.lt.s32.totalorder %s329_s10, %s329_s10 }
  0x91   : > { %p5597_p5 = scmp.ne.s32.totalorder %s329_s10, %s5596_s29  ;;  %p5605_p10 = scmp.lt.s32.totalorder %s5596_s29, %s5596_s29 }
  0x93   : > { %p5599_p7 = pnand %p5597_p5, %p5943_p8  ;;  %p5606_p11 = por %p5605_p10, %p5604_p4 }
  0x95   : > { %p5600_p9 = pneg %p5599_p7 }
  0x97   : > { %p5607_p12 = pnand %p5606_p11, %p5600_p9 }
  0x99   : > { %5610 = shalt.err (!%p5607_p12)
}
  0x9a   : > { %5305 = dma.hbm_to_vmem [thread:$0]  (!%p5927_p6), %s8436_s4, 1152, %s329_s10, [#allocation9], %s5816_s24, %s5816_s24, %s5817_s26  }
  0x9b   : > { %s5611_s12 = scalar_lea.hbm %s8438_s6, 128 }
  0x9c   : > { %p5612_p1 = scmp.ne.s32.totalorder %s8438_s6, %s5611_s12  ;;  %p5618_p0 = scmp.lt.u32.totalorder %s5611_s12, %s8438_s6 }
  0x9e   : > { %p5614_p3 = pnand %p5612_p1, %p5943_p8 }
  0xa0   : > { %p5615_p13 = pneg %p5614_p3 }
  0xa2   : > { %p5620_p2 = pnand %p5618_p0, %p5615_p13 }
  0xa4   : > { %5623 = shalt.err (!%p5620_p2)
}
  0xa5   : > { %s5624_s27 = scalar_lea.vmem %s355_s28, 128  ;;  %p5632_p4 = scmp.lt.s32.totalorder %s355_s28, %s355_s28 }
  0xa6   : > { %p5625_p5 = scmp.ne.s32.totalorder %s355_s28, %s5624_s27  ;;  %p5633_p10 = scmp.lt.s32.totalorder %s5624_s27, %s5624_s27 }
  0xa8   : > { %p5627_p7 = pnand %p5625_p5, %p5943_p8  ;;  %p5634_p11 = por %p5633_p10, %p5632_p4 }
  0xaa   : > { %p5628_p9 = pneg %p5627_p7 }
  0xac   : > { %p5635_p12 = pnand %p5634_p11, %p5628_p9 }
  0xae   : > { %5638 = shalt.err (!%p5635_p12)
}
  0xaf   : > { %5311 = dma.hbm_to_vmem [thread:$0]  (!%p5927_p6), %s8438_s6, 128, %s355_s28, [#allocation12], %s5816_s24, %s5816_s24, %s5817_s26  }
  0xb0   : > { %s5822_s25 = smov [#allocation16]   ;;  %s5823_s20 = smov [#allocation17]  }
  0xb1   : > { %s380_s1 = sshll.u32 %s5822_s25, 4  ;;  %s393_s30 = sshll.u32 %s5823_s20, 4  ;;  %s381_s1 = int_to_ptr.vmem [resolvable:$true] %s380_s1  ;;  %s394_s30 = int_to_ptr.vmem [resolvable:$true] %s393_s30 }
  0xb2   : > { %s5639_s21 = scalar_lea.hbm %s8440_s8, 64 }
  0xb3   : > { %p5640_p1 = scmp.ne.s32.totalorder %s8440_s8, %s5639_s21  ;;  %p5646_p0 = scmp.lt.u32.totalorder %s5639_s21, %s8440_s8 }
  0xb5   : > { %p5642_p3 = pnand %p5640_p1, %p5943_p8 }
  0xb7   : > { %p5643_p13 = pneg %p5642_p3 }
  0xb9   : > { %p5648_p2 = pnand %p5646_p0, %p5643_p13 }
  0xbb   : > { %5651 = shalt.err (!%p5648_p2)
}
  0xbc   : > { %s5652_s28 = scalar_lea.vmem %s381_s1, 64  ;;  %p5660_p4 = scmp.lt.s32.totalorder %s381_s1, %s381_s1 }
  0xbd   : > { %p5653_p5 = scmp.ne.s32.totalorder %s381_s1, %s5652_s28  ;;  %p5661_p10 = scmp.lt.s32.totalorder %s5652_s28, %s5652_s28 }
  0xbf   : > { %p5655_p7 = pnand %p5653_p5, %p5943_p8  ;;  %p5662_p11 = por %p5661_p10, %p5660_p4 }
  0xc1   : > { %p5656_p9 = pneg %p5655_p7 }
  0xc3   : > { %p5663_p12 = pnand %p5662_p11, %p5656_p9 }
  0xc5   : > { %5666 = shalt.err (!%p5663_p12)
}
  0xc6   : > { %5317 = dma.hbm_to_vmem [thread:$0]  (!%p5927_p6), %s8440_s8, 64, %s381_s1, [#allocation15], %s5816_s24, %s5816_s24, %s5817_s26  }
  0xc7   : > { %s5667_s17 = scalar_lea.hbm %s8441_s9, 64 }
  0xc8   : > { %p5668_p1 = scmp.ne.s32.totalorder %s8441_s9, %s5667_s17  ;;  %p5674_p0 = scmp.lt.u32.totalorder %s5667_s17, %s8441_s9 }
  0xca   : > { %p5670_p3 = pnand %p5668_p1, %p5943_p8 }
  0xcc   : > { %p5671_p13 = pneg %p5670_p3 }
  0xce   : > { %p5676_p2 = pnand %p5674_p0, %p5671_p13 }
  0xd0   : > { %5679 = shalt.err (!%p5676_p2)
}
  0xd1   : > { %s5680_s10 = scalar_lea.vmem %s394_s30, 64  ;;  %p5688_p4 = scmp.lt.s32.totalorder %s394_s30, %s394_s30 }
  0xd2   : > { %p5681_p5 = scmp.ne.s32.totalorder %s394_s30, %s5680_s10  ;;  %p5689_p10 = scmp.lt.s32.totalorder %s5680_s10, %s5680_s10 }
  0xd4   : > { %p5683_p7 = pnand %p5681_p5, %p5943_p8  ;;  %p5690_p11 = por %p5689_p10, %p5688_p4 }
  0xd6   : > { %p5684_p9 = pneg %p5683_p7 }
  0xd8   : > { %p5691_p12 = pnand %p5690_p11, %p5684_p9 }
  0xda   : > { %5694 = shalt.err (!%p5691_p12)
}
  0xdb   : > { %5320 = dma.hbm_to_vmem [thread:$0]  (!%p5927_p6), %s8441_s9, 64, %s394_s30, [#allocation18], %s5816_s24, %s5816_s24, %s5817_s26  }
  0xdc   : > { %s5057_s23 = sadd.s32 4294967294, %s5811_s16   ;;  %s6147_s11 = sadd.s32 1, %s5811_s16  }
  0xdd   : > { %s38_s29 = sadd.s32 1, %s5807_s15  ;;  %s35_s25 = ssub.s32 %s5811_s16, %s6147_s11 }
  0xde   : > { %p45_p8 = scmp.ne.s32.totalorder %s5807_s15, %s5803_s14  ;;  %p36_p1 = scmp.eq.s32.totalorder %s35_s25, 0 }
  0xdf   : > { %p46_p3 = scmp.eq.s32.totalorder %s5811_s16, 0  ;;  %p51_p13 = scmp.ne.s32.totalorder %s5803_s14, %s5799_s13 }
  0xe0   : > { %p264_p0 = scmp.eq.s32.totalorder %s5911_s19, 1  ;;  %p8524_p5 = scmp.eq.s32.totalorder %s5911_s19, 0 }
  0xe1   : > { %s6159_s20 = scalar_select %p36_p1, %s5807_s15, %s38_s29  }
  0xe2   : > { %p47_p2 = por %p46_p3, %p45_p8  ;;  %p6163_p7 = por %p8524_p5, %p51_p13 }
  0xe3   : > { %p6167_p6 = por %p264_p0, %p45_p8  ;;  %p270_p9 = scmp.eq.s32.totalorder %s5057_s23, 1 }
  0xe4   : > { %p5338_p4 = scmp.lt.s32.totalorder %s5811_s16, 2  ;;  %s407_s26 = sand.u32 1, %s5807_s15  }
  0xe5   : > { %s8526_s24 = scalar_select %p6167_p6, 1, 0 }
  0xe6   : > { %p6173_p10 = por %p270_p9, %p51_p13  ;;  %s5069_s17 = sshll.u32 %s407_s26, 6 }
  0xe7   : > { %s5251_s21 = sshll.u32 %s5811_s16, 10  ;;  %s411_s10 = scalar_lea.vmem [#allocation2], %s5069_s17 }
  0xe8   : > { %s8527_s30 = scalar_select %p6173_p10, 1, 0 }
  0xe9   : > { %s6181_s27 = scalar_lea.hbm %s8432_s0, %s5251_s21  ;;  %s418_s1 = sshll.u32 %s411_s10, 4  ;;  %s6187_s1 = int_to_ptr.vmem [resolvable:$true] %s418_s1 }
  0xea   : > { %p6183_p11 = pnand %p5338_p4, %p47_p2  ;;  %s6189_s23 = scalar_lea.sflag [#allocation3], %s407_s26 }
  0xeb   : > { %s5695_s29 = scalar_lea.hbm %s6181_s27, 1024  ;;  %s5700_s21 = scalar_lea.hbm %s8432_s0, 2048 }
  0xec   : > { %p5696_p12 = scmp.ne.s32.totalorder %s6181_s27, %s5695_s29  ;;  %p5697_p8 = pneg %p6183_p11 }
  0xed   : > { %p5701_p13 = scmp.lt.u32.totalorder %s6181_s27, %s8432_s0  ;;  %p5702_p0 = scmp.lt.u32.totalorder %s5700_s21, %s5695_s29 }
  0xee   : > { %p5698_p1 = pnand %p5697_p8, %p5696_p12  ;;  %p5704_p5 = scmp.lt.u32.totalorder %s5695_s29, %s6181_s27 }
  0xef   : > { %p5703_p2 = por %p5702_p0, %p5701_p13 }
  0xf0   : > { %p5699_p3 = pneg %p5698_p1 }
  0xf1   : > { %p5705_p9 = por %p5704_p5, %p5703_p2 }
  0xf3   : > { %p5706_p4 = pnand %p5705_p9, %p5699_p3 }
  0xf5   : > { %5709 = shalt.err (!%p5706_p4)
}
  0xf6   : > { %s5710_s26 = scalar_lea.vmem %s6187_s1, 1024  ;;  %s5824_s10 = smov [#allocation2]  }
  0xf7   : > { %p5711_p12 = scmp.ne.s32.totalorder %s6187_s1, %s5710_s26  ;;  %s5715_s25 = sshll.u32 %s5824_s10, 4  ;;  %s5716_s25 = int_to_ptr.vmem [resolvable:$false] %s5715_s25 }
  0xf8   : > { %s5717_s17 = scalar_lea.vmem %s5716_s25, 2048  ;;  %p5718_p6 = scmp.lt.s32.totalorder %s6187_s1, %s5716_s25 }
  0xf9   : > { %p5713_p1 = pnand %p5711_p12, %p5697_p8  ;;  %p5719_p13 = scmp.lt.s32.totalorder %s5717_s17, %s5710_s26 }
  0xfb   : > { %p5714_p10 = pneg %p5713_p1  ;;  %p5720_p0 = por %p5719_p13, %p5718_p6 }
  0xfd   : > { %p5721_p2 = pnand %p5720_p0, %p5714_p10 }
  0xff   : > { %5724 = shalt.err (!%p5721_p2)
}
 0x100   : > { %s5825_s29 = smov 128   ;;  %s5826_s21 = smov 8  }
 0x101   : > { %5324 = dma.hbm_to_vmem [thread:$0]  (!%p6183_p11), %s6181_s27, 1024, %s6187_s1, %s6189_s23, %s5825_s29, %s5825_s29, %s5826_s21  }
 0x102   : > { %s8529_s22 = sld [smem:[#allocation27_spill]] }
 0x108   : > { %p8530_p8 = scmp.ne.s32.totalorder %s8529_s22, 0 }
 0x10a   : > { %430 = sbr.rel (%p8530_p8) target bundleno = 2191 (0x88f), region = 60 }
 0x111   : > { %s6220_s18 = sand.u32 1, %s5803_s14  }
 0x112   : > { %s5073_s26 = sshll.u32 %s6220_s18, 6  ;;  %s433_s10 = scalar_lea.sflag [#allocation3], %s6220_s18 }
 0x113   : > { %s6226_s25 = scalar_lea.vmem [#allocation2], %s5073_s26 }
 0x114   : > { %5770 = dma.done.wait (%p6163_p7), %s433_s10, 1024  }
 0x115   : > { %5772 = vsyncadd (%p6163_p7), %s433_s10, 4294966272  ;;  %p8531_p6 = scmp.eq.s32.totalorder %s5911_s19, 0 }
 0x117   : > { %5774 = dma.done.wait (%p8531_p6), [#allocation6], 640   ;;  %p8532_p10 = pmov %p8531_p6 }
 0x118   : > { %p8533_p11 = pmov %p8531_p6 }
 0x119   : > { %5776 = vsyncadd (%p8532_p10), [#allocation6], 4294966656 }
 0x11a   : > { %5778 = dma.done.wait (%p8533_p11), [#allocation9], 1280   ;;  %p8534_p3 = pmov %p8531_p6 }
 0x11c   : > { %5780 = vsyncadd (%p8534_p3), [#allocation9], 4294966016  ;;  %p8535_p5 = pmov %p8534_p3 }
 0x11d   : > { %p8536_p9 = pmov %p8534_p3 }
 0x11e   : > { %5782 = dma.done.wait (%p8535_p5), [#allocation12], 256  }
 0x11f   : > { %5784 = vsyncadd (%p8536_p9), [#allocation12], 4294967040  ;;  %p8537_p7 = pmov %p8534_p3 }
 0x120   : > { %p8538_p4 = pmov %p8534_p3 }
 0x121   : > { %5786 = dma.done.wait (%p8537_p7), [#allocation15], 576  }
 0x122   : > { %5788 = vsyncadd (%p8538_p4), [#allocation15], 4294966720  ;;  %p8539_p12 = pmov %p8534_p3 }
 0x123   : > { %p8540_p1 = pmov %p8534_p3 }
 0x124   : > { %5790 = dma.done.wait (%p8539_p12), [#allocation18], 64  }
 0x125   : > { %5792 = vsyncadd (%p8540_p1), [#allocation18], 4294967232  ;;  %v5827_v0 = vmov 0   ;;  %v5086_v1 = vld [vmem:[#allocation5 + $0x2] ss:$0 sm:$0xff]  ;;  %v6273_v53 = vld [vmem:[%s6226_s25 + $0x10] sm:$0xff] }
 0x126   : > { %5402 = vset.pattern.permute.xlu1 %v5827_v0  ;;  %5401 = vset.pattern.permute.xlu0 %v5827_v0  ;;  %v5084_v2 = vld [vmem:[#allocation5] ss:$0 sm:$0xff]  ;;  %v5087_v3 = vld [vmem:[#allocation5 + $0x3] ss:$0 sm:$0xff]  ;;  %v5085_v4 = vld [vmem:[#allocation5 + $0x1] ss:$0 sm:$0xff] }
 0x127   : > { %568 = vperm.xlu1 %5402, %v5086_v1   ;;  %560 = vperm.xlu0 %5401, %v5084_v2   ;;  %v5089_v5 = vld [vmem:[#allocation5 + $0x5] ss:$0 sm:$0xff]  ;;  %v5088_v6 = vld [vmem:[#allocation5 + $0x4] ss:$0 sm:$0xff]  ;;  %v5091_v7 = vld [vmem:[#allocation5 + $0x7] ss:$0 sm:$0xff] }
 0x128   : > { %v5090_v8 = vld [vmem:[#allocation5 + $0x6] ss:$0 sm:$0xff]  ;;  %v5095_v9 = vld [vmem:[#allocation5 + $0x9] ss:$0 sm:$0xff]  ;;  %v5094_v10 = vld [vmem:[#allocation5 + $0x8] ss:$0 sm:$0xff] }
 0x129   : > { %v5097_v11 = vld [vmem:[#allocation5 + $0xb] ss:$0 sm:$0xff]  ;;  %v5096_v12 = vld [vmem:[#allocation5 + $0xa] ss:$0 sm:$0xff]  ;;  %v5099_v13 = vld [vmem:[#allocation5 + $0xd] ss:$0 sm:$0xff] }
 0x12a   : > { %v5098_v14 = vld [vmem:[#allocation5 + $0xc] ss:$0 sm:$0xff]  ;;  %v5101_v15 = vld [vmem:[#allocation5 + $0xf] ss:$0 sm:$0xff]  ;;  %v5100_v16 = vld [vmem:[#allocation5 + $0xe] ss:$0 sm:$0xff] }
 0x12b   : > { %572 = vperm.xlu1 %5402, %v5087_v3   ;;  %564 = vperm.xlu0 %5401, %v5085_v4   ;;  %v5105_v17 = vld [vmem:[#allocation5 + $0x11] ss:$0 sm:$0xff]  ;;  %v5104_v18 = vld [vmem:[#allocation5 + $0x10] ss:$0 sm:$0xff]  ;;  %v5107_v19 = vld [vmem:[#allocation5 + $0x13] ss:$0 sm:$0xff] }
 0x12c   : > { %v5106_v20 = vld [vmem:[#allocation5 + $0x12] ss:$0 sm:$0xff]  ;;  %v5109_v21 = vld [vmem:[#allocation5 + $0x15] ss:$0 sm:$0xff]  ;;  %v5108_v22 = vld [vmem:[#allocation5 + $0x14] ss:$0 sm:$0xff] }
 0x12d   : > { %v5111_v23 = vld [vmem:[#allocation5 + $0x17] ss:$0 sm:$0xff]  ;;  %v5110_v24 = vld [vmem:[#allocation5 + $0x16] ss:$0 sm:$0xff]  ;;  %v5115_v25 = vld [vmem:[#allocation5 + $0x19] ss:$0 sm:$0xff] }
 0x12e   : > { %v5114_v26 = vld [vmem:[#allocation5 + $0x18] ss:$0 sm:$0xff]  ;;  %v5117_v27 = vld [vmem:[#allocation5 + $0x1b] ss:$0 sm:$0xff]  ;;  %v5116_v28 = vld [vmem:[#allocation5 + $0x1a] ss:$0 sm:$0xff] }
 0x12f   : > { %580 = vperm.xlu1 %5402, %v5089_v5   ;;  %576 = vperm.xlu0 %5401, %v5088_v6   ;;  %v5119_v29 = vld [vmem:[#allocation5 + $0x1d] ss:$0 sm:$0xff]  ;;  %v5118_v30 = vld [vmem:[#allocation5 + $0x1c] ss:$0 sm:$0xff]  ;;  %v5121_v31 = vld [vmem:[#allocation5 + $0x1f] ss:$0 sm:$0xff] }
 0x130   : > { %v5120_v32 = vld [vmem:[#allocation5 + $0x1e] ss:$0 sm:$0xff]  ;;  %v6283_v57 = vld [vmem:[%s6226_s25] sm:$0xff]  ;;  %v6289_v59 = vld [vmem:[%s6226_s25 + $0x8] sm:$0xff]  ;;  %vm971_vm0 = vcmask 130048   ;;  %vm1508_vm1 = vcmask 1040384  }
 0x131   : > { %v6276_v54 = vld [vmem:[%s6226_s25 + $0x18] sm:$0xff]  ;;  %v6286_v58 = vld [vmem:[%s6226_s25 + $0x20] sm:$0xff]  ;;  %v6293_v61 = vld [vmem:[%s6226_s25 + $0x28] sm:$0xff]  ;;  %s5828_s12 = smov 127   ;;  %s5829_s27 = smov 1   ;;  %vm1813_vm2 = vcmask 7168  }
 0x132   : > { %s5830_s1 = smov 3   ;;  %vm1838_vm3 = vcmask 138240   ;;  %s5831_s28 = smov 126   ;;  %vm2442_vm4 = vcmask 1046528   ;;  %vm3110_vm5 = vcmask 1045504  }
 0x133   : > { %588 = vperm.xlu1 %5402, %v5091_v7   ;;  %584 = vperm.xlu0 %5401, %v5090_v8   ;;  %s8349_s23 = scalar_lea.vmem [#allocation19], %s5073_s26  ;;  %s5252_s17 = sshll.u32 %s5911_s19, 10 }
 0x134   : > { %s4898_s29 = sshll.u32 %s8349_s23, 4  ;;  %s8785_s26 = sld [smem:[#allocation108_spill]]  ;;  %s8384_s29 = int_to_ptr.vmem [resolvable:$true] %s4898_s29 }
 0x135   : > { %s4885_s19 = scalar_lea.sflag [#allocation4], %s6220_s18  ;;  %p8786_p0 = scmp.ne.s32.totalorder %s8526_s24, 0 }
 0x137   : > { %664 = vperm.xlu1 %5402, %v5095_v9   ;;  %660 = vperm.xlu0 %5401, %v5094_v10  }
 0x13a   : > { %s8382_s10 = scalar_lea.hbm %s8785_s26, %s5252_s17 }
 0x13b   : > { %672 = vperm.xlu1 %5402, %v5097_v11   ;;  %668 = vperm.xlu0 %5401, %v5096_v12  }
 0x13f   : > { %680 = vperm.xlu1 %5402, %v5099_v13   ;;  %676 = vperm.xlu0 %5401, %v5098_v14   ;;  %v6314_v13 = vld [vmem:[%s6226_s25 + $0x30] sm:$0xff]  ;;  %v6317_v14 = vld [vmem:[%s6226_s25 + $0x38] sm:$0xff] }
 0x143   : > { %688 = vperm.xlu1 %5402, %v5101_v15   ;;  %684 = vperm.xlu0 %5401, %v5100_v16  }
 0x147   : > { %780 = vperm.xlu1 %5402, %v5105_v17   ;;  %776 = vperm.xlu0 %5401, %v5104_v18  }
 0x14b   : > { %788 = vperm.xlu1 %5402, %v5107_v19   ;;  %784 = vperm.xlu0 %5401, %v5106_v20  }
 0x14f   : > { %796 = vperm.xlu1 %5402, %v5109_v21   ;;  %792 = vperm.xlu0 %5401, %v5108_v22  }
 0x153   : > { %804 = vperm.xlu1 %5402, %v5111_v23   ;;  %800 = vperm.xlu0 %5401, %v5110_v24  }
 0x157   : > { %896 = vperm.xlu1 %5402, %v5115_v25   ;;  %892 = vperm.xlu0 %5401, %v5114_v26  }
 0x15b   : > { %904 = vperm.xlu1 %5402, %v5117_v27   ;;  %900 = vperm.xlu0 %5401, %v5116_v28  }
 0x15f   : > { %912 = vperm.xlu1 %5402, %v5119_v29   ;;  %908 = vperm.xlu0 %5401, %v5118_v30  }
 0x163   : > { %920 = vperm.xlu1 %5402, %v5121_v31   ;;  %916 = vperm.xlu0 %5401, %v5120_v32  }
 0x1a6   : > { %v569_v33 = vpop.permute.xlu1 %568  ;;  %v561_v34 = vpop.permute.xlu0 %560 }
 0x1a7   : > { %v595_v63 = vmul.f32 %v569_v33, %v6283_v57  ;;  %v596_v0 = vmul.f32 %v569_v33, %v6289_v59  ;;  %v591_v1 = vmul.f32 %v561_v34, %v6283_v57  ;;  %v592_v5 = vmul.f32 %v561_v34, %v6289_v59 }
 0x1aa   : > { %v573_v35 = vpop.permute.xlu1 %572  ;;  %v565_v36 = vpop.permute.xlu0 %564 }
 0x1ab   : > { %v597_v6 = vmul.f32 %v573_v35, %v6283_v57  ;;  %v6307_v7 = vmul.f32 %v573_v35, %v6289_v59  ;;  %v593_v9 = vmul.f32 %v565_v36, %v6283_v57  ;;  %v594_v15 = vmul.f32 %v565_v36, %v6289_v59 }
 0x1ae   : > { %v581_v37 = vpop.permute.xlu1 %580  ;;  %v6252_v38 = vpop.permute.xlu0 %576 }
 0x1af   : > { %v6321_v16 = vmul.f32 %v581_v37, %v6283_v57  ;;  %v6325_v19 = vmul.f32 %v581_v37, %v6289_v59  ;;  %v599_v29 = vmul.f32 %v6252_v38, %v6283_v57 }
 0x1b2   : > { %v6254_v39 = vpop.permute.xlu1 %588  ;;  %v6256_v40 = vpop.permute.xlu0 %584 }
 0x1b6   : > { %v665_v41 = vpop.permute.xlu1 %664  ;;  %v661_v42 = vpop.permute.xlu0 %660 }
 0x1b7   : > { %v691_v60 = vmul.f32 %v6273_v53, %v661_v42  ;;  %v692_v62 = vmul.f32 %v6276_v54, %v661_v42  ;;  %v693_v10 = vmul.f32 %v6273_v53, %v665_v41  ;;  %v694_v11 = vmul.f32 %v6276_v54, %v665_v41 }
 0x1b9   : > { %v707_v12 = vadd.f32 %v691_v60, %v591_v1  ;;  %v708_v17 = vadd.f32 %v692_v62, %v592_v5  ;;  %v709_v30 = vadd.f32 %v693_v10, %v593_v9  ;;  %v710_v31 = vadd.f32 %v694_v11, %v594_v15 }
 0x1ba   : > { %v6258_v43 = vpop.permute.xlu1 %672  ;;  %v669_v44 = vpop.permute.xlu0 %668 }
 0x1bb   : > { %v695_v18 = vmul.f32 %v6273_v53, %v669_v44  ;;  %v697_v20 = vmul.f32 %v6273_v53, %v6258_v43  ;;  %v696_v41 = vmul.f32 %v6276_v54, %v669_v44  ;;  %v698_v9 = vmul.f32 %v6276_v54, %v6258_v43 }
 0x1bd   : > { %v711_v33 = vadd.f32 %v695_v18, %v595_v63  ;;  %v713_v37 = vadd.f32 %v697_v20, %v597_v6 }
 0x1be   : > { %v6260_v45 = vpop.permute.xlu1 %680  ;;  %v6262_v46 = vpop.permute.xlu0 %676 }
 0x1bf   : > { %v699_v1 = vmul.f32 %v6273_v53, %v6262_v46 }
 0x1c2   : > { %v6264_v47 = vpop.permute.xlu1 %688  ;;  %v6266_v48 = vpop.permute.xlu0 %684 }
 0x1c6   : > { %v781_v49 = vpop.permute.xlu1 %780  ;;  %v777_v50 = vpop.permute.xlu0 %776 }
 0x1c7   : > { %v807_v2 = vmul.f32 %v6286_v58, %v777_v50  ;;  %v808_v8 = vmul.f32 %v6293_v61, %v777_v50  ;;  %v809_v21 = vmul.f32 %v6286_v58, %v781_v49  ;;  %v810_v34 = vmul.f32 %v6293_v61, %v781_v49 }
 0x1c9   : > { %v823_v22 = vadd.f32 %v807_v2, %v707_v12  ;;  %v824_v25 = vadd.f32 %v808_v8, %v708_v17  ;;  %v825_v42 = vadd.f32 %v809_v21, %v709_v30  ;;  %v826_v10 = vadd.f32 %v810_v34, %v710_v31 }
 0x1ca   : > { %v6268_v51 = vpop.permute.xlu1 %788  ;;  %v6270_v52 = vpop.permute.xlu0 %784  ;;  %v712_v12 = vadd.f32 %v696_v41, %v596_v0  ;;  %v701_v21 = vmul.f32 %v6273_v53, %v6260_v45  ;;  %v700_v30 = vmul.f32 %v6276_v54, %v6262_v46 }
 0x1cb   : > { %v811_v26 = vmul.f32 %v6286_v58, %v6270_v52  ;;  %v813_v50 = vmul.f32 %v6286_v58, %v6268_v51  ;;  %v812_v17 = vmul.f32 %v6293_v61, %v6270_v52 }
 0x1cc   : > { %v717_v34 = vadd.f32 %v701_v21, %v6321_v16  ;;  %v603_v16 = vmul.f32 %v6256_v40, %v6283_v57 }
 0x1cd   : > { %v827_v2 = vadd.f32 %v811_v26, %v711_v33  ;;  %v829_v15 = vadd.f32 %v813_v50, %v713_v37  ;;  %v600_v26 = vmul.f32 %v6252_v38, %v6289_v59  ;;  %v828_v31 = vadd.f32 %v812_v17, %v712_v12 }
 0x1ce   : > { %v6278_v55 = vpop.permute.xlu1 %796  ;;  %v6280_v56 = vpop.permute.xlu0 %792  ;;  %v703_v38 = vmul.f32 %v6273_v53, %v6266_v48  ;;  %v702_v50 = vmul.f32 %v6276_v54, %v6260_v45 }
 0x1cf   : > { %v815_v18 = vmul.f32 %v6286_v58, %v6280_v56 }
 0x1d2   : > { %v6300_v3 = vpop.permute.xlu1 %804  ;;  %v6302_v4 = vpop.permute.xlu0 %800 }
 0x1d3   : > { %v821_v21 = vmul.f32 %v6286_v58, %v6300_v3 }
 0x1d6   : > { %v897_v23 = vpop.permute.xlu1 %896  ;;  %v893_v24 = vpop.permute.xlu0 %892 }
 0x1d7   : > { %v923_v27 = vmul.f32 %v6314_v13, %v893_v24  ;;  %v924_v28 = vmul.f32 %v6317_v14, %v893_v24  ;;  %v925_v32 = vmul.f32 %v6314_v13, %v897_v23  ;;  %v926_v63 = vmul.f32 %v6317_v14, %v897_v23 }
 0x1d9   : > { %v6338_v35 = vadd.f32 %v924_v28, %v824_v25  ;;  %v6340_v36 = vadd.f32 %v923_v27, %v823_v22  ;;  %v6354_v8 = vadd.f32 %v925_v32, %v825_v42  ;;  %v715_v22 = vadd.f32 %v699_v1, %v599_v29 }
 0x1da   : > { %v905_v60 = vpop.permute.xlu1 %904  ;;  %v901_v62 = vpop.permute.xlu0 %900  ;;  %v6367_v23 = vadd.f32 %v926_v63, %v826_v10  ;;  %v714_v27 = vadd.f32 %v698_v9, %v6307_v7  ;;  %v814_v28 = vmul.f32 %v6293_v61, %v6268_v51  ;;  %v817_v32 = vmul.f32 %v6286_v58, %v6278_v55 }
 0x1db   : > { %v927_v49 = vmul.f32 %v6314_v13, %v901_v62  ;;  %v929_v5 = vmul.f32 %v6314_v13, %v905_v60  ;;  %v975_v6 = vsel %vm971_vm0, %v6338_v35, 0.0  ;;  %v972_v44 = vsel %vm971_vm0, %v6340_v36, 0.0 }
 0x1dc   : > { %976 = vadd.xlane.f32.xlu1 %v975_v6  ;;  %973 = vadd.xlane.f32.xlu0 %v972_v44  ;;  %v928_v43 = vmul.f32 %v6317_v14, %v901_v62  ;;  %v978_v0 = vsel %vm971_vm0, %v6354_v8, 0.0  ;;  %v831_v33 = vadd.f32 %v815_v18, %v715_v22  ;;  %v930_v7 = vmul.f32 %v6317_v14, %v905_v60 }
 0x1dd   : > { %v6358_v11 = vadd.f32 %v927_v49, %v827_v2  ;;  %v6374_v25 = vadd.f32 %v929_v5, %v829_v15  ;;  %v981_v51 = vsel %vm971_vm0, %v6367_v23, 0.0  ;;  %v830_v62 = vadd.f32 %v814_v28, %v714_v27 }
 0x1de   : > { %v909_v20 = vpop.permute.xlu0 %908  ;;  %v913_v29 = vpop.permute.xlu1 %912  ;;  %v6394_v41 = vadd.f32 %v928_v43, %v828_v31  ;;  %v716_v1 = vadd.f32 %v700_v30, %v600_v26  ;;  %v833_v2 = vadd.f32 %v817_v32, %v717_v34  ;;  %v816_v63 = vmul.f32 %v6293_v61, %v6280_v56 }
 0x1df   : > { %v931_v24 = vmul.f32 %v6314_v13, %v909_v20  ;;  %v984_v52 = vsel %vm971_vm0, %v6358_v11, 0.0  ;;  %v933_v37 = vmul.f32 %v6314_v13, %v913_v29  ;;  %v990_v46 = vsel %vm971_vm0, %v6374_v25, 0.0 }
 0x1e0   : > { %979 = vadd.xlane.f32.xlu0 %v978_v0  ;;  %985 = vadd.xlane.f32.xlu1 %v984_v52  ;;  %v819_v49 = vmul.f32 %v6286_v58, %v6302_v4  ;;  %v705_v5 = vmul.f32 %v6273_v53, %v6264_v47  ;;  %v719_v6 = vadd.f32 %v703_v38, %v603_v16  ;;  %v987_v10 = vsel %vm971_vm0, %v6394_v41, 0.0 }
 0x1e1   : > { %v6396_v42 = vadd.f32 %v931_v24, %v831_v33  ;;  %v932_v44 = vmul.f32 %v6317_v14, %v909_v20  ;;  %v6409_v9 = vadd.f32 %v930_v7, %v830_v62  ;;  %v6416_v56 = vadd.f32 %v933_v37, %v833_v2 }
 0x1e2   : > { %v917_v60 = vpop.permute.xlu0 %916  ;;  %v605_v15 = vmul.f32 %v6254_v39, %v6283_v57  ;;  %v818_v53 = vmul.f32 %v6293_v61, %v6278_v55  ;;  %v921_v17 = vpop.permute.xlu1 %920  ;;  %v718_v18 = vadd.f32 %v702_v50, %v6325_v19  ;;  %v832_v20 = vadd.f32 %v816_v63, %v716_v1 }
 0x1e3   : > { %v935_v45 = vmul.f32 %v6314_v13, %v917_v60  ;;  %v996_v12 = vsel %vm971_vm0, %v6396_v42, 0.0  ;;  %v835_v22 = vadd.f32 %v819_v49, %v719_v6  ;;  %v704_v24 = vmul.f32 %v6276_v54, %v6266_v48 }
 0x1e4   : > { %982 = vadd.xlane.f32.xlu0 %v981_v51  ;;  %991 = vadd.xlane.f32.xlu1 %v990_v46  ;;  %v721_v43 = vadd.f32 %v705_v5, %v605_v15  ;;  %v934_v0 = vmul.f32 %v6317_v14, %v913_v29  ;;  %v993_v57 = vsel %vm971_vm0, %v6409_v9, 0.0  ;;  %v937_v55 = vmul.f32 %v6314_v13, %v921_v17 }
 0x1e5   : > { %v1002_v52 = vsel %vm971_vm0, %v6416_v56, 0.0  ;;  %v6433_v19 = vadd.f32 %v932_v44, %v832_v20  ;;  %v6435_v26 = vadd.f32 %v935_v45, %v835_v22  ;;  %v604_v58 = vmul.f32 %v6256_v40, %v6289_v59 }
 0x1e6   : > { %v834_v27 = vadd.f32 %v818_v53, %v718_v18  ;;  %v837_v48 = vadd.f32 %v821_v21, %v721_v43  ;;  %v820_v28 = vmul.f32 %v6293_v61, %v6302_v4  ;;  %v706_v13 = vmul.f32 %v6276_v54, %v6264_v47 }
 0x1e7   : > { %v720_v29 = vadd.f32 %v704_v24, %v604_v58  ;;  %v936_v31 = vmul.f32 %v6317_v14, %v917_v60  ;;  %v999_v32 = vsel %vm971_vm0, %v6433_v19, 0.0  ;;  %v1008_v40 = vsel %vm971_vm0, %v6435_v26, 0.0 }
 0x1e8   : > { %988 = vadd.xlane.f32.xlu0 %v987_v10  ;;  %997 = vadd.xlane.f32.xlu1 %v996_v12  ;;  %v6443_v30 = vadd.f32 %v934_v0, %v834_v27  ;;  %v6450_v33 = vadd.f32 %v937_v55, %v837_v48  ;;  %v606_v34 = vmul.f32 %v6254_v39, %v6289_v59 }
 0x1e9   : > { %v822_v47 = vmul.f32 %v6293_v61, %v6300_v3  ;;  %v836_v54 = vadd.f32 %v820_v28, %v720_v29  ;;  %v1076_v38 = vmul.f32 %v6340_v36, %v6340_v36  ;;  %v938_v7 = vmul.f32 %v6317_v14, %v921_v17  ;;  %v5123_v28 = vld [vmem:[#allocation8 + $0x1] ss:$0 sm:$0xff]  ;;  %v5127_v29 = vld [vmem:[#allocation8 + $0x5] ss:$0 sm:$0xff] }
 0x1ea   : > { %v722_v4 = vadd.f32 %v706_v13, %v606_v34  ;;  %v1005_v51 = vsel %vm971_vm0, %v6443_v30, 0.0  ;;  %v1014_v37 = vsel %vm971_vm0, %v6450_v33, 0.0  ;;  %v1078_v14 = vmul.f32 %v6354_v8, %v6354_v8  ;;  %v5125_v13 = vld [vmem:[#allocation8 + $0x3] ss:$0 sm:$0xff]  ;;  %v5124_v34 = vld [vmem:[#allocation8 + $0x2] ss:$0 sm:$0xff] }
 0x1eb   : > { %v6463_v46 = vadd.f32 %v936_v31, %v836_v54  ;;  %v1092_v61 = vsel %vm971_vm0, %v1076_v38, 0.0  ;;  %v1077_v62 = vmul.f32 %v6338_v35, %v6338_v35  ;;  %v1080_v60 = vmul.f32 %v6358_v11, %v6358_v11  ;;  %v5129_v31 = vld [vmem:[#allocation8 + $0x7] ss:$0 sm:$0xff]  ;;  %v5126_v54 = vld [vmem:[#allocation8 + $0x4] ss:$0 sm:$0xff] }
 0x1ec   : > { %994 = vadd.xlane.f32.xlu0 %v993_v57  ;;  %1003 = vadd.xlane.f32.xlu1 %v1002_v52  ;;  %v838_v39 = vadd.f32 %v822_v47, %v722_v4  ;;  %v1098_v50 = vsel %vm971_vm0, %v1078_v14, 0.0  ;;  %v1079_v63 = vmul.f32 %v6367_v23, %v6367_v23  ;;  %v1082_v49 = vmul.f32 %v6374_v25, %v6374_v25  ;;  %v5133_v47 = vld [vmem:[#allocation10 + $0x3] ss:$0 sm:$0xff]  ;;  %v5135_v4 = vld [vmem:[#allocation10 + $0x5] ss:$0 sm:$0xff] }
 0x1ed   : > { %v1011_v59 = vsel %vm971_vm0, %v6463_v46, 0.0  ;;  %v1095_v1 = vsel %vm971_vm0, %v1077_v62, 0.0  ;;  %v1104_v2 = vsel %vm971_vm0, %v1080_v60, 0.0  ;;  %v1081_v44 = vmul.f32 %v6394_v41, %v6394_v41  ;;  %v5128_v38 = vld [vmem:[#allocation8 + $0x6] ss:$0 sm:$0xff] }
 0x1ee   : > { %v6468_v3 = vadd.f32 %v938_v7, %v838_v39  ;;  %v1101_v5 = vsel %vm971_vm0, %v1079_v63, 0.0  ;;  %v1110_v6 = vsel %vm971_vm0, %v1082_v49, 0.0  ;;  %v1084_v45 = vmul.f32 %v6396_v42, %v6396_v42  ;;  %v5137_v7 = vld [vmem:[#allocation10 + $0x7] ss:$0 sm:$0xff]  ;;  %v5132_v39 = vld [vmem:[#allocation10 + $0x2] ss:$0 sm:$0xff] }
 0x1ef   : > { %v1107_v10 = vsel %vm971_vm0, %v1081_v44, 0.0  ;;  %v1083_v15 = vmul.f32 %v6409_v9, %v6409_v9  ;;  %v1086_v53 = vmul.f32 %v6416_v56, %v6416_v56  ;;  %v1085_v20 = vmul.f32 %v6433_v19, %v6433_v19  ;;  %v5143_v14 = vld [vmem:[#allocation10 + $0xd] ss:$0 sm:$0xff]  ;;  %v5138_v62 = vld [vmem:[#allocation10 + $0x8] ss:$0 sm:$0xff] }
 0x1f0   : > { %1000 = vadd.xlane.f32.xlu0 %v999_v32  ;;  %1009 = vadd.xlane.f32.xlu1 %v1008_v40  ;;  %v1017_v16 = vsel %vm971_vm0, %v6468_v3, 0.0  ;;  %v1116_v12 = vsel %vm971_vm0, %v1084_v45, 0.0  ;;  %v1088_v21 = vmul.f32 %v6435_v26, %v6435_v26  ;;  %v1087_v24 = vmul.f32 %v6443_v30, %v6443_v30  ;;  %v5122_v32 = vld [vmem:[#allocation8] ss:$0 sm:$0xff]  ;;  %v5131_v40 = vld [vmem:[#allocation10 + $0x1] ss:$0 sm:$0xff] }
 0x1f1   : > { %v1113_v17 = vsel %vm971_vm0, %v1083_v15, 0.0  ;;  %v1122_v18 = vsel %vm971_vm0, %v1086_v53, 0.0  ;;  %v1119_v22 = vsel %vm971_vm0, %v1085_v20, 0.0  ;;  %v1090_v0 = vmul.f32 %v6450_v33, %v6450_v33  ;;  %v5147_v60 = vld [vmem:[#allocation10 + $0x11] ss:$0 sm:$0xff] }
 0x1f2   : > { %v1128_v43 = vsel %vm971_vm0, %v1088_v21, 0.0  ;;  %v1125_v57 = vsel %vm971_vm0, %v1087_v24, 0.0  ;;  %v1089_v52 = vmul.f32 %v6463_v46, %v6463_v46  ;;  %v1091_v27 = vmul.f32 %v6468_v3, %v6468_v3  ;;  %v5142_v63 = vld [vmem:[#allocation10 + $0xc] ss:$0 sm:$0xff]  ;;  %v5151_v49 = vld [vmem:[#allocation10 + $0x15] ss:$0 sm:$0xff] }
 0x1f3   : > { %v1134_v55 = vsel %vm971_vm0, %v1090_v0, 0.0  ;;  %v5146_v44 = vld [vmem:[#allocation10 + $0x10] ss:$0 sm:$0xff]  ;;  %v5155_v45 = vld [vmem:[#allocation10 + $0x19] ss:$0 sm:$0xff] }
 0x1f4   : > { %1006 = vadd.xlane.f32.xlu0 %v1005_v51  ;;  %1015 = vadd.xlane.f32.xlu1 %v1014_v37  ;;  %v1131_v58 = vsel %vm971_vm0, %v1089_v52, 0.0  ;;  %v1137_v48 = vsel %vm971_vm0, %v1091_v27, 0.0  ;;  %v5130_v51 = vld [vmem:[#allocation10] ss:$0 sm:$0xff]  ;;  %v5139_v37 = vld [vmem:[#allocation10 + $0x9] ss:$0 sm:$0xff] }
 0x1f5   : > { %v5150_v15 = vld [vmem:[#allocation10 + $0x14] ss:$0 sm:$0xff]  ;;  %v5152_v20 = vld [vmem:[#allocation10 + $0x16] ss:$0 sm:$0xff]  ;;  %v5154_v24 = vld [vmem:[#allocation10 + $0x18] ss:$0 sm:$0xff] }
 0x1f6   : > { %v5156_v52 = vld [vmem:[#allocation10 + $0x1a] ss:$0 sm:$0xff] }
 0x1f8   : > { %1012 = vadd.xlane.f32.xlu0 %v1011_v59  ;;  %1093 = vadd.xlane.f32.xlu1 %v1092_v61  ;;  %v5141_v59 = vld [vmem:[#allocation10 + $0xb] ss:$0 sm:$0xff]  ;;  %v5134_v61 = vld [vmem:[#allocation10 + $0x4] ss:$0 sm:$0xff] }
 0x1fc   : > { %1018 = vadd.xlane.f32.xlu0 %v1017_v16  ;;  %1099 = vadd.xlane.f32.xlu1 %v1098_v50  ;;  %v5136_v16 = vld [vmem:[#allocation10 + $0x6] ss:$0 sm:$0xff]  ;;  %v5145_v50 = vld [vmem:[#allocation10 + $0xf] ss:$0 sm:$0xff] }
 0x200   : > { %1096 = vadd.xlane.f32.xlu0 %v1095_v1  ;;  %1105 = vadd.xlane.f32.xlu1 %v1104_v2  ;;  %v5140_v1 = vld [vmem:[#allocation10 + $0xa] ss:$0 sm:$0xff]  ;;  %v5149_v2 = vld [vmem:[#allocation10 + $0x13] ss:$0 sm:$0xff] }
 0x204   : > { %1102 = vadd.xlane.f32.xlu0 %v1101_v5  ;;  %1111 = vadd.xlane.f32.xlu1 %v1110_v6  ;;  %v5144_v5 = vld [vmem:[#allocation10 + $0xe] ss:$0 sm:$0xff]  ;;  %v5153_v6 = vld [vmem:[#allocation10 + $0x17] ss:$0 sm:$0xff] }
 0x208   : > { %1108 = vadd.xlane.f32.xlu0 %v1107_v10  ;;  %1117 = vadd.xlane.f32.xlu1 %v1116_v12  ;;  %v5148_v10 = vld [vmem:[#allocation10 + $0x12] ss:$0 sm:$0xff]  ;;  %v5157_v12 = vld [vmem:[#allocation10 + $0x1b] ss:$0 sm:$0xff] }
 0x20c   : > { %1114 = vadd.xlane.f32.xlu0 %v1113_v17  ;;  %1123 = vadd.xlane.f32.xlu1 %v1122_v18  ;;  %v5159_v18 = vld [vmem:[#allocation10 + $0x1d] ss:$0 sm:$0xff] }
 0x210   : > { %1120 = vadd.xlane.f32.xlu0 %v1119_v22  ;;  %1129 = vadd.xlane.f32.xlu1 %v1128_v43  ;;  %v5161_v43 = vld [vmem:[#allocation10 + $0x1f] ss:$0 sm:$0xff] }
 0x214   : > { %1126 = vadd.xlane.f32.xlu0 %v1125_v57  ;;  %1135 = vadd.xlane.f32.xlu1 %v1134_v55  ;;  %v5163_v55 = vld [vmem:[#allocation10 + $0x21] ss:$0 sm:$0xff] }
 0x218   : > { %1132 = vadd.xlane.f32.xlu0 %v1131_v58 }
 0x21c   : > { %1138 = vadd.xlane.f32.xlu0 %v1137_v48  ;;  %v5165_v48 = vld [vmem:[#allocation10 + $0x23] ss:$0 sm:$0xff] }
 0x225   : > { %1401 = vperm.xlu1 %5402, %v5123_v28   ;;  %v5158_v28 = vld [vmem:[#allocation10 + $0x1c] ss:$0 sm:$0xff] }
 0x229   : > { %1409 = vperm.xlu1 %5402, %v5125_v13  }
 0x22d   : > { %1417 = vperm.xlu1 %5402, %v5127_v29  }
 0x231   : > { %1425 = vperm.xlu1 %5402, %v5129_v31   ;;  %v5167_v31 = vld [vmem:[#allocation10 + $0x25] ss:$0 sm:$0xff] }
 0x232   : > { %1397 = vperm.xlu0 %5401, %v5122_v32  }
 0x235   : > { %1916 = vperm.xlu1 %5402, %v5131_v40   ;;  %v5160_v40 = vld [vmem:[#allocation10 + $0x1e] ss:$0 sm:$0xff] }
 0x236   : > { %1405 = vperm.xlu0 %5401, %v5124_v34  }
 0x239   : > { %1924 = vperm.xlu1 %5402, %v5133_v47  }
 0x23a   : > { %1413 = vperm.xlu0 %5401, %v5126_v54  }
 0x23d   : > { %1932 = vperm.xlu1 %5402, %v5135_v4   ;;  %v5169_v4 = vld [vmem:[#allocation10 + $0x27] ss:$0 sm:$0xff] }
 0x23e   : > { %1421 = vperm.xlu0 %5401, %v5128_v38  }
 0x241   : > { %1940 = vperm.xlu1 %5402, %v5137_v7   ;;  %v5162_v7 = vld [vmem:[#allocation10 + $0x20] ss:$0 sm:$0xff] }
 0x242   : > { %1912 = vperm.xlu0 %5401, %v5130_v51  }
 0x245   : > { %2013 = vperm.xlu1 %5402, %v5139_v37  }
 0x246   : > { %1920 = vperm.xlu0 %5401, %v5132_v39  }
 0x249   : > { %2021 = vperm.xlu1 %5402, %v5141_v59  }
 0x24a   : > { %1928 = vperm.xlu0 %5401, %v5134_v61   ;;  %v5171_v61 = vld [vmem:[#allocation10 + $0x29] ss:$0 sm:$0xff] }
 0x24d   : > { %2029 = vperm.xlu1 %5402, %v5143_v14  }
 0x24e   : > { %1936 = vperm.xlu0 %5401, %v5136_v16   ;;  %v5164_v16 = vld [vmem:[#allocation10 + $0x22] ss:$0 sm:$0xff] }
 0x251   : > { %2037 = vperm.xlu1 %5402, %v5145_v50  }
 0x252   : > { %2009 = vperm.xlu0 %5401, %v5138_v62  }
 0x255   : > { %2190 = vperm.xlu1 %5402, %v5147_v60  }
 0x256   : > { %2017 = vperm.xlu0 %5401, %v5140_v1  }
 0x259   : > { %2198 = vperm.xlu1 %5402, %v5149_v2  }
 0x25a   : > { %2025 = vperm.xlu0 %5401, %v5142_v63   ;;  %v5173_v63 = vld [vmem:[#allocation10 + $0x2b] ss:$0 sm:$0xff] }
 0x25d   : > { %2206 = vperm.xlu1 %5402, %v5151_v49  }
 0x25e   : > { %2033 = vperm.xlu0 %5401, %v5144_v5   ;;  %v5166_v5 = vld [vmem:[#allocation10 + $0x24] ss:$0 sm:$0xff] }
 0x261   : > { %2214 = vperm.xlu1 %5402, %v5153_v6  }
 0x262   : > { %2186 = vperm.xlu0 %5401, %v5146_v44  }
 0x265   : > { %2367 = vperm.xlu1 %5402, %v5155_v45  }
 0x266   : > { %2194 = vperm.xlu0 %5401, %v5148_v10  }
 0x269   : > { %v977_v53 = vpop.xlane.xlu1 %976  ;;  %2375 = vperm.xlu1 %5402, %v5157_v12   ;;  %v974_v17 = vpop.xlane.xlu0 %973 }
 0x26a   : > { %2202 = vperm.xlu0 %5401, %v5150_v15   ;;  %v1020_v32 = vadd.f32 %v977_v53, %v974_v17  ;;  %v5175_v15 = vld [vmem:[#allocation10 + $0x2d] ss:$0 sm:$0xff] }
 0x26c   : > { %v1021_v38 = vrot.slane %v1020_v32, 4 }
 0x26d   : > { %v986_v21 = vpop.xlane.xlu1 %985  ;;  %2383 = vperm.xlu1 %5402, %v5159_v18   ;;  %v980_v22 = vpop.xlane.xlu0 %979  ;;  %v5168_v18 = vld [vmem:[#allocation10 + $0x26] ss:$0 sm:$0xff] }
 0x26e   : > { %2210 = vperm.xlu0 %5401, %v5152_v20   ;;  %v1022_v14 = vadd.f32 %v1021_v38, %v1020_v32 }
 0x270   : > { %v1023_v49 = vrot.slane %v1022_v14, 2 }
 0x271   : > { %v992_v0 = vpop.xlane.xlu1 %991  ;;  %2391 = vperm.xlu1 %5402, %v5161_v43   ;;  %v983_v57 = vpop.xlane.xlu0 %982 }
 0x272   : > { %2363 = vperm.xlu0 %5401, %v5154_v24   ;;  %v1027_v34 = vadd.f32 %v983_v57, %v980_v22  ;;  %v1024_v53 = vadd.f32 %v1023_v49, %v1022_v14  ;;  %v5177_v57 = vld [vmem:[#allocation10 + $0x2f] ss:$0 sm:$0xff] }
 0x274   : > { %v1028_v51 = vrot.slane %v1027_v34, 4 }
 0x275   : > { %v998_v58 = vpop.xlane.xlu1 %997  ;;  %2569 = vperm.xlu1 %5402, %v5163_v55   ;;  %v989_v27 = vpop.xlane.xlu0 %988  ;;  %v1025_v55 = vrot.slane %v1024_v53, 1 }
 0x276   : > { %2371 = vperm.xlu0 %5401, %v5156_v52   ;;  %v1034_v37 = vadd.f32 %v989_v27, %v986_v21  ;;  %v1029_v50 = vadd.f32 %v1028_v51, %v1027_v34  ;;  %v5170_v27 = vld [vmem:[#allocation10 + $0x28] ss:$0 sm:$0xff] }
 0x277   : > { %v1026_v38 = vadd.f32 %v1025_v55, %v1024_v53 }
 0x278   : > { %v1035_v62 = vrot.slane %v1034_v37, 4  ;;  %v1030_v6 = vrot.slane %v1029_v50, 2 }
 0x279   : > { %v1004_v13 = vpop.xlane.xlu1 %1003  ;;  %2577 = vperm.xlu1 %5402, %v5165_v48   ;;  %v995_v29 = vpop.xlane.xlu0 %994 }
 0x27a   : > { %2379 = vperm.xlu0 %5401, %v5158_v28   ;;  %v1041_v60 = vadd.f32 %v995_v29, %v992_v0  ;;  %v1036_v44 = vadd.f32 %v1035_v62, %v1034_v37  ;;  %v1031_v20 = vadd.f32 %v1030_v6, %v1029_v50  ;;  %v5172_v37 = vld [vmem:[#allocation10 + $0x2a] ss:$0 sm:$0xff]  ;;  %v5181_v6 = vld [vmem:[#allocation10 + $0x33] ss:$0 sm:$0xff] }
 0x27c   : > { %v1042_v45 = vrot.slane %v1041_v60, 4  ;;  %v1037_v21 = vrot.slane %v1036_v44, 2  ;;  %v1032_v28 = vrot.slane %v1031_v20, 1 }
 0x27d   : > { %2585 = vperm.xlu1 %5402, %v5167_v31   ;;  %v1010_v47 = vpop.xlane.xlu1 %1009  ;;  %v1001_v54 = vpop.xlane.xlu0 %1000 }
 0x27e   : > { %2387 = vperm.xlu0 %5401, %v5160_v40   ;;  %v1048_v17 = vadd.f32 %v1001_v54, %v998_v58  ;;  %v1043_v22 = vadd.f32 %v1042_v45, %v1041_v60  ;;  %v1038_v29 = vadd.f32 %v1037_v21, %v1036_v44  ;;  %v1033_v50 = vadd.f32 %v1032_v28, %v1031_v20 }
 0x27f   : > { %v6519_v44 = vmul.f32 0.00390625, %v1026_v38 }
 0x280   : > { %v1049_v52 = vrot.slane %v1048_v17, 4  ;;  %v1044_v31 = vrot.slane %v1043_v22, 2  ;;  %v1039_v62 = vrot.slane %v1038_v29, 1  ;;  %v6524_v20 = vmul.f32 0.00390625, %v1033_v50 }
 0x281   : > { %2593 = vperm.xlu1 %5402, %v5169_v4   ;;  %v6517_v39 = vpop.xlane.xlu1 %1015  ;;  %v1007_v59 = vpop.xlane.xlu0 %1006  ;;  %v5179_v4 = vld [vmem:[#allocation10 + $0x31] ss:$0 sm:$0xff] }
 0x282   : > { %2565 = vperm.xlu0 %5401, %v5162_v7   ;;  %v1055_v32 = vadd.f32 %v1007_v59, %v1004_v13  ;;  %v1050_v7 = vadd.f32 %v1049_v52, %v1048_v17  ;;  %v1045_v60 = vadd.f32 %v1044_v31, %v1043_v22  ;;  %v1040_v21 = vadd.f32 %v1039_v62, %v1038_v29  ;;  %v5185_v62 = vld [vmem:[#allocation10 + $0x37] ss:$0 sm:$0xff] }
 0x283   : > { %v1212_v31 = vmul.f32 %v6519_v44, %v6519_v44 }
 0x284   : > { %v1051_v45 = vrot.slane %v1050_v7, 2  ;;  %v1046_v22 = vrot.slane %v1045_v60, 1 }
 0x285   : > { %2802 = vperm.xlu1 %5402, %v5171_v61   ;;  %v1094_v1 = vpop.xlane.xlu1 %1093  ;;  %v1013_v2 = vpop.xlane.xlu0 %1012 }
 0x286   : > { %2573 = vperm.xlu0 %5401, %v5164_v16   ;;  %v1062_v51 = vadd.f32 %v1013_v2, %v1010_v47  ;;  %v1276_v16 = vlaneseq  ;;  %v1047_v38 = vadd.f32 %v1046_v22, %v1045_v60 }
 0x288   : > { %v1063_v47 = vrot.slane %v1062_v51, 4 }
 0x289   : > { %2810 = vperm.xlu1 %5402, %v5173_v63   ;;  %v1100_v10 = vpop.xlane.xlu1 %1099  ;;  %v1019_v12 = vpop.xlane.xlu0 %1018 }
 0x28a   : > { %2581 = vperm.xlu0 %5401, %v5166_v5   ;;  %v1069_v2 = vadd.f32 %v1019_v12, %v6517_v39  ;;  %v5183_v39 = vld [vmem:[#allocation10 + $0x35] ss:$0 sm:$0xff]  ;;  %v1052_v12 = vadd.f32 %v1051_v45, %v1050_v7 }
 0x28c   : > { %v1070_v28 = vrot.slane %v1069_v2, 4 }
 0x28d   : > { %2818 = vperm.xlu1 %5402, %v5175_v15   ;;  %v1106_v43 = vpop.xlane.xlu1 %1105  ;;  %v1097_v24 = vpop.xlane.xlu0 %1096 }
 0x28e   : > { %v1140_v0 = vadd.f32 %v1097_v24, %v1094_v1  ;;  %2589 = vperm.xlu0 %5401, %v5168_v18   ;;  %v1056_v1 = vrot.slane %v1055_v32, 4  ;;  %v6522_v18 = vshrl.u32 %v1276_v16, 7 }
 0x290   : > { %v1141_v48 = vrot.slane %v1140_v0, 4  ;;  %v1057_v24 = vadd.f32 %v1056_v1, %v1055_v32  ;;  %v1053_v1 = vrot.slane %v1052_v12, 1 }
 0x291   : > { %2826 = vperm.xlu1 %5402, %v5177_v57   ;;  %v1112_v58 = vpop.xlane.xlu1 %1111  ;;  %v1103_v40 = vpop.xlane.xlu0 %1102 }
 0x292   : > { %v1142_v34 = vadd.f32 %v1141_v48, %v1140_v0  ;;  %v1147_v54 = vadd.f32 %v1103_v40, %v1100_v10  ;;  %2798 = vperm.xlu0 %5401, %v5170_v27   ;;  %v5174_v10 = vld [vmem:[#allocation10 + $0x2c] ss:$0 sm:$0xff]  ;;  %v1064_v48 = vadd.f32 %v1063_v47, %v1062_v51  ;;  %v5176_v40 = vld [vmem:[#allocation10 + $0x2e] ss:$0 sm:$0xff] }
 0x294   : > { %v1143_v61 = vrot.slane %v1142_v34, 2  ;;  %v1148_v14 = vrot.slane %v1147_v54, 4 }
 0x295   : > { %3035 = vperm.xlu1 %5402, %v5179_v4   ;;  %v1118_v13 = vpop.xlane.xlu1 %1117  ;;  %v1109_v59 = vpop.xlane.xlu0 %1108  ;;  %v6528_v4 = vmul.f32 0.00390625, %v1040_v21 }
 0x296   : > { %v1144_v63 = vadd.f32 %v1143_v61, %v1142_v34  ;;  %v1149_v49 = vadd.f32 %v1148_v14, %v1147_v54  ;;  %v1154_v5 = vadd.f32 %v1109_v59, %v1106_v43  ;;  %2806 = vperm.xlu0 %5401, %v5172_v37   ;;  %v1058_v37 = vrot.slane %v1057_v24, 2 }
 0x297   : > { %v1065_v59 = vrot.slane %v1064_v48, 2 }
 0x298   : > { %v1145_v15 = vrot.slane %v1144_v63, 1  ;;  %v1150_v53 = vrot.slane %v1149_v49, 2  ;;  %v1155_v17 = vrot.slane %v1154_v5, 4 }
 0x299   : > { %3043 = vperm.xlu1 %5402, %v5181_v6   ;;  %v1124_v43 = vpop.xlane.xlu1 %1123  ;;  %v1115_v0 = vpop.xlane.xlu0 %1114 }
 0x29a   : > { %v1146_v57 = vadd.f32 %v1145_v15, %v1144_v63  ;;  %v1151_v55 = vadd.f32 %v1150_v53, %v1149_v49  ;;  %v1156_v52 = vadd.f32 %v1155_v17, %v1154_v5  ;;  %v1161_v27 = vadd.f32 %v1115_v0, %v1112_v58  ;;  %2814 = vperm.xlu0 %5401, %v5174_v10   ;;  %v5178_v5 = vld [vmem:[#allocation10 + $0x30] ss:$0 sm:$0xff] }
 0x29b   : > { %v1213_v58 = vmul.f32 %v6524_v20, %v6524_v20  ;;  %v1071_v63 = vadd.f32 %v1070_v28, %v1069_v2  ;;  %v6532_v10 = vmul.f32 0.00390625, %v1047_v38  ;;  %v1059_v15 = vadd.f32 %v1058_v37, %v1057_v24 }
 0x29c   : > { %v1204_v34 = vmul.f32 0.00390625, %v1146_v57  ;;  %v1152_v29 = vrot.slane %v1151_v55, 1  ;;  %v1157_v54 = vrot.slane %v1156_v52, 2  ;;  %v1162_v32 = vrot.slane %v1161_v27, 4 }
 0x29d   : > { %3051 = vperm.xlu1 %5402, %v5183_v39   ;;  %v1130_v61 = vpop.xlane.xlu1 %1129  ;;  %v1121_v7 = vpop.xlane.xlu0 %1120  ;;  %v1214_v53 = vmul.f32 %v6528_v4, %v6528_v4  ;;  %v5180_v39 = vld [vmem:[#allocation10 + $0x32] ss:$0 sm:$0xff]  ;;  %v1072_v28 = vrot.slane %v1071_v63, 2 }
 0x29e   : > { %v1220_v51 = vsub.f32 %v1204_v34, %v1212_v31  ;;  %v1153_v14 = vadd.f32 %v1152_v29, %v1151_v55  ;;  %v1158_v16 = vadd.f32 %v1157_v54, %v1156_v52  ;;  %v1163_v50 = vadd.f32 %v1162_v32, %v1161_v27  ;;  %2822 = vperm.xlu0 %5401, %v5176_v40  }
 0x29f   : > { %v1168_v49 = vadd.f32 %v1121_v7, %v1118_v13  ;;  %v1054_v13 = vadd.f32 %v1053_v1, %v1052_v12  ;;  %v1066_v55 = vadd.f32 %v1065_v59, %v1064_v48  ;;  %v1060_v34 = vrot.slane %v1059_v15, 1 }
 0x2a0   : > { %v1228_v6 = vadd.f32 1e-05, %v1220_v51  ;;  %v1205_v60 = vmul.f32 0.00390625, %v1153_v14  ;;  %v1159_v45 = vrot.slane %v1158_v16, 1  ;;  %v1164_v47 = vrot.slane %v1163_v50, 2 }
 0x2a1   : > { %v1169_v17 = vrot.slane %v1168_v49, 4  ;;  %3059 = vperm.xlu1 %5402, %v5185_v62   ;;  %v1136_v21 = vpop.xlane.xlu1 %1135  ;;  %v1127_v22 = vpop.xlane.xlu0 %1126  ;;  %v1215_v29 = vmul.f32 %v6532_v10, %v6532_v10  ;;  %v1067_v7 = vrot.slane %v1066_v55, 1 }
 0x2a2   : > { %5403 = vrsqrt.f32 %v1228_v6  ;;  %v1221_v0 = vsub.f32 %v1205_v60, %v1213_v58  ;;  %v1160_v57 = vadd.f32 %v1159_v45, %v1158_v16  ;;  %v1165_v2 = vadd.f32 %v1164_v47, %v1163_v50  ;;  %3031 = vperm.xlu0 %5401, %v5178_v5   ;;  %v5182_v16 = vld [vmem:[#allocation10 + $0x34] ss:$0 sm:$0xff] }
 0x2a3   : > { %v1170_v52 = vadd.f32 %v1169_v17, %v1168_v49  ;;  %v1175_v27 = vadd.f32 %v1127_v22, %v1124_v43  ;;  %v6540_v43 = vmul.f32 0.00390625, %v1054_v13  ;;  %v1073_v50 = vadd.f32 %v1072_v28, %v1071_v63  ;;  %v955_v22 = vld [vmem:[#allocation7] sm:$0x1] }
 0x2a4   : > { %v1229_v31 = vadd.f32 1e-05, %v1221_v0  ;;  %v1206_v24 = vmul.f32 0.00390625, %v1160_v57  ;;  %v1166_v40 = vrot.slane %v1165_v2, 1  ;;  %v1061_v49 = vadd.f32 %v1060_v34, %v1059_v15 }
 0x2a5   : > { %v1171_v54 = vrot.slane %v1170_v52, 2  ;;  %v1176_v32 = vrot.slane %v1175_v27, 4  ;;  %v6538_v38 = vpop.permute.xlu1 %1401  ;;  %v1133_v37 = vpop.xlane.xlu0 %1132  ;;  %v6545_v47 = vsub.s32 0, %v6522_v18  ;;  %v1068_v0 = vadd.f32 %v1067_v7, %v1066_v55 }
 0x2a6   : > { %5405 = vrsqrt.f32 %v1229_v31  ;;  %v1222_v58 = vsub.f32 %v1206_v24, %v1214_v53  ;;  %v1167_v12 = vadd.f32 %v1166_v40, %v1165_v2  ;;  %v1182_v48 = vadd.f32 %v1133_v37, %v1130_v61  ;;  %3039 = vperm.xlu0 %5401, %v5180_v39   ;;  %v5184_v2 = vld [vmem:[#allocation10 + $0x36] ss:$0 sm:$0xff] }
 0x2a7   : > { %v1172_v51 = vadd.f32 %v1171_v54, %v1170_v52  ;;  %v1177_v14 = vadd.f32 %v1176_v32, %v1175_v27  ;;  %8541 = vst [vmem:[#allocation28_spill] sm:$0xff] %v6545_v47  ;;  %v1216_v63 = vmul.f32 %v6540_v43, %v6540_v43  ;;  %v1074_v52 = vrot.slane %v1073_v50, 1 }
 0x2a8   : > { %v1230_v62 = vadd.f32 1e-05, %v1222_v58  ;;  %v1207_v1 = vmul.f32 0.00390625, %v1167_v12  ;;  %v1183_v59 = vrot.slane %v1182_v48, 4  ;;  %v6549_v18 = vmul.f32 0.00390625, %v1061_v49 }
 0x2a9   : > { %v1173_v5 = vrot.slane %v1172_v51, 1  ;;  %v1178_v6 = vrot.slane %v1177_v14, 2  ;;  %v6542_v60 = vpop.permute.xlu1 %1409  ;;  %v1139_v45 = vpop.xlane.xlu0 %1138  ;;  %v6554_v12 = vmul.f32 0.00390625, %v1068_v0 }
 0x2aa   : > { %5407 = vrsqrt.f32 %v1230_v62  ;;  %v1223_v61 = vsub.f32 %v1207_v1, %v1215_v29  ;;  %v1184_v53 = vadd.f32 %v1183_v59, %v1182_v48  ;;  %v1189_v17 = vadd.f32 %v1139_v45, %v1136_v21  ;;  %3047 = vperm.xlu0 %5401, %v5182_v16   ;;  %v956_v29 = vld [vmem:[#allocation7 + $0x1] sm:$0x1]  ;;  %v957_v45 = vld [vmem:[#allocation7 + $0x2] sm:$0x1] }
 0x2ab   : > { %v1174_v57 = vadd.f32 %v1173_v5, %v1172_v51  ;;  %v1179_v15 = vadd.f32 %v1178_v6, %v1177_v14  ;;  %v1075_v48 = vadd.f32 %v1074_v52, %v1073_v50  ;;  %v1217_v16 = vmul.f32 %v6549_v18, %v6549_v18 }
 0x2ac   : > { %v5404_v13 = vpop.eup %5403  ;;  %v1231_v27 = vadd.f32 1e-05, %v1223_v61  ;;  %v1185_v39 = vrot.slane %v1184_v53, 2  ;;  %v1190_v28 = vrot.slane %v1189_v17, 4 }
 0x2ad   : > { %v1208_v31 = vmul.f32 0.00390625, %v1174_v57  ;;  %v1180_v24 = vrot.slane %v1179_v15, 1  ;;  %v6551_v40 = vpop.permute.xlu1 %1417  ;;  %v1260_v21 = vmul.f32 %v5404_v13, %v955_v22  ;;  %v1218_v22 = vmul.f32 %v6554_v12, %v6554_v12 }
 0x2ae   : > { %5409 = vrsqrt.f32 %v1231_v27  ;;  %v1186_v55 = vadd.f32 %v1185_v39, %v1184_v53  ;;  %v1191_v34 = vadd.f32 %v1190_v28, %v1189_v17  ;;  %3055 = vperm.xlu0 %5401, %v5184_v2   ;;  %v6563_v17 = vmul.f32 0.00390625, %v1075_v48  ;;  %v958_v39 = vld [vmem:[#allocation7 + $0x3] sm:$0x1] }
 0x2af   : > { %v1224_v54 = vsub.f32 %v1208_v31, %v1216_v63  ;;  %v1181_v32 = vadd.f32 %v1180_v24, %v1179_v15  ;;  %v1279_v37 = vrot.slane %v1260_v21, %v6545_v47 }
 0x2b0   : > { %v5406_v58 = vpop.eup %5405  ;;  %v1187_v7 = vrot.slane %v1186_v55, 1  ;;  %v1192_v51 = vrot.slane %v1191_v34, 2  ;;  %v1219_v21 = vmul.f32 %v6563_v17, %v6563_v17 }
 0x2b1   : > { %v1232_v14 = vadd.f32 1e-05, %v1224_v54  ;;  %v1209_v62 = vmul.f32 0.00390625, %v1181_v32  ;;  %v6558_v1 = vpop.permute.xlu1 %1425  ;;  %1309 = vperm.xlu1 %5402, %v1279_v37   ;;  %v6560_v59 = vpop.permute.xlu0 %1397  ;;  %v1261_v49 = vmul.f32 %v5406_v58, %v956_v29  ;;  %v959_v58 = vld [vmem:[#allocation7 + $0x4] sm:$0x1] }
 0x2b2   : > { %v1188_v5 = vadd.f32 %v1187_v7, %v1186_v55  ;;  %v1193_v6 = vadd.f32 %v1192_v51, %v1191_v34 }
 0x2b3   : > { %5411 = vrsqrt.f32 %v1232_v14  ;;  %v1225_v61 = vsub.f32 %v1209_v62, %v1217_v16  ;;  %v1283_v50 = vrot.slane %v1261_v49, %v6545_v47  ;;  %v960_v62 = vld [vmem:[#allocation7 + $0x5] sm:$0x1] }
 0x2b4   : > { %v5408_v53 = vpop.eup %5407  ;;  %v1210_v0 = vmul.f32 0.00390625, %v1188_v5  ;;  %v1194_v63 = vrot.slane %v1193_v6, 1 }
 0x2b5   : > { %v1233_v57 = vadd.f32 1e-05, %v1225_v61  ;;  %v6567_v15 = vpop.permute.xlu1 %1916  ;;  %1313 = vperm.xlu0 %5401, %v1283_v50   ;;  %v6569_v2 = vpop.permute.xlu0 %1405  ;;  %v1262_v13 = vmul.f32 %v5408_v53, %v957_v45  ;;  %v961_v50 = vld [vmem:[#allocation7 + $0x6] sm:$0x1] }
 0x2b6   : > { %8542 = vst [vmem:[#allocation29_spill] sm:$0xff] %v6567_v15  ;;  %v1226_v52 = vsub.f32 %v1210_v0, %v1218_v22  ;;  %v1195_v27 = vadd.f32 %v1194_v63, %v1193_v6 }
 0x2b7   : > { %5413 = vrsqrt.f32 %v1233_v57  ;;  %v1287_v28 = vrot.slane %v1262_v13, %v6545_v47  ;;  %v962_v13 = vld [vmem:[#allocation7 + $0x7] sm:$0x1] }
 0x2b8   : > { %v5410_v31 = vpop.eup %5409  ;;  %v1234_v24 = vadd.f32 1e-05, %v1226_v52  ;;  %v1211_v55 = vmul.f32 0.00390625, %v1195_v27 }
 0x2b9   : > { %v6574_v34 = vpop.permute.xlu1 %1924  ;;  %1317 = vperm.xlu1 %5402, %v1287_v28   ;;  %v6576_v29 = vpop.permute.xlu0 %1413  ;;  %v1263_v54 = vmul.f32 %v5410_v31, %v958_v39 }
 0x2ba   : > { %8543 = vst [vmem:[#allocation30_spill] sm:$0xff] %v6574_v34  ;;  %5415 = vrsqrt.f32 %v1234_v24  ;;  %v1227_v32 = vsub.f32 %v1211_v55, %v1219_v21 }
 0x2bb   : > { %v1291_v37 = vrot.slane %v1263_v54, %v6545_v47 }
 0x2bc   : > { %v1235_v48 = vadd.f32 1e-05, %v1227_v32 }
 0x2bd   : > { %v5412_v7 = vpop.eup %5411  ;;  %v6579_v51 = vpop.permute.xlu1 %1932  ;;  %1321 = vperm.xlu1 %5402, %v1291_v37  }
 0x2be   : > { %8544 = vst [vmem:[#allocation31_spill] sm:$0xff] %v6579_v51  ;;  %v6581_v14 = vpop.permute.xlu0 %1421  ;;  %5417 = vrsqrt.f32 %v1235_v48  ;;  %v1264_v16 = vmul.f32 %v5412_v7, %v959_v58 }
 0x2c0   : > { %v1295_v49 = vrot.slane %v1264_v16, %v6545_v47 }
 0x2c1   : > { %v5414_v5 = vpop.eup %5413  ;;  %v6584_v6 = vpop.permute.xlu1 %1940 }
 0x2c2   : > { %8545 = vst [vmem:[#allocation32_spill] sm:$0xff] %v6584_v6  ;;  %v6586_v45 = vpop.permute.xlu0 %1912  ;;  %1325 = vperm.xlu0 %5401, %v1295_v49   ;;  %v1265_v61 = vmul.f32 %v5414_v5, %v960_v62 }
 0x2c3   : > { %8546 = vst [vmem:[#allocation33_spill] sm:$0xff] %v6586_v45 }
 0x2c4   : > { %v5416_v53 = vpop.eup %5415  ;;  %v1299_v22 = vrot.slane %v1265_v61, %v6545_v47 }
 0x2c5   : > { %v6589_v0 = vpop.permute.xlu1 %2013  ;;  %v1266_v57 = vmul.f32 %v5416_v53, %v961_v50 }
 0x2c6   : > { %v6591_v63 = vpop.permute.xlu0 %1920  ;;  %1329 = vperm.xlu1 %5402, %v1299_v22  }
 0x2c7   : > { %8547 = vst [vmem:[#allocation34_spill] sm:$0xff] %v6591_v63  ;;  %v1303_v52 = vrot.slane %v1266_v57, %v6545_v47 }
 0x2c8   : > { %v5418_v27 = vpop.eup %5417 }
 0x2c9   : > { %v6594_v39 = vpop.permute.xlu1 %2021  ;;  %1333 = vperm.xlu0 %5401, %v1303_v52   ;;  %v1267_v31 = vmul.f32 %v5418_v27, %v962_v13 }
 0x2ca   : > { %v6596_v28 = vpop.permute.xlu0 %1928 }
 0x2cb   : > { %8548 = vst [vmem:[#allocation35_spill] sm:$0xff] %v6596_v28  ;;  %v1307_v24 = vrot.slane %v1267_v31, %v6545_v47 }
 0x2cd   : > { %v6599_v21 = vpop.permute.xlu1 %2029  ;;  %1337 = vperm.xlu1 %5402, %v1307_v24  }
 0x2ce   : > { %v6601_v55 = vpop.permute.xlu0 %1936 }
 0x2cf   : > { %8549 = vst [vmem:[#allocation36_spill] sm:$0xff] %v6601_v55 }
 0x2d1   : > { %v6603_v54 = vpop.permute.xlu1 %2037 }
 0x2d2   : > { %v6605_v32 = vpop.permute.xlu0 %2009 }
 0x2d5   : > { %v6607_v37 = vpop.permute.xlu1 %2190 }
 0x2d6   : > { %8550 = vst [vmem:[#allocation37_spill] sm:$0xff] %v6607_v37  ;;  %v6609_v58 = vpop.permute.xlu0 %2017 }
 0x2d9   : > { %v6611_v48 = vpop.permute.xlu1 %2198 }
 0x2da   : > { %8551 = vst [vmem:[#allocation38_spill] sm:$0xff] %v6611_v48  ;;  %v6613_v7 = vpop.permute.xlu0 %2025 }
 0x2dd   : > { %v6615_v16 = vpop.permute.xlu1 %2206 }
 0x2de   : > { %8552 = vst [vmem:[#allocation39_spill] sm:$0xff] %v6615_v16  ;;  %v6617_v62 = vpop.permute.xlu0 %2033 }
 0x2e1   : > { %v6619_v49 = vpop.permute.xlu1 %2214 }
 0x2e2   : > { %8553 = vst [vmem:[#allocation40_spill] sm:$0xff] %v6619_v49  ;;  %v6621_v5 = vpop.permute.xlu0 %2186 }
 0x2e3   : > { %8554 = vst [vmem:[#allocation41_spill] sm:$0xff] %v6621_v5 }
 0x2e5   : > { %v6623_v61 = vpop.permute.xlu1 %2367 }
 0x2e6   : > { %8555 = vst [vmem:[#allocation42_spill] sm:$0xff] %v6623_v61  ;;  %v6625_v50 = vpop.permute.xlu0 %2194 }
 0x2e7   : > { %8556 = vst [vmem:[#allocation43_spill] sm:$0xff] %v6625_v50 }
 0x2e9   : > { %v6627_v53 = vpop.permute.xlu1 %2375 }
 0x2ea   : > { %8557 = vst [vmem:[#allocation44_spill] sm:$0xff] %v6627_v53  ;;  %v6629_v22 = vpop.permute.xlu0 %2202 }
 0x2eb   : > { %8558 = vst [vmem:[#allocation45_spill] sm:$0xff] %v6629_v22 }
 0x2ed   : > { %v6631_v57 = vpop.permute.xlu1 %2383 }
 0x2ee   : > { %8559 = vst [vmem:[#allocation46_spill] sm:$0xff] %v6631_v57  ;;  %v6633_v13 = vpop.permute.xlu0 %2210 }
 0x2ef   : > { %8560 = vst [vmem:[#allocation47_spill] sm:$0xff] %v6633_v13 }
 0x2f1   : > { %v6635_v52 = vpop.permute.xlu1 %2391 }
 0x2f2   : > { %8561 = vst [vmem:[#allocation48_spill] sm:$0xff] %v6635_v52  ;;  %v6637_v27 = vpop.permute.xlu0 %2363 }
 0x2f3   : > { %8562 = vst [vmem:[#allocation49_spill] sm:$0xff] %v6637_v27 }
 0x2f5   : > { %v6639_v31 = vpop.permute.xlu1 %2569 }
 0x2f6   : > { %8563 = vst [vmem:[#allocation50_spill] sm:$0xff] %v6639_v31  ;;  %v6641_v24 = vpop.permute.xlu0 %2371 }
 0x2f7   : > { %8564 = vst [vmem:[#allocation51_spill] sm:$0xff] %v6641_v24 }
 0x2f9   : > { %v6643_v47 = vpop.permute.xlu1 %2577 }
 0x2fa   : > { %8565 = vst [vmem:[#allocation52_spill] sm:$0xff] %v6643_v47  ;;  %v6645_v6 = vpop.permute.xlu0 %2379 }
 0x2fb   : > { %8566 = vst [vmem:[#allocation53_spill] sm:$0xff] %v6645_v6 }
 0x2fd   : > { %v6647_v55 = vpop.permute.xlu1 %2585 }
 0x2fe   : > { %8567 = vst [vmem:[#allocation54_spill] sm:$0xff] %v6647_v55  ;;  %v6649_v53 = vpop.permute.xlu0 %2387 }
 0x2ff   : > { %8568 = vst [vmem:[#allocation55_spill] sm:$0xff] %v6649_v53 }
 0x301   : > { %v6651_v51 = vpop.permute.xlu1 %2593 }
 0x302   : > { %8569 = vst [vmem:[#allocation56_spill] sm:$0xff] %v6651_v51  ;;  %v6653_v57 = vpop.permute.xlu0 %2565 }
 0x303   : > { %8570 = vst [vmem:[#allocation57_spill] sm:$0xff] %v6653_v57 }
 0x305   : > { %v6655_v28 = vpop.permute.xlu1 %2802 }
 0x306   : > { %8571 = vst [vmem:[#allocation58_spill] sm:$0xff] %v6655_v28  ;;  %v6657_v52 = vpop.permute.xlu0 %2573 }
 0x307   : > { %8572 = vst [vmem:[#allocation59_spill] sm:$0xff] %v6657_v52 }
 0x309   : > { %v6659_v34 = vpop.permute.xlu1 %2810 }
 0x30a   : > { %8573 = vst [vmem:[#allocation60_spill] sm:$0xff] %v6659_v34  ;;  %v6661_v63 = vpop.permute.xlu0 %2581 }
 0x30b   : > { %8574 = vst [vmem:[#allocation61_spill] sm:$0xff] %v6661_v63 }
 0x30d   : > { %v6665_v61 = vpop.permute.xlu1 %2818 }
 0x30e   : > { %v6663_v24 = vpop.permute.xlu0 %2589  ;;  %8576 = vst [vmem:[#allocation63_spill] sm:$0xff] %v6665_v61 }
 0x30f   : > { %8575 = vst [vmem:[#allocation62_spill] sm:$0xff] %v6663_v24 }
 0x311   : > { %v6669_v15 = vpop.permute.xlu1 %2826 }
 0x312   : > { %v6667_v6 = vpop.permute.xlu0 %2798  ;;  %8578 = vst [vmem:[#allocation65_spill] sm:$0xff] %v6669_v15  ;;  %v1244_v15 = vsub.f32 %v6340_v36, %v6519_v44 }
 0x313   : > { %8577 = vst [vmem:[#allocation64_spill] sm:$0xff] %v6667_v6 }
 0x315   : > { %v6675_v27 = vpop.permute.xlu1 %3035 }
 0x316   : > { %v6671_v53 = vpop.permute.xlu0 %2806  ;;  %8581 = vst [vmem:[#allocation68_spill] sm:$0xff] %v6675_v27  ;;  %v1245_v27 = vsub.f32 %v6338_v35, %v6519_v44  ;;  %v1248_v44 = vsub.f32 %v6358_v11, %v6528_v4  ;;  %v1251_v11 = vsub.f32 %v6409_v9, %v6532_v10 }
 0x317   : > { %8579 = vst [vmem:[#allocation66_spill] sm:$0xff] %v6671_v53 }
 0x319   : > { %v6679_v51 = vpop.permute.xlu1 %3043 }
 0x31a   : > { %v6673_v45 = vpop.permute.xlu0 %2814  ;;  %8583 = vst [vmem:[#allocation70_spill] sm:$0xff] %v6679_v51 }
 0x31b   : > { %8580 = vst [vmem:[#allocation67_spill] sm:$0xff] %v6673_v45 }
 0x31d   : > { %v6685_v24 = vpop.permute.xlu1 %3051 }
 0x31e   : > { %v6677_v28 = vpop.permute.xlu0 %2822  ;;  %8586 = vst [vmem:[#allocation73_spill] sm:$0xff] %v6685_v24  ;;  %v1246_v24 = vsub.f32 %v6354_v8, %v6524_v20 }
 0x31f   : > { %8582 = vst [vmem:[#allocation69_spill] sm:$0xff] %v6677_v28 }
 0x321   : > { %v6689_v6 = vpop.permute.xlu1 %3059 }
 0x322   : > { %v6681_v34 = vpop.permute.xlu0 %3031  ;;  %8588 = vst [vmem:[#allocation75_spill] sm:$0xff] %v6689_v6  ;;  %v1247_v6 = vsub.f32 %v6367_v23, %v6524_v20  ;;  %v1250_v23 = vsub.f32 %v6374_v25, %v6532_v10 }
 0x323   : > { %8584 = vst [vmem:[#allocation71_spill] sm:$0xff] %v6681_v34 }
 0x326   : > { %v6683_v55 = vpop.permute.xlu0 %3039 }
 0x327   : > { %8585 = vst [vmem:[#allocation72_spill] sm:$0xff] %v6683_v55 }
 0x32a   : > { %v6687_v61 = vpop.permute.xlu0 %3047 }
 0x32b   : > { %8587 = vst [vmem:[#allocation74_spill] sm:$0xff] %v6687_v61 }
 0x32e   : > { %v6695_v45 = vpop.permute.xlu0 %3055 }
 0x32f   : > { %8589 = vst [vmem:[#allocation76_spill] sm:$0xff] %v6695_v45 }
 0x330   : > { %v1310_v28 = vpop.permute.xlu1 %1309 }
 0x331   : > { %v1340_v51 = vmul.f32 %v1310_v28, %v1244_v15  ;;  %v1341_v53 = vmul.f32 %v1310_v28, %v1245_v27  ;;  %v1249_v15 = vsub.f32 %v6394_v41, %v6528_v4 }
 0x333   : > { %v1428_v34 = vadd.f32 %v6560_v59, %v1340_v51  ;;  %v1429_v55 = vadd.f32 %v6560_v59, %v1341_v53 }
 0x334   : > { %v1314_v61 = vpop.permute.xlu0 %1313 }
 0x335   : > { %v1444_v36 = vmax.f32 %v1428_v34, 0.0  ;;  %v1445_v63 = vmax.f32 %v1429_v55, 0.0  ;;  %v1342_v47 = vmul.f32 %v1314_v61, %v1246_v24  ;;  %v1343_v35 = vmul.f32 %v1314_v61, %v1247_v6 }
 0x337   : > { %v1460_v51 = vmin.f32 %v1444_v36, 6.0  ;;  %v1461_v28 = vmin.f32 %v1445_v63, 6.0  ;;  %v1430_v59 = vadd.f32 %v6538_v38, %v1342_v47  ;;  %v1431_v8 = vadd.f32 %v6538_v38, %v1343_v35 }
 0x338   : > { %v1318_v53 = vpop.permute.xlu1 %1317 }
 0x339   : > { %v1446_v20 = vmax.f32 %v1430_v59, 0.0  ;;  %v1447_v34 = vmax.f32 %v1431_v8, 0.0  ;;  %v1344_v6 = vmul.f32 %v1318_v53, %v1248_v44  ;;  %v1345_v55 = vmul.f32 %v1318_v53, %v1249_v15 }
 0x33a   : > { %v1509_v61 = vrot.slane %v1460_v51, 7  ;;  %v1510_v41 = vrot.slane %v1461_v28, 7  ;;  %v1484_v4 = vrot.slane %v1460_v51, 1  ;;  %v1549_v35 = vrot.slane %v1461_v28, 5 }
 0x33b   : > { %v1462_v63 = vmin.f32 %v1446_v20, 6.0  ;;  %v1463_v27 = vmin.f32 %v1447_v34, 6.0  ;;  %v1432_v47 = vadd.f32 %v6569_v2, %v1344_v6  ;;  %v1433_v38 = vadd.f32 %v6569_v2, %v1345_v55 }
 0x33c   : > { %v1322_v24 = vpop.permute.xlu1 %1321  ;;  %v6716_v25 = vsel %vm1508_vm1, %v1509_v61, %v1510_v41  ;;  %v6719_v36 = vsel %vm1508_vm1, %v1484_v4, %v1509_v61  ;;  %v1252_v59 = vsub.f32 %v6396_v42, %v6540_v43  ;;  %v6730_v6 = vsel %vm1508_vm1, %v1510_v41, %v1549_v35 }
 0x33d   : > { %v1448_v44 = vmax.f32 %v1432_v47, 0.0  ;;  %v1449_v15 = vmax.f32 %v1433_v38, 0.0  ;;  %v1346_v9 = vmul.f32 %v1322_v24, %v1250_v23  ;;  %v1347_v10 = vmul.f32 %v1322_v24, %v1251_v11  ;;  %1599 = vrot.lane.b32.xlu1 %v6716_v25, %s5828_s12  ;;  %1597 = vrot.lane.b32.xlu0 %v6719_v36, %s5828_s12 }
 0x33e   : > { %v1485_v2 = vrot.slane %v1462_v63, 1  ;;  %v1512_v51 = vrot.slane %v1462_v63, 7  ;;  %v1513_v8 = vrot.slane %v1463_v27, 7  ;;  %v1550_v23 = vrot.slane %v1463_v27, 5 }
 0x33f   : > { %v1464_v53 = vmin.f32 %v1448_v44, 6.0  ;;  %v1434_v28 = vadd.f32 %v6542_v60, %v1346_v9  ;;  %v1435_v20 = vadd.f32 %v6542_v60, %v1347_v10  ;;  %v1465_v34 = vmin.f32 %v1449_v15, 6.0 }
 0x340   : > { %v6733_v55 = vsel %vm1508_vm1, %v1485_v2, %v1512_v51  ;;  %v1253_v11 = vsub.f32 %v6433_v19, %v6540_v43  ;;  %v1254_v60 = vsub.f32 %v6416_v56, %v6549_v18  ;;  %v1255_v27 = vsub.f32 %v6443_v30, %v6549_v18 }
 0x341   : > { %v1450_v61 = vmax.f32 %v1434_v28, 0.0  ;;  %1601 = vrot.lane.b32.xlu0 %v6730_v6, %s5828_s12  ;;  %1603 = vrot.lane.b32.xlu1 %v6733_v55, %s5828_s12  ;;  %v1326_v42 = vpop.permute.xlu0 %1325  ;;  %v1451_v4 = vmax.f32 %v1435_v20, 0.0  ;;  %v6746_v47 = vsel %vm1508_vm1, %v1512_v51, %v1513_v8  ;;  %v6749_v19 = vsel %vm1508_vm1, %v1513_v8, %v1550_v23 }
 0x342   : > { %v1348_v41 = vmul.f32 %v1326_v42, %v1252_v59  ;;  %v1349_v63 = vmul.f32 %v1326_v42, %v1253_v11  ;;  %v1486_v43 = vrot.slane %v1464_v53, 1  ;;  %v1515_v38 = vrot.slane %v1464_v53, 7 }
 0x343   : > { %v1466_v24 = vmin.f32 %v1450_v61, 6.0  ;;  %v1516_v56 = vrot.slane %v1465_v34, 7  ;;  %v1467_v30 = vmin.f32 %v1451_v4, 6.0  ;;  %v1551_v59 = vrot.slane %v1465_v34, 5 }
 0x344   : > { %v1436_v35 = vadd.f32 %v6576_v29, %v1348_v41  ;;  %v1437_v44 = vadd.f32 %v6576_v29, %v1349_v63  ;;  %v6758_v51 = vsel %vm1508_vm1, %v1486_v43, %v1515_v38  ;;  %v1256_v23 = vsub.f32 %v6435_v26, %v6554_v12 }
 0x345   : > { %v1330_v15 = vpop.permute.xlu1 %1329  ;;  %1605 = vrot.lane.b32.xlu0 %v6746_v47, %s5828_s12  ;;  %1607 = vrot.lane.b32.xlu1 %v6749_v19, %s5828_s12  ;;  %v6762_v29 = vsel %vm1508_vm1, %v1515_v38, %v1516_v56  ;;  %v1487_v28 = vrot.slane %v1466_v24, 1  ;;  %v1518_v20 = vrot.slane %v1466_v24, 7  ;;  %v1257_v34 = vsub.f32 %v6463_v46, %v6554_v12 }
 0x346   : > { %v1350_v18 = vmul.f32 %v1330_v15, %v1254_v60  ;;  %v1351_v9 = vmul.f32 %v1330_v15, %v1255_v27  ;;  %v1452_v10 = vmax.f32 %v1436_v35, 0.0  ;;  %v1453_v2 = vmax.f32 %v1437_v44, 0.0 }
 0x347   : > { %v1519_v61 = vrot.slane %v1467_v30, 7  ;;  %v6774_v27 = vsel %vm1508_vm1, %v1516_v56, %v1551_v59  ;;  %v6777_v43 = vsel %vm1508_vm1, %v1487_v28, %v1518_v20  ;;  %v1552_v38 = vrot.slane %v1467_v30, 5 }
 0x348   : > { %v1438_v8 = vadd.f32 %v6551_v40, %v1350_v18  ;;  %v1334_v53 = vpop.permute.xlu0 %1333  ;;  %v1439_v11 = vadd.f32 %v6551_v40, %v1351_v9  ;;  %v1468_v42 = vmin.f32 %v1452_v10, 6.0  ;;  %v1469_v60 = vmin.f32 %v1453_v2, 6.0 }
 0x349   : > { %1609 = vrot.lane.b32.xlu0 %v6758_v51, %s5828_s12  ;;  %1611 = vrot.lane.b32.xlu1 %v6762_v29, %s5828_s12  ;;  %v1352_v4 = vmul.f32 %v1334_v53, %v1256_v23  ;;  %v1353_v41 = vmul.f32 %v1334_v53, %v1257_v34  ;;  %v1258_v46 = vsub.f32 %v6450_v33, %v6563_v17 }
 0x34a   : > { %v1454_v63 = vmax.f32 %v1438_v8, 0.0  ;;  %v1455_v26 = vmax.f32 %v1439_v11, 0.0  ;;  %v6786_v40 = vsel %vm1508_vm1, %v1518_v20, %v1519_v61  ;;  %v1521_v44 = vrot.slane %v1468_v42, 7 }
 0x34b   : > { %v1440_v12 = vadd.f32 %v6581_v14, %v1352_v4  ;;  %v1441_v35 = vadd.f32 %v6581_v14, %v1353_v41  ;;  %v1522_v56 = vrot.slane %v1469_v60, 7  ;;  %v6791_v18 = vsel %vm1508_vm1, %v1519_v61, %v1552_v38 }
 0x34c   : > { %v1338_v24 = vpop.permute.xlu1 %1337  ;;  %v1470_v15 = vmin.f32 %v1454_v63, 6.0  ;;  %v1488_v9 = vrot.slane %v1468_v42, 1  ;;  %v1259_v10 = vsub.f32 %v6468_v3, %v6563_v17  ;;  %v1471_v33 = vmin.f32 %v1455_v26, 6.0 }
 0x34d   : > { %1613 = vrot.lane.b32.xlu0 %v6774_v27, %s5828_s12  ;;  %1615 = vrot.lane.b32.xlu1 %v6777_v43, %s5828_s12  ;;  %v1354_v30 = vmul.f32 %v1338_v24, %v1258_v46  ;;  %v1553_v2 = vrot.slane %v1469_v60, 5  ;;  %v1456_v14 = vmax.f32 %v1440_v12, 0.0  ;;  %v1457_v59 = vmax.f32 %v1441_v35, 0.0 }
 0x34e   : > { %v1355_v8 = vmul.f32 %v1338_v24, %v1259_v10  ;;  %v6800_v53 = vsel %vm1508_vm1, %v1521_v44, %v1522_v56  ;;  %v6804_v20 = vsel %vm1508_vm1, %v1488_v9, %v1521_v44  ;;  %v1489_v3 = vrot.slane %v1470_v15, 1 }
 0x34f   : > { %v1442_v28 = vadd.f32 %v6558_v1, %v1354_v30  ;;  %v1524_v17 = vrot.slane %v1470_v15, 7  ;;  %v1472_v23 = vmin.f32 %v1456_v14, 6.0  ;;  %v1473_v34 = vmin.f32 %v1457_v59, 6.0 }
 0x350   : > { %v1443_v11 = vadd.f32 %v6558_v1, %v1355_v8  ;;  %v6812_v61 = vsel %vm1508_vm1, %v1522_v56, %v1553_v2  ;;  %v1525_v4 = vrot.slane %v1471_v33, 7  ;;  %v1554_v41 = vrot.slane %v1471_v33, 5 }
 0x351   : > { %1617 = vrot.lane.b32.xlu0 %v6786_v40, %s5828_s12  ;;  %1619 = vrot.lane.b32.xlu1 %v6791_v18, %s5828_s12  ;;  %v1458_v42 = vmax.f32 %v1442_v28, 0.0  ;;  %v6815_v60 = vsel %vm1508_vm1, %v1489_v3, %v1524_v17  ;;  %v1527_v38 = vrot.slane %v1472_v23, 7  ;;  %v1528_v24 = vrot.slane %v1473_v34, 7 }
 0x352   : > { %v1459_v63 = vmax.f32 %v1443_v11, 0.0  ;;  %v6822_v1 = vsel %vm1508_vm1, %v1525_v4, %v1554_v41  ;;  %v6825_v46 = vsel %vm1508_vm1, %v1524_v17, %v1525_v4  ;;  %v1490_v12 = vrot.slane %v1472_v23, 1 }
 0x353   : > { %v1474_v26 = vmin.f32 %v1458_v42, 6.0  ;;  %v1555_v44 = vrot.slane %v1473_v34, 5  ;;  %v6832_v56 = vsel %vm1508_vm1, %v1527_v38, %v1528_v24 }
 0x354   : > { %v1475_v35 = vmin.f32 %v1459_v63, 6.0  ;;  %v6835_v15 = vsel %vm1508_vm1, %v1490_v12, %v1527_v38 }
 0x355   : > { %1623 = vrot.lane.b32.xlu1 %v6800_v53, %s5828_s12  ;;  %1621 = vrot.lane.b32.xlu0 %v6804_v20, %s5828_s12  ;;  %v1491_v30 = vrot.slane %v1474_v26, 1  ;;  %v1530_v9 = vrot.slane %v1474_v26, 7  ;;  %v6845_v33 = vsel %vm1508_vm1, %v1528_v24, %v1555_v44 }
 0x356   : > { %v1531_v2 = vrot.slane %v1475_v35, 7  ;;  %v1556_v14 = vrot.slane %v1475_v35, 5 }
 0x357   : > { %v6842_v10 = vsel %vm1508_vm1, %v1491_v30, %v1530_v9 }
 0x358   : > { %v6852_v59 = vsel %vm1508_vm1, %v1531_v2, %v1556_v14  ;;  %v6855_v8 = vsel %vm1508_vm1, %v1530_v9, %v1531_v2 }
 0x359   : > { %1627 = vrot.lane.b32.xlu1 %v6815_v60, %s5828_s12  ;;  %1625 = vrot.lane.b32.xlu0 %v6812_v61, %s5828_s12 }
 0x35d   : > { %1631 = vrot.lane.b32.xlu1 %v6822_v1, %s5828_s12  ;;  %1629 = vrot.lane.b32.xlu0 %v6825_v46, %s5828_s12 }
 0x361   : > { %1635 = vrot.lane.b32.xlu1 %v6832_v56, %s5828_s12  ;;  %1633 = vrot.lane.b32.xlu0 %v6835_v15, %s5828_s12 }
 0x365   : > { %1639 = vrot.lane.b32.xlu1 %v6842_v10, %s5828_s12  ;;  %1637 = vrot.lane.b32.xlu0 %v6845_v33, %s5828_s12 }
 0x369   : > { %1643 = vrot.lane.b32.xlu1 %v6852_v59, %s5828_s12  ;;  %1641 = vrot.lane.b32.xlu0 %v6855_v8, %s5828_s12 }
 0x36d   : > { %1671 = vrot.lane.b32.xlu1 %v6716_v25, %s5829_s27  ;;  %1669 = vrot.lane.b32.xlu0 %v6719_v36, %s5829_s27 }
 0x371   : > { %1675 = vrot.lane.b32.xlu1 %v6733_v55, %s5829_s27  ;;  %1673 = vrot.lane.b32.xlu0 %v6730_v6, %s5829_s27 }
 0x375   : > { %1679 = vrot.lane.b32.xlu1 %v6749_v19, %s5829_s27  ;;  %1677 = vrot.lane.b32.xlu0 %v6746_v47, %s5829_s27 }
 0x379   : > { %1683 = vrot.lane.b32.xlu1 %v6762_v29, %s5829_s27  ;;  %1681 = vrot.lane.b32.xlu0 %v6758_v51, %s5829_s27 }
 0x37d   : > { %1687 = vrot.lane.b32.xlu1 %v6777_v43, %s5829_s27  ;;  %1685 = vrot.lane.b32.xlu0 %v6774_v27, %s5829_s27 }
 0x381   : > { %1691 = vrot.lane.b32.xlu1 %v6791_v18, %s5829_s27  ;;  %1689 = vrot.lane.b32.xlu0 %v6786_v40, %s5829_s27 }
 0x385   : > { %1695 = vrot.lane.b32.xlu1 %v6800_v53, %s5829_s27  ;;  %1693 = vrot.lane.b32.xlu0 %v6804_v20, %s5829_s27 }
 0x389   : > { %1699 = vrot.lane.b32.xlu1 %v6815_v60, %s5829_s27  ;;  %1697 = vrot.lane.b32.xlu0 %v6812_v61, %s5829_s27 }
 0x38d   : > { %1703 = vrot.lane.b32.xlu1 %v6822_v1, %s5829_s27  ;;  %1701 = vrot.lane.b32.xlu0 %v6825_v46, %s5829_s27 }
 0x391   : > { %1707 = vrot.lane.b32.xlu1 %v6832_v56, %s5829_s27  ;;  %1705 = vrot.lane.b32.xlu0 %v6835_v15, %s5829_s27 }
 0x395   : > { %1711 = vrot.lane.b32.xlu1 %v6842_v10, %s5829_s27  ;;  %1709 = vrot.lane.b32.xlu0 %v6845_v33, %s5829_s27 }
 0x399   : > { %1715 = vrot.lane.b32.xlu1 %v6852_v59, %s5829_s27  ;;  %1713 = vrot.lane.b32.xlu0 %v6855_v8, %s5829_s27 }
 0x39d   : > { %1743 = vrot.lane.b32.xlu1 %v6716_v25, %s5830_s1  ;;  %1741 = vrot.lane.b32.xlu0 %v6719_v36, %s5830_s1 }
 0x3a1   : > { %1747 = vrot.lane.b32.xlu1 %v6733_v55, %s5830_s1  ;;  %1745 = vrot.lane.b32.xlu0 %v6730_v6, %s5830_s1 }
 0x3a5   : > { %1751 = vrot.lane.b32.xlu1 %v6749_v19, %s5830_s1  ;;  %1749 = vrot.lane.b32.xlu0 %v6746_v47, %s5830_s1 }
 0x3a9   : > { %1755 = vrot.lane.b32.xlu1 %v6762_v29, %s5830_s1  ;;  %1753 = vrot.lane.b32.xlu0 %v6758_v51, %s5830_s1 }
 0x3ad   : > { %1759 = vrot.lane.b32.xlu1 %v6777_v43, %s5830_s1  ;;  %1757 = vrot.lane.b32.xlu0 %v6774_v27, %s5830_s1 }
 0x3af   : > { %v6905_v25 = vpop.permute.xlu1 %1599  ;;  %v6907_v36 = vpop.permute.xlu0 %1597 }
 0x3b1   : > { %1763 = vrot.lane.b32.xlu1 %v6791_v18, %s5830_s1  ;;  %1761 = vrot.lane.b32.xlu0 %v6786_v40, %s5830_s1 }
 0x3b3   : > { %v6913_v6 = vpop.permute.xlu1 %1603  ;;  %v6915_v55 = vpop.permute.xlu0 %1601 }
 0x3b5   : > { %1767 = vrot.lane.b32.xlu1 %v6800_v53, %s5830_s1  ;;  %1765 = vrot.lane.b32.xlu0 %v6804_v20, %s5830_s1 }
 0x3b7   : > { %v6921_v47 = vpop.permute.xlu1 %1607  ;;  %v6923_v19 = vpop.permute.xlu0 %1605 }
 0x3b9   : > { %1771 = vrot.lane.b32.xlu1 %v6815_v60, %s5830_s1  ;;  %1769 = vrot.lane.b32.xlu0 %v6812_v61, %s5830_s1 }
 0x3bb   : > { %v6929_v51 = vpop.permute.xlu1 %1611  ;;  %v6931_v29 = vpop.permute.xlu0 %1609 }
 0x3bd   : > { %1775 = vrot.lane.b32.xlu1 %v6822_v1, %s5830_s1  ;;  %1773 = vrot.lane.b32.xlu0 %v6825_v46, %s5830_s1 }
 0x3bf   : > { %v6937_v27 = vpop.permute.xlu1 %1615  ;;  %v6939_v43 = vpop.permute.xlu0 %1613 }
 0x3c1   : > { %1779 = vrot.lane.b32.xlu1 %v6832_v56, %s5830_s1  ;;  %1777 = vrot.lane.b32.xlu0 %v6835_v15, %s5830_s1 }
 0x3c3   : > { %v6945_v40 = vpop.permute.xlu1 %1619  ;;  %v6947_v18 = vpop.permute.xlu0 %1617 }
 0x3c5   : > { %1783 = vrot.lane.b32.xlu1 %v6842_v10, %s5830_s1  ;;  %1781 = vrot.lane.b32.xlu0 %v6845_v33, %s5830_s1 }
 0x3c7   : > { %v6953_v53 = vpop.permute.xlu1 %1623  ;;  %v6955_v28 = vpop.permute.xlu0 %1621 }
 0x3c9   : > { %1787 = vrot.lane.b32.xlu1 %v6852_v59, %s5830_s1  ;;  %1785 = vrot.lane.b32.xlu0 %v6855_v8, %s5830_s1 }
 0x3cb   : > { %v6961_v20 = vpop.permute.xlu1 %1627  ;;  %v6963_v3 = vpop.permute.xlu0 %1625 }
 0x3cf   : > { %v6965_v17 = vpop.permute.xlu1 %1631  ;;  %v6967_v23 = vpop.permute.xlu0 %1629 }
 0x3d3   : > { %v6969_v34 = vpop.permute.xlu1 %1635  ;;  %v6971_v11 = vpop.permute.xlu0 %1633 }
 0x3d7   : > { %v6973_v61 = vpop.permute.xlu1 %1639  ;;  %v6975_v42 = vpop.permute.xlu0 %1637 }
 0x3db   : > { %v6977_v60 = vpop.permute.xlu1 %1643  ;;  %v6979_v4 = vpop.permute.xlu0 %1641 }
 0x3df   : > { %v1672_v41 = vpop.permute.xlu1 %1671  ;;  %v1670_v63 = vpop.permute.xlu0 %1669 }
 0x3e0   : > { %v1815_v57 = vsel %vm1813_vm2, %v6905_v25, %v1672_v41  ;;  %v1814_v13 = vsel %vm1813_vm2, %v6907_v36, %v1670_v63 }
 0x3e3   : > { %v1676_v38 = vpop.permute.xlu1 %1675  ;;  %v1674_v24 = vpop.permute.xlu0 %1673 }
 0x3e4   : > { %v1817_v25 = vsel %vm1813_vm2, %v6913_v6, %v1676_v38  ;;  %v1816_v36 = vsel %vm1813_vm2, %v6915_v55, %v1674_v24 }
 0x3e7   : > { %v1680_v26 = vpop.permute.xlu1 %1679  ;;  %v1678_v1 = vpop.permute.xlu0 %1677 }
 0x3e8   : > { %v1818_v6 = vsel %vm1813_vm2, %v6923_v19, %v1678_v1 }
 0x3eb   : > { %v1684_v46 = vpop.permute.xlu1 %1683  ;;  %v1682_v12 = vpop.permute.xlu0 %1681 }
 0x3ec   : > { %v1821_v24 = vsel %vm1813_vm2, %v6929_v51, %v1684_v46 }
 0x3ef   : > { %v1688_v35 = vpop.permute.xlu1 %1687  ;;  %v1686_v44 = vpop.permute.xlu0 %1685 }
 0x3f0   : > { %v1823_v51 = vsel %vm1813_vm2, %v6937_v27, %v1688_v35 }
 0x3f3   : > { %v1692_v56 = vpop.permute.xlu1 %1691  ;;  %v1690_v15 = vpop.permute.xlu0 %1689 }
 0x3f4   : > { %v1825_v27 = vsel %vm1813_vm2, %v6945_v40, %v1692_v56 }
 0x3f7   : > { %v6981_v30 = vpop.permute.xlu1 %1695  ;;  %v6983_v9 = vpop.permute.xlu0 %1693 }
 0x3f8   : > { %v1827_v40 = vsel %vm1813_vm2, %v6953_v53, %v6981_v30 }
 0x3fb   : > { %v6985_v10 = vpop.permute.xlu1 %1699  ;;  %v6987_v33 = vpop.permute.xlu0 %1697 }
 0x3fc   : > { %v1828_v30 = vsel %vm1813_vm2, %v6963_v3, %v6987_v33 }
 0x3ff   : > { %v6989_v2 = vpop.permute.xlu1 %1703  ;;  %v6991_v14 = vpop.permute.xlu0 %1701 }
 0x400   : > { %v1830_v3 = vsel %vm1813_vm2, %v6967_v23, %v6991_v14 }
 0x403   : > { %v6993_v59 = vpop.permute.xlu1 %1707  ;;  %v6995_v8 = vpop.permute.xlu0 %1705 }
 0x404   : > { %v1832_v23 = vsel %vm1813_vm2, %v6971_v11, %v6995_v8 }
 0x407   : > { %v6997_v45 = vpop.permute.xlu1 %1711  ;;  %v6999_v52 = vpop.permute.xlu0 %1709 }
 0x408   : > { %v1835_v11 = vsel %vm1813_vm2, %v6973_v61, %v6997_v45 }
 0x40b   : > { %v7001_v31 = vpop.permute.xlu1 %1715  ;;  %v7003_v49 = vpop.permute.xlu0 %1713 }
 0x40c   : > { %v1837_v45 = vsel %vm1813_vm2, %v6977_v60, %v7001_v31 }
 0x40f   : > { %v1744_v16 = vpop.permute.xlu1 %1743  ;;  %v1742_v22 = vpop.permute.xlu0 %1741 }
 0x410   : > { %v7010_v48 = vsel %vm1838_vm3, %v1815_v57, %v1744_v16  ;;  %v7013_v50 = vsel %vm1838_vm3, %v1814_v13, %v1742_v22  ;;  %v1819_v13 = vsel %vm1813_vm2, %v6921_v47, %v1680_v26  ;;  %v1820_v47 = vsel %vm1813_vm2, %v6931_v29, %v1682_v12 }
 0x411   : > { %v2041_v37 = vmul.f32 %v6605_v32, %v7010_v48  ;;  %v2040_v5 = vmul.f32 %v6605_v32, %v7013_v50  ;;  %v1822_v29 = vsel %vm1813_vm2, %v6939_v43, %v1686_v44  ;;  %v1824_v43 = vsel %vm1813_vm2, %v6947_v18, %v1690_v15 }
 0x412   : > { %v1826_v18 = vsel %vm1813_vm2, %v6955_v28, %v6983_v9  ;;  %v1829_v28 = vsel %vm1813_vm2, %v6961_v20, %v6985_v10  ;;  %v1831_v20 = vsel %vm1813_vm2, %v6965_v17, %v6989_v2  ;;  %v1833_v17 = vsel %vm1813_vm2, %v6969_v34, %v6993_v59 }
 0x413   : > { %2074 = vrot.lane.b32.xlu1 %v2041_v37, %s5828_s12  ;;  %v1748_v41 = vpop.permute.xlu1 %1747  ;;  %2072 = vrot.lane.b32.xlu0 %v2040_v5, %s5828_s12  ;;  %v1746_v16 = vpop.permute.xlu0 %1745  ;;  %v1834_v59 = vsel %vm1813_vm2, %v6975_v42, %v6999_v52  ;;  %v1836_v52 = vsel %vm1813_vm2, %v6979_v4, %v7003_v49  ;;  %v8597_v49 = vld [vmem:[#allocation37_spill] sm:$0xff] }
 0x414   : > { %v7026_v22 = vsel %vm1838_vm3, %v1817_v25, %v1748_v41  ;;  %v7029_v57 = vsel %vm1838_vm3, %v1816_v36, %v1746_v16 }
 0x415   : > { %v2042_v32 = vmul.f32 %v6589_v0, %v7026_v22  ;;  %v2219_v60 = vmul.f32 %v8597_v49, %v7026_v22 }
 0x417   : > { %v1752_v37 = vpop.permute.xlu1 %1751  ;;  %2076 = vrot.lane.b32.xlu0 %v2042_v32, %s5828_s12  ;;  %v1750_v5 = vpop.permute.xlu0 %1749 }
 0x418   : > { %v7039_v55 = vsel %vm1838_vm3, %v1819_v13, %v1752_v37  ;;  %v7042_v63 = vsel %vm1838_vm3, %v1818_v6, %v1750_v5 }
 0x419   : > { %v2043_v38 = vmul.f32 %v6589_v0, %v7042_v63 }
 0x41b   : > { %v1756_v19 = vpop.permute.xlu1 %1755  ;;  %2078 = vrot.lane.b32.xlu1 %v2043_v38, %s5828_s12  ;;  %v1754_v26 = vpop.permute.xlu0 %1753 }
 0x41c   : > { %v7052_v1 = vsel %vm1838_vm3, %v1821_v24, %v1756_v19  ;;  %v7055_v25 = vsel %vm1838_vm3, %v1820_v47, %v1754_v26 }
 0x41d   : > { %8590 = vst [vmem:[#allocation77_spill] sm:$0xff] %v7052_v1  ;;  %8591 = vst [vmem:[#allocation78_spill] sm:$0xff] %v7055_v25  ;;  %v2045_v36 = vmul.f32 %v6609_v58, %v7052_v1  ;;  %v2044_v0 = vmul.f32 %v6609_v58, %v7055_v25 }
 0x41f   : > { %v1760_v46 = vpop.permute.xlu1 %1759  ;;  %2082 = vrot.lane.b32.xlu1 %v2045_v36, %s5828_s12  ;;  %2080 = vrot.lane.b32.xlu0 %v2044_v0, %s5828_s12  ;;  %v1758_v12 = vpop.permute.xlu0 %1757 }
 0x420   : > { %v7068_v41 = vsel %vm1838_vm3, %v1823_v51, %v1760_v46  ;;  %v7071_v16 = vsel %vm1838_vm3, %v1822_v29, %v1758_v12 }
 0x421   : > { %8592 = vst [vmem:[#allocation79_spill] sm:$0xff] %v7068_v41  ;;  %8593 = vst [vmem:[#allocation80_spill] sm:$0xff] %v7071_v16  ;;  %v2046_v58 = vmul.f32 %v6594_v39, %v7068_v41 }
 0x423   : > { %v1764_v35 = vpop.permute.xlu1 %1763  ;;  %2084 = vrot.lane.b32.xlu0 %v2046_v58, %s5828_s12  ;;  %v1762_v44 = vpop.permute.xlu0 %1761 }
 0x424   : > { %v7081_v32 = vsel %vm1838_vm3, %v1825_v27, %v1764_v35  ;;  %v7084_v13 = vsel %vm1838_vm3, %v1824_v43, %v1762_v44  ;;  %v8596_v43 = vld [vmem:[#allocation41_spill] sm:$0xff]  ;;  %v8598_v44 = vld [vmem:[#allocation43_spill] sm:$0xff] }
 0x425   : > { %v2047_v6 = vmul.f32 %v6594_v39, %v7084_v13  ;;  %v2217_v35 = vmul.f32 %v8596_v43, %v7013_v50  ;;  %v2218_v4 = vmul.f32 %v8596_v43, %v7010_v48 }
 0x427   : > { %v1768_v56 = vpop.permute.xlu1 %1767  ;;  %2086 = vrot.lane.b32.xlu1 %v2047_v6, %s5828_s12  ;;  %v1766_v15 = vpop.permute.xlu0 %1765  ;;  %v2221_v6 = vmul.f32 %v8598_v44, %v7055_v25 }
 0x428   : > { %v7096_v37 = vsel %vm1838_vm3, %v1827_v40, %v1768_v56  ;;  %v7099_v5 = vsel %vm1838_vm3, %v1826_v18, %v1766_v15  ;;  %v8599_v40 = vld [vmem:[#allocation38_spill] sm:$0xff]  ;;  %v2222_v56 = vmul.f32 %v8598_v44, %v7052_v1  ;;  %v8600_v15 = vld [vmem:[#allocation45_spill] sm:$0xff] }
 0x429   : > { %v2049_v39 = vmul.f32 %v6613_v7, %v7096_v37  ;;  %v2048_v53 = vmul.f32 %v6613_v7, %v7099_v5  ;;  %v2223_v18 = vmul.f32 %v8599_v40, %v7068_v41 }
 0x42b   : > { %v1772_v9 = vpop.permute.xlu1 %1771  ;;  %2090 = vrot.lane.b32.xlu1 %v2049_v39, %s5828_s12  ;;  %2088 = vrot.lane.b32.xlu0 %v2048_v53, %s5828_s12  ;;  %v1770_v38 = vpop.permute.xlu0 %1769  ;;  %v2225_v39 = vmul.f32 %v8600_v15, %v7099_v5  ;;  %v2224_v53 = vmul.f32 %v8599_v40, %v7084_v13 }
 0x42c   : > { %v7114_v24 = vsel %vm1838_vm3, %v1829_v28, %v1772_v9  ;;  %v7117_v47 = vsel %vm1838_vm3, %v1828_v30, %v1770_v38  ;;  %v8601_v28 = vld [vmem:[#allocation39_spill] sm:$0xff]  ;;  %v2226_v9 = vmul.f32 %v8600_v15, %v7096_v37 }
 0x42d   : > { %v2050_v7 = vmul.f32 %v6599_v21, %v7114_v24  ;;  %v2227_v30 = vmul.f32 %v8601_v28, %v7114_v24  ;;  %v8602_v38 = vld [vmem:[#allocation47_spill] sm:$0xff] }
 0x42f   : > { %v1776_v10 = vpop.permute.xlu1 %1775  ;;  %2092 = vrot.lane.b32.xlu0 %v2050_v7, %s5828_s12  ;;  %v1774_v33 = vpop.permute.xlu0 %1773 }
 0x430   : > { %v7129_v19 = vsel %vm1838_vm3, %v1831_v20, %v1776_v10  ;;  %v7132_v26 = vsel %vm1838_vm3, %v1830_v3, %v1774_v33  ;;  %v8603_v3 = vld [vmem:[#allocation57_spill] sm:$0xff] }
 0x431   : > { %v2051_v36 = vmul.f32 %v6599_v21, %v7132_v26  ;;  %v2228_v20 = vmul.f32 %v8601_v28, %v7132_v26  ;;  %v2596_v10 = vmul.f32 %v8603_v3, %v7013_v50  ;;  %v2597_v33 = vmul.f32 %v8603_v3, %v7010_v48  ;;  %v8608_v28 = vld [vmem:[#allocation61_spill] sm:$0xff] }
 0x433   : > { %v1780_v2 = vpop.permute.xlu1 %1779  ;;  %2094 = vrot.lane.b32.xlu1 %v2051_v36, %s5828_s12  ;;  %v1778_v14 = vpop.permute.xlu0 %1777  ;;  %v8604_v36 = vld [vmem:[#allocation40_spill] sm:$0xff] }
 0x434   : > { %v7144_v0 = vsel %vm1838_vm3, %v1833_v17, %v1780_v2  ;;  %v7147_v51 = vsel %vm1838_vm3, %v1832_v23, %v1778_v14  ;;  %v2644_v2 = vrot.slane %v2596_v10, 1  ;;  %v2645_v14 = vrot.slane %v2597_v33, 1 }
 0x435   : > { %v2053_v21 = vmul.f32 %v6617_v62, %v7144_v0  ;;  %v2052_v34 = vmul.f32 %v6617_v62, %v7147_v51  ;;  %v2229_v7 = vmul.f32 %v8602_v38, %v7147_v51  ;;  %v2230_v23 = vmul.f32 %v8602_v38, %v7144_v0 }
 0x436   : > { %v2610_v33 = vmul.f32 %v8608_v28, %v7117_v47 }
 0x437   : > { %v1784_v8 = vpop.permute.xlu1 %1783  ;;  %2098 = vrot.lane.b32.xlu1 %v2053_v21, %s5828_s12  ;;  %2096 = vrot.lane.b32.xlu0 %v2052_v34, %s5828_s12  ;;  %v1782_v29 = vpop.permute.xlu0 %1781  ;;  %v8605_v21 = vld [vmem:[#allocation50_spill] sm:$0xff] }
 0x438   : > { %v7162_v46 = vsel %vm1838_vm3, %v1835_v11, %v1784_v8  ;;  %v7165_v12 = vsel %vm1838_vm3, %v1834_v59, %v1782_v29  ;;  %v2600_v34 = vmul.f32 %v8605_v21, %v7042_v63  ;;  %v2598_v11 = vmul.f32 %v8603_v3, %v7029_v57  ;;  %v8606_v29 = vld [vmem:[#allocation59_spill] sm:$0xff]  ;;  %v8609_v3 = vld [vmem:[#allocation54_spill] sm:$0xff] }
 0x439   : > { %8594 = vst [vmem:[#allocation81_spill] sm:$0xff] %v7165_v12  ;;  %v2054_v62 = vmul.f32 %v6603_v54, %v7162_v46  ;;  %v2231_v17 = vmul.f32 %v8604_v36, %v7162_v46  ;;  %v2599_v59 = vmul.f32 %v8605_v21, %v7026_v22  ;;  %v2612_v10 = vmul.f32 %v8609_v3, %v7132_v26 }
 0x43a   : > { %v2647_v43 = vrot.slane %v2598_v11, 1  ;;  %v2613_v11 = vmul.f32 %v8609_v3, %v7129_v19 }
 0x43b   : > { %v1788_v61 = vpop.permute.xlu1 %1787  ;;  %2100 = vrot.lane.b32.xlu0 %v2054_v62, %s5828_s12  ;;  %v1786_v42 = vpop.permute.xlu0 %1785  ;;  %v2602_v62 = vmul.f32 %v8606_v29, %v7055_v25 }
 0x43c   : > { %v7177_v58 = vsel %vm1838_vm3, %v1837_v45, %v1788_v61  ;;  %v7180_v27 = vsel %vm1838_vm3, %v1836_v52, %v1786_v42  ;;  %v2603_v45 = vmul.f32 %v8606_v29, %v7052_v1  ;;  %v2601_v52 = vmul.f32 %v8605_v21, %v7039_v55 }
 0x43d   : > { %8595 = vst [vmem:[#allocation82_spill] sm:$0xff] %v7177_v58  ;;  %v2055_v31 = vmul.f32 %v6603_v54, %v7180_v27  ;;  %v2220_v54 = vmul.f32 %v8597_v49, %v7042_v63  ;;  %v2232_v8 = vmul.f32 %v8604_v36, %v7180_v27  ;;  %v2646_v61 = vsel %vm2442_vm4, %v2644_v2, %v2645_v14 }
 0x43e   : > { %v2650_v42 = vrot.slane %v2600_v34, 1  ;;  %v2655_v49 = vrot.slane %v2603_v45, 1  ;;  %v2670_v21 = vrot.slane %v2612_v10, 1  ;;  %v2667_v34 = vrot.slane %v2610_v33, 1  ;;  %v8613_v10 = vld [vmem:[#allocation58_spill] sm:$0xff] }
 0x43f   : > { %2249 = vrot.lane.b32.xlu0 %v2217_v35, %s5831_s28  ;;  %2102 = vrot.lane.b32.xlu1 %v2055_v31, %s5828_s12  ;;  %v2649_v35 = vrot.slane %v2599_v59, 1  ;;  %v2654_v31 = vrot.slane %v2602_v62, 1  ;;  %v2833_v33 = vmul.f32 %v8613_v10, %v7042_v63 }
 0x441   : > { %v2651_v44 = vsel %vm2442_vm4, %v2649_v35, %v2650_v42 }
 0x443   : > { %2253 = vrot.lane.b32.xlu0 %v2219_v60, %s5831_s28  ;;  %2251 = vrot.lane.b32.xlu1 %v2218_v4, %s5831_s28  ;;  %v2652_v60 = vrot.slane %v2601_v52, 1  ;;  %v2604_v4 = vmul.f32 %v8606_v29, %v7071_v16  ;;  %v8610_v29 = vld [vmem:[#allocation62_spill] sm:$0xff] }
 0x444   : > { %v2614_v62 = vmul.f32 %v8610_v29, %v7147_v51  ;;  %v2615_v45 = vmul.f32 %v8610_v29, %v7144_v0 }
 0x445   : > { %v2653_v15 = vsel %vm2442_vm4, %v2650_v42, %v2652_v60 }
 0x446   : > { %v2674_v35 = vrot.slane %v2614_v62, 1 }
 0x447   : > { %2257 = vrot.lane.b32.xlu0 %v2221_v6, %s5831_s28  ;;  %2255 = vrot.lane.b32.xlu1 %v2220_v54, %s5831_s28  ;;  %v2648_v6 = vsel %vm2442_vm4, %v2645_v14, %v2647_v43  ;;  %v8607_v54 = vld [vmem:[#allocation52_spill] sm:$0xff]  ;;  %v2611_v14 = vmul.f32 %v8609_v3, %v7114_v24  ;;  %v2672_v43 = vrot.slane %v2613_v11, 1  ;;  %v2883_v11 = vrot.slane %v2833_v33, 1 }
 0x448   : > { %v2606_v40 = vmul.f32 %v8607_v54, %v7084_v13  ;;  %v2607_v38 = vmul.f32 %v8607_v54, %v7081_v32 }
 0x449   : > { %v2669_v52 = vrot.slane %v2611_v14, 1  ;;  %v2834_v14 = vmul.f32 %v8613_v10, %v7039_v55 }
 0x44a   : > { %v2662_v2 = vrot.slane %v2607_v38, 1 }
 0x44b   : > { %2261 = vrot.lane.b32.xlu0 %v2223_v18, %s5831_s28  ;;  %2259 = vrot.lane.b32.xlu1 %v2222_v56, %s5831_s28  ;;  %v2605_v18 = vmul.f32 %v8607_v54, %v7068_v41  ;;  %v2656_v56 = vsel %vm2442_vm4, %v2654_v31, %v2655_v49  ;;  %v2675_v31 = vrot.slane %v2615_v45, 1  ;;  %v8612_v54 = vld [vmem:[#allocation64_spill] sm:$0xff]  ;;  %v2885_v45 = vrot.slane %v2834_v14, 1 }
 0x44c   : > { %v2831_v38 = vmul.f32 %v8612_v54, %v7029_v57 }
 0x44f   : > { %2265 = vrot.lane.b32.xlu0 %v2225_v39, %s5831_s28  ;;  %2263 = vrot.lane.b32.xlu1 %v2224_v53, %s5831_s28  ;;  %v2657_v39 = vrot.slane %v2604_v4, 1  ;;  %v2660_v53 = vrot.slane %v2606_v40, 1  ;;  %v2616_v4 = vmul.f32 %v8610_v29, %v7165_v12  ;;  %v2829_v40 = vmul.f32 %v8612_v54, %v7013_v50 }
 0x453   : > { %2269 = vrot.lane.b32.xlu0 %v2227_v30, %s5831_s28  ;;  %2267 = vrot.lane.b32.xlu1 %v2226_v9, %s5831_s28  ;;  %v2608_v30 = vmul.f32 %v8608_v28, %v7099_v5  ;;  %v2609_v9 = vmul.f32 %v8608_v28, %v7096_v37 }
 0x457   : > { %2273 = vrot.lane.b32.xlu0 %v2229_v7, %s5831_s28  ;;  %2271 = vrot.lane.b32.xlu1 %v2228_v20, %s5831_s28  ;;  %v2659_v7 = vrot.slane %v2605_v18, 1  ;;  %v2658_v20 = vsel %vm2442_vm4, %v2655_v49, %v2657_v39  ;;  %v8611_v49 = vld [vmem:[#allocation56_spill] sm:$0xff]  ;;  %v2830_v18 = vmul.f32 %v8612_v54, %v7010_v48  ;;  %v2677_v39 = vrot.slane %v2616_v4, 1 }
 0x458   : > { %v2618_v60 = vmul.f32 %v8611_v49, %v7180_v27 }
 0x459   : > { %v2661_v36 = vsel %vm2442_vm4, %v2659_v7, %v2660_v53 }
 0x45b   : > { %2277 = vrot.lane.b32.xlu0 %v2231_v17, %s5831_s28  ;;  %2275 = vrot.lane.b32.xlu1 %v2230_v23, %s5831_s28  ;;  %v2664_v17 = vrot.slane %v2608_v30, 1  ;;  %v2665_v23 = vrot.slane %v2609_v9, 1  ;;  %v2877_v30 = vrot.slane %v2829_v40, 1  ;;  %v2878_v9 = vrot.slane %v2830_v18, 1 }
 0x45d   : > { %v2666_v59 = vsel %vm2442_vm4, %v2664_v17, %v2665_v23  ;;  %v2668_v42 = vsel %vm2442_vm4, %v2665_v23, %v2667_v34  ;;  %v8614_v17 = vld [vmem:[#allocation66_spill] sm:$0xff] }
 0x45e   : > { %v2835_v23 = vmul.f32 %v8614_v17, %v7055_v25 }
 0x45f   : > { %2684 = vrot.lane.b32.xlu0 %v2646_v61, %s5828_s12  ;;  %2279 = vrot.lane.b32.xlu1 %v2232_v8, %s5831_s28  ;;  %v2663_v8 = vsel %vm2442_vm4, %v2660_v53, %v2662_v2  ;;  %v2671_v61 = vsel %vm2442_vm4, %v2669_v52, %v2670_v21  ;;  %v2619_v53 = vmul.f32 %v8611_v49, %v7177_v58  ;;  %v8615_v52 = vld [vmem:[#allocation60_spill] sm:$0xff] }
 0x460   : > { %v2836_v2 = vmul.f32 %v8614_v17, %v7052_v1  ;;  %v2887_v29 = vrot.slane %v2835_v23, 1  ;;  %v2840_v18 = vmul.f32 %v8615_v52, %v7081_v32 }
 0x461   : > { %v2682_v3 = vrot.slane %v2619_v53, 1 }
 0x462   : > { %v2888_v62 = vrot.slane %v2836_v2, 1  ;;  %v8618_v2 = vld [vmem:[#allocation69_spill] sm:$0xff] }
 0x463   : > { %2688 = vrot.lane.b32.xlu0 %v2651_v44, %s5828_s12  ;;  %2686 = vrot.lane.b32.xlu1 %v2648_v6, %s5828_s12  ;;  %v2617_v44 = vmul.f32 %v8611_v49, %v7162_v46  ;;  %v2673_v6 = vsel %vm2442_vm4, %v2670_v21, %v2672_v43  ;;  %v2879_v21 = vsel %vm2442_vm4, %v2877_v30, %v2878_v9 }
 0x464   : > { %v2889_v49 = vsel %vm2442_vm4, %v2887_v29, %v2888_v62  ;;  %v2847_v14 = vmul.f32 %v8618_v2, %v7147_v51 }
 0x465   : > { %v2679_v28 = vrot.slane %v2617_v44, 1 }
 0x467   : > { %2692 = vrot.lane.b32.xlu0 %v2656_v56, %s5828_s12  ;;  %2690 = vrot.lane.b32.xlu1 %v2653_v15, %s5828_s12  ;;  %v2676_v56 = vsel %vm2442_vm4, %v2674_v35, %v2675_v31  ;;  %v2680_v15 = vrot.slane %v2618_v60, 1  ;;  %v2837_v35 = vmul.f32 %v8614_v17, %v7071_v16  ;;  %v2886_v60 = vsel %vm2442_vm4, %v2883_v11, %v2885_v45 }
 0x468   : > { %v2907_v45 = vrot.slane %v2847_v14, 1  ;;  %v5189_v14 = vld [vmem:[#allocation10 + $0x3b] ss:$0 sm:$0xff] }
 0x469   : > { %v2681_v7 = vsel %vm2442_vm4, %v2679_v28, %v2680_v15  ;;  %v2683_v34 = vsel %vm2442_vm4, %v2680_v15, %v2682_v3  ;;  %v2890_v44 = vrot.slane %v2837_v35, 1 }
 0x46b   : > { %2696 = vrot.lane.b32.xlu0 %v2661_v36, %s5828_s12  ;;  %2694 = vrot.lane.b32.xlu1 %v2658_v20, %s5828_s12  ;;  %v2678_v20 = vsel %vm2442_vm4, %v2675_v31, %v2677_v39  ;;  %v2832_v36 = vmul.f32 %v8613_v10, %v7026_v22  ;;  %v2838_v31 = vmul.f32 %v8615_v52, %v7068_v41  ;;  %v8617_v39 = vld [vmem:[#allocation63_spill] sm:$0xff] }
 0x46c   : > { %v2845_v53 = vmul.f32 %v8617_v39, %v7132_v26  ;;  %v2891_v30 = vsel %vm2442_vm4, %v2888_v62, %v2890_v44  ;;  %v2844_v3 = vmul.f32 %v8617_v39, %v7114_v24 }
 0x46e   : > { %v2903_v10 = vrot.slane %v2845_v53, 1 }
 0x46f   : > { %2700 = vrot.lane.b32.xlu0 %v2666_v59, %s5828_s12  ;;  %2698 = vrot.lane.b32.xlu1 %v2663_v8, %s5828_s12  ;;  %v2880_v59 = vrot.slane %v2831_v38, 1  ;;  %v2882_v8 = vrot.slane %v2832_v36, 1  ;;  %v2846_v36 = vmul.f32 %v8617_v39, %v7129_v19 }
 0x471   : > { %v2881_v43 = vsel %vm2442_vm4, %v2878_v9, %v2880_v59  ;;  %v2905_v62 = vrot.slane %v2846_v36, 1  ;;  %v5194_v36 = vld [vmem:[#allocation10 + $0x40] ss:$0 sm:$0xff] }
 0x473   : > { %2704 = vrot.lane.b32.xlu0 %v2671_v61, %s5828_s12  ;;  %2702 = vrot.lane.b32.xlu1 %v2668_v42, %s5828_s12  ;;  %v2839_v61 = vmul.f32 %v8615_v52, %v7084_v13  ;;  %v2884_v42 = vsel %vm2442_vm4, %v2882_v8, %v2883_v11  ;;  %v2902_v11 = vrot.slane %v2844_v3, 1  ;;  %v5187_v3 = vld [vmem:[#allocation10 + $0x39] ss:$0 sm:$0xff] }
 0x475   : > { %v2893_v4 = vrot.slane %v2839_v61, 1  ;;  %v2904_v8 = vsel %vm2442_vm4, %v2902_v11, %v2903_v10  ;;  %v8619_v61 = vld [vmem:[#allocation65_spill] sm:$0xff]  ;;  %v5197_v11 = vld [vmem:[#allocation10 + $0x43] ss:$0 sm:$0xff] }
 0x477   : > { %2708 = vrot.lane.b32.xlu0 %v2676_v56, %s5828_s12  ;;  %2706 = vrot.lane.b32.xlu1 %v2673_v6, %s5828_s12  ;;  %v8616_v6 = vld [vmem:[#allocation67_spill] sm:$0xff]  ;;  %v2892_v56 = vrot.slane %v2838_v31, 1  ;;  %v2850_v31 = vmul.f32 %v8619_v61, %v7162_v46 }
 0x478   : > { %v2841_v54 = vmul.f32 %v8616_v6, %v7099_v5  ;;  %v2842_v40 = vmul.f32 %v8616_v6, %v7096_v37  ;;  %v2843_v28 = vmul.f32 %v8616_v6, %v7117_v47 }
 0x479   : > { %v2894_v15 = vsel %vm2442_vm4, %v2892_v56, %v2893_v4 }
 0x47a   : > { %v2897_v9 = vrot.slane %v2841_v54, 1  ;;  %v2898_v38 = vrot.slane %v2842_v40, 1  ;;  %v2900_v33 = vrot.slane %v2843_v28, 1  ;;  %v2852_v54 = vmul.f32 %v8619_v61, %v7177_v58  ;;  %v5186_v28 = vld [vmem:[#allocation10 + $0x38] ss:$0 sm:$0xff] }
 0x47b   : > { %2712 = vrot.lane.b32.xlu0 %v2681_v7, %s5828_s12  ;;  %2710 = vrot.lane.b32.xlu1 %v2678_v20, %s5828_s12  ;;  %v2895_v7 = vrot.slane %v2840_v18, 1  ;;  %v2912_v40 = vrot.slane %v2850_v31, 1  ;;  %v5192_v31 = vld [vmem:[#allocation10 + $0x3e] ss:$0 sm:$0xff] }
 0x47c   : > { %v2899_v17 = vsel %vm2442_vm4, %v2897_v9, %v2898_v38  ;;  %v2901_v29 = vsel %vm2442_vm4, %v2898_v38, %v2900_v33  ;;  %v2915_v39 = vrot.slane %v2852_v54, 1  ;;  %v5195_v33 = vld [vmem:[#allocation10 + $0x41] ss:$0 sm:$0xff] }
 0x47d   : > { %v2896_v23 = vsel %vm2442_vm4, %v2893_v4, %v2895_v7  ;;  %v5188_v7 = vld [vmem:[#allocation10 + $0x3a] ss:$0 sm:$0xff] }
 0x47f   : > { %2917 = vrot.lane.b32.xlu0 %v2879_v21, %s5831_s28  ;;  %2714 = vrot.lane.b32.xlu1 %v2683_v34, %s5828_s12  ;;  %v2848_v21 = vmul.f32 %v8618_v2, %v7144_v0 }
 0x481   : > { %v2908_v52 = vrot.slane %v2848_v21, 1 }
 0x483   : > { %2921 = vrot.lane.b32.xlu0 %v2884_v42, %s5831_s28  ;;  %2919 = vrot.lane.b32.xlu1 %v2881_v43, %s5831_s28  ;;  %v2851_v42 = vmul.f32 %v8619_v61, %v7180_v27  ;;  %v2849_v43 = vmul.f32 %v8618_v2, %v7165_v12  ;;  %v2909_v4 = vsel %vm2442_vm4, %v2907_v45, %v2908_v52  ;;  %v5196_v2 = vld [vmem:[#allocation10 + $0x42] ss:$0 sm:$0xff]  ;;  %v5198_v45 = vld [vmem:[#allocation10 + $0x44] ss:$0 sm:$0xff] }
 0x485   : > { %v7357_v20 = vpop.permute.xlu0 %2072  ;;  %v7371_v34 = vpop.permute.xlu1 %2074  ;;  %v2913_v44 = vrot.slane %v2851_v42, 1  ;;  %v2910_v6 = vrot.slane %v2849_v43, 1  ;;  %v5199_v43 = vld [vmem:[#allocation10 + $0x45] ss:$0 sm:$0xff] }
 0x487   : > { %2925 = vrot.lane.b32.xlu0 %v2889_v49, %s5831_s28  ;;  %2923 = vrot.lane.b32.xlu1 %v2886_v60, %s5831_s28  ;;  %v2906_v60 = vsel %vm2442_vm4, %v2903_v10, %v2905_v62  ;;  %v2914_v56 = vsel %vm2442_vm4, %v2912_v40, %v2913_v44  ;;  %v2916_v9 = vsel %vm2442_vm4, %v2913_v44, %v2915_v39  ;;  %v5200_v44 = vld [vmem:[#allocation10 + $0x46] ss:$0 sm:$0xff] }
 0x489   : > { %v7375_v59 = vpop.permute.xlu0 %2076 }
 0x48b   : > { %2929 = vrot.lane.b32.xlu0 %v2894_v15, %s5831_s28  ;;  %2927 = vrot.lane.b32.xlu1 %v2891_v30, %s5831_s28  ;;  %v2911_v15 = vsel %vm2442_vm4, %v2908_v52, %v2910_v6  ;;  %v5191_v52 = vld [vmem:[#allocation10 + $0x3d] ss:$0 sm:$0xff]  ;;  %v5193_v6 = vld [vmem:[#allocation10 + $0x3f] ss:$0 sm:$0xff] }
 0x48d   : > { %v7383_v35 = vpop.permute.xlu1 %2078 }
 0x48f   : > { %2933 = vrot.lane.b32.xlu0 %v2899_v17, %s5831_s28  ;;  %2931 = vrot.lane.b32.xlu1 %v2896_v23, %s5831_s28 }
 0x491   : > { %v7389_v49 = vpop.permute.xlu0 %2080  ;;  %v7397_v18 = vpop.permute.xlu1 %2082 }
 0x493   : > { %2937 = vrot.lane.b32.xlu0 %v2904_v8, %s5831_s28  ;;  %2935 = vrot.lane.b32.xlu1 %v2901_v29, %s5831_s28  ;;  %v5190_v8 = vld [vmem:[#allocation10 + $0x3c] ss:$0 sm:$0xff] }
 0x495   : > { %v7401_v53 = vpop.permute.xlu0 %2084 }
 0x496   : > { %8620 = vst [vmem:[#allocation41_spill] sm:$0xff] %v7401_v53 }
 0x497   : > { %2941 = vrot.lane.b32.xlu0 %v2909_v4, %s5831_s28  ;;  %2939 = vrot.lane.b32.xlu1 %v2906_v60, %s5831_s28 }
 0x499   : > { %v7405_v30 = vpop.permute.xlu1 %2086 }
 0x49a   : > { %8621 = vst [vmem:[#allocation37_spill] sm:$0xff] %v7405_v30 }
 0x49b   : > { %2945 = vrot.lane.b32.xlu0 %v2914_v56, %s5831_s28  ;;  %2943 = vrot.lane.b32.xlu1 %v2911_v15, %s5831_s28  ;;  %v5201_v56 = vld [vmem:[#allocation10 + $0x47] ss:$0 sm:$0xff] }
 0x49d   : > { %v7408_v38 = vpop.permute.xlu0 %2088  ;;  %v7411_v10 = vpop.permute.xlu1 %2090 }
 0x49e   : > { %8622 = vst [vmem:[#allocation43_spill] sm:$0xff] %v7408_v38  ;;  %8623 = vst [vmem:[#allocation38_spill] sm:$0xff] %v7411_v10 }
 0x49f   : > { %3233 = vperm.xlu0 %5401, %v5186_v28   ;;  %2947 = vrot.lane.b32.xlu1 %v2916_v9, %s5831_s28 }
 0x4a1   : > { %v7413_v17 = vpop.permute.xlu0 %2092 }
 0x4a2   : > { %8624 = vst [vmem:[#allocation45_spill] sm:$0xff] %v7413_v17 }
 0x4a3   : > { %3241 = vperm.xlu0 %5401, %v5188_v7   ;;  %3237 = vperm.xlu1 %5402, %v5187_v3  }
 0x4a5   : > { %v7415_v23 = vpop.permute.xlu1 %2094 }
 0x4a6   : > { %8625 = vst [vmem:[#allocation39_spill] sm:$0xff] %v7415_v23 }
 0x4a7   : > { %3470 = vperm.xlu0 %5401, %v5195_v33   ;;  %3466 = vperm.xlu1 %5402, %v5194_v36  }
 0x4a9   : > { %v7417_v21 = vpop.permute.xlu0 %2096  ;;  %v7419_v29 = vpop.permute.xlu1 %2098 }
 0x4aa   : > { %8626 = vst [vmem:[#allocation47_spill] sm:$0xff] %v7417_v21  ;;  %8627 = vst [vmem:[#allocation57_spill] sm:$0xff] %v7419_v29 }
 0x4ab   : > { %3474 = vperm.xlu0 %5401, %v5196_v2   ;;  %3245 = vperm.xlu1 %5402, %v5189_v14  }
 0x4ad   : > { %v7421_v62 = vpop.permute.xlu0 %2100 }
 0x4ae   : > { %8628 = vst [vmem:[#allocation40_spill] sm:$0xff] %v7421_v62 }
 0x4af   : > { %3478 = vperm.xlu0 %5401, %v5197_v11   ;;  %3249 = vperm.xlu1 %5402, %v5190_v8  }
 0x4b1   : > { %v7423_v61 = vpop.permute.xlu1 %2102  ;;  %v7425_v42 = vpop.permute.xlu0 %2249 }
 0x4b2   : > { %8629 = vst [vmem:[#allocation50_spill] sm:$0xff] %v7423_v61 }
 0x4b3   : > { %3482 = vperm.xlu0 %5401, %v5198_v45   ;;  %3253 = vperm.xlu1 %5402, %v5191_v52  }
 0x4b5   : > { %v7427_v60 = vpop.permute.xlu1 %2251  ;;  %v7429_v4 = vpop.permute.xlu0 %2253 }
 0x4b7   : > { %3486 = vperm.xlu0 %5401, %v5199_v43   ;;  %3257 = vperm.xlu1 %5402, %v5192_v31  }
 0x4b9   : > { %v7431_v54 = vpop.permute.xlu1 %2255  ;;  %v7433_v40 = vpop.permute.xlu0 %2257 }
 0x4bb   : > { %3490 = vperm.xlu0 %5401, %v5200_v44   ;;  %3261 = vperm.xlu1 %5402, %v5193_v6  }
 0x4bd   : > { %v7435_v15 = vpop.permute.xlu1 %2259  ;;  %v7437_v39 = vpop.permute.xlu0 %2261 }
 0x4be   : > { %8630 = vst [vmem:[#allocation59_spill] sm:$0xff] %v7435_v15  ;;  %8631 = vst [vmem:[#allocation52_spill] sm:$0xff] %v7437_v39 }
 0x4bf   : > { %3494 = vperm.xlu1 %5402, %v5201_v56  }
 0x4c1   : > { %v7439_v28 = vpop.permute.xlu1 %2263  ;;  %v7441_v9 = vpop.permute.xlu0 %2265 }
 0x4c2   : > { %8632 = vst [vmem:[#allocation61_spill] sm:$0xff] %v7439_v28  ;;  %8633 = vst [vmem:[#allocation54_spill] sm:$0xff] %v7441_v9 }
 0x4c5   : > { %v7443_v7 = vpop.permute.xlu1 %2267  ;;  %v7445_v3 = vpop.permute.xlu0 %2269 }
 0x4c6   : > { %8634 = vst [vmem:[#allocation62_spill] sm:$0xff] %v7443_v7  ;;  %8635 = vst [vmem:[#allocation56_spill] sm:$0xff] %v7445_v3 }
 0x4c9   : > { %v7447_v33 = vpop.permute.xlu1 %2271  ;;  %v7449_v36 = vpop.permute.xlu0 %2273 }
 0x4ca   : > { %8636 = vst [vmem:[#allocation64_spill] sm:$0xff] %v7447_v33  ;;  %8637 = vst [vmem:[#allocation58_spill] sm:$0xff] %v7449_v36 }
 0x4cd   : > { %v7451_v2 = vpop.permute.xlu1 %2275  ;;  %v7453_v14 = vpop.permute.xlu0 %2277 }
 0x4ce   : > { %8638 = vst [vmem:[#allocation66_spill] sm:$0xff] %v7451_v2  ;;  %8639 = vst [vmem:[#allocation60_spill] sm:$0xff] %v7453_v14 }
 0x4d1   : > { %v7455_v11 = vpop.permute.xlu1 %2279  ;;  %v7457_v8 = vpop.permute.xlu0 %2684 }
 0x4d2   : > { %8640 = vst [vmem:[#allocation67_spill] sm:$0xff] %v7455_v11 }
 0x4d5   : > { %v7459_v45 = vpop.permute.xlu1 %2686  ;;  %v7461_v52 = vpop.permute.xlu0 %2688 }
 0x4d9   : > { %v7463_v43 = vpop.permute.xlu1 %2690  ;;  %v7465_v31 = vpop.permute.xlu0 %2692 }
 0x4da   : > { %8641 = vst [vmem:[#allocation63_spill] sm:$0xff] %v7463_v43  ;;  %8642 = vst [vmem:[#allocation69_spill] sm:$0xff] %v7465_v31 }
 0x4dd   : > { %v7467_v44 = vpop.permute.xlu1 %2694  ;;  %v7469_v6 = vpop.permute.xlu0 %2696 }
 0x4de   : > { %8643 = vst [vmem:[#allocation65_spill] sm:$0xff] %v7467_v44  ;;  %8644 = vst [vmem:[#allocation83_spill] sm:$0xff] %v7469_v6 }
 0x4e1   : > { %v7471_v56 = vpop.permute.xlu1 %2698  ;;  %v7473_v61 = vpop.permute.xlu0 %2700 }
 0x4e2   : > { %8645 = vst [vmem:[#allocation84_spill] sm:$0xff] %v7471_v56  ;;  %8646 = vst [vmem:[#allocation85_spill] sm:$0xff] %v7473_v61 }
 0x4e5   : > { %v7475_v14 = vpop.permute.xlu1 %2702  ;;  %v7477_v11 = vpop.permute.xlu0 %2704 }
 0x4e6   : > { %8647 = vst [vmem:[#allocation86_spill] sm:$0xff] %v7475_v14  ;;  %8648 = vst [vmem:[#allocation87_spill] sm:$0xff] %v7477_v11 }
 0x4e9   : > { %v7479_v62 = vpop.permute.xlu1 %2706  ;;  %v7481_v2 = vpop.permute.xlu0 %2708 }
 0x4ea   : > { %8649 = vst [vmem:[#allocation88_spill] sm:$0xff] %v7479_v62  ;;  %8650 = vst [vmem:[#allocation89_spill] sm:$0xff] %v7481_v2 }
 0x4ed   : > { %v7483_v36 = vpop.permute.xlu1 %2710  ;;  %v7485_v21 = vpop.permute.xlu0 %2712 }
 0x4ee   : > { %8651 = vst [vmem:[#allocation90_spill] sm:$0xff] %v7483_v36  ;;  %8652 = vst [vmem:[#allocation91_spill] sm:$0xff] %v7485_v21 }
 0x4f1   : > { %v7487_v29 = vpop.permute.xlu1 %2714  ;;  %v7489_v33 = vpop.permute.xlu0 %2917 }
 0x4f2   : > { %8653 = vst [vmem:[#allocation92_spill] sm:$0xff] %v7487_v29 }
 0x4f5   : > { %v7491_v3 = vpop.permute.xlu1 %2919  ;;  %v7493_v23 = vpop.permute.xlu0 %2921 }
 0x4f6   : > { %8654 = vst [vmem:[#allocation93_spill] sm:$0xff] %v7493_v23 }
 0x4f9   : > { %v7495_v61 = vpop.permute.xlu1 %2923  ;;  %v7497_v14 = vpop.permute.xlu0 %2925 }
 0x4fa   : > { %8655 = vst [vmem:[#allocation94_spill] sm:$0xff] %v7495_v61  ;;  %8656 = vst [vmem:[#allocation95_spill] sm:$0xff] %v7497_v14 }
 0x4fd   : > { %v7499_v11 = vpop.permute.xlu1 %2927  ;;  %v7501_v62 = vpop.permute.xlu0 %2929 }
 0x4fe   : > { %8657 = vst [vmem:[#allocation96_spill] sm:$0xff] %v7499_v11  ;;  %8658 = vst [vmem:[#allocation97_spill] sm:$0xff] %v7501_v62 }
 0x501   : > { %v7503_v2 = vpop.permute.xlu1 %2931  ;;  %v7505_v36 = vpop.permute.xlu0 %2933 }
 0x502   : > { %8659 = vst [vmem:[#allocation98_spill] sm:$0xff] %v7503_v2  ;;  %8660 = vst [vmem:[#allocation99_spill] sm:$0xff] %v7505_v36 }
 0x505   : > { %v7507_v21 = vpop.permute.xlu1 %2935  ;;  %v7509_v29 = vpop.permute.xlu0 %2937 }
 0x506   : > { %8661 = vst [vmem:[#allocation100_spill] sm:$0xff] %v7507_v21  ;;  %8662 = vst [vmem:[#allocation101_spill] sm:$0xff] %v7509_v29 }
 0x509   : > { %v7511_v17 = vpop.permute.xlu1 %2939  ;;  %v7513_v7 = vpop.permute.xlu0 %2941 }
 0x50a   : > { %8663 = vst [vmem:[#allocation102_spill] sm:$0xff] %v7511_v17  ;;  %8664 = vst [vmem:[#allocation103_spill] sm:$0xff] %v7513_v7 }
 0x50d   : > { %v7515_v9 = vpop.permute.xlu1 %2943  ;;  %v7517_v56 = vpop.permute.xlu0 %2945 }
 0x50e   : > { %8665 = vst [vmem:[#allocation104_spill] sm:$0xff] %v7515_v9  ;;  %8666 = vst [vmem:[#allocation105_spill] sm:$0xff] %v7517_v56 }
 0x511   : > { %v7519_v6 = vpop.permute.xlu1 %2947 }
 0x512   : > { %8667 = vst [vmem:[#allocation106_spill] sm:$0xff] %v7519_v6 }
 0x51e   : > { %v3234_v38 = vpop.permute.xlu0 %3233 }
 0x51f   : > { %v3264_v62 = vmul.f32 %v3234_v38, %v7013_v50  ;;  %v3265_v2 = vmul.f32 %v3234_v38, %v7010_v48  ;;  %v3266_v36 = vmul.f32 %v3234_v38, %v7029_v57 }
 0x521   : > { %v3312_v21 = vrot.slane %v3264_v62, 2  ;;  %v3313_v10 = vrot.slane %v3265_v2, 2  ;;  %v3315_v29 = vrot.slane %v3266_v36, 2 }
 0x522   : > { %v3238_v28 = vpop.permute.xlu1 %3237  ;;  %v3242_v17 = vpop.permute.xlu0 %3241 }
 0x523   : > { %v3267_v7 = vmul.f32 %v3238_v28, %v7026_v22  ;;  %v3268_v9 = vmul.f32 %v3238_v28, %v7042_v63  ;;  %v3269_v56 = vmul.f32 %v3238_v28, %v7039_v55  ;;  %v3270_v6 = vmul.f32 %v3242_v17, %v7055_v25 }
 0x524   : > { %v3271_v39 = vmul.f32 %v3242_v17, %v7052_v1  ;;  %v3272_v11 = vmul.f32 %v3242_v17, %v7071_v16  ;;  %v3316_v38 = vsel %vm3110_vm5, %v3313_v10, %v3315_v29  ;;  %v3314_v62 = vsel %vm3110_vm5, %v3312_v21, %v3313_v10 }
 0x525   : > { %v3317_v36 = vrot.slane %v3267_v7, 2  ;;  %v3318_v2 = vrot.slane %v3268_v9, 2  ;;  %v3320_v14 = vrot.slane %v3269_v56, 2  ;;  %3354 = vrot.lane.b32.xlu1 %v3316_v38, %s5828_s12  ;;  %3352 = vrot.lane.b32.xlu0 %v3314_v62, %s5828_s12  ;;  %v3322_v53 = vrot.slane %v3270_v6, 2 }
 0x526   : > { %v3467_v30 = vpop.permute.xlu1 %3466  ;;  %v3323_v28 = vrot.slane %v3271_v39, 2  ;;  %v3325_v44 = vrot.slane %v3272_v11, 2  ;;  %v3471_v29 = vpop.permute.xlu0 %3470 }
 0x527   : > { %v3497_v31 = vmul.f32 %v3467_v30, %v7013_v50  ;;  %v3498_v61 = vmul.f32 %v3467_v30, %v7010_v48  ;;  %v3499_v17 = vmul.f32 %v3467_v30, %v7029_v57  ;;  %v3321_v10 = vsel %vm3110_vm5, %v3318_v2, %v3320_v14 }
 0x528   : > { %v3319_v21 = vsel %vm3110_vm5, %v3317_v36, %v3318_v2  ;;  %v3500_v7 = vmul.f32 %v3471_v29, %v7026_v22  ;;  %v3501_v39 = vmul.f32 %v3471_v29, %v7042_v63  ;;  %v3502_v11 = vmul.f32 %v3471_v29, %v7039_v55 }
 0x529   : > { %3358 = vrot.lane.b32.xlu1 %v3321_v10, %s5828_s12  ;;  %3356 = vrot.lane.b32.xlu0 %v3319_v21, %s5828_s12  ;;  %v3545_v9 = vrot.slane %v3497_v31, 2  ;;  %v3546_v6 = vrot.slane %v3498_v61, 2  ;;  %v3548_v56 = vrot.slane %v3499_v17, 2  ;;  %v3326_v30 = vsel %vm3110_vm5, %v3323_v28, %v3325_v44 }
 0x52a   : > { %v3246_v38 = vpop.permute.xlu1 %3245  ;;  %v3324_v14 = vsel %vm3110_vm5, %v3322_v53, %v3323_v28  ;;  %v3550_v62 = vrot.slane %v3500_v7, 2  ;;  %v3551_v36 = vrot.slane %v3501_v39, 2  ;;  %v3553_v31 = vrot.slane %v3502_v11, 2  ;;  %v3475_v61 = vpop.permute.xlu0 %3474 }
 0x52b   : > { %v3273_v2 = vmul.f32 %v3246_v38, %v7068_v41  ;;  %v3274_v10 = vmul.f32 %v3246_v38, %v7084_v13  ;;  %v3275_v29 = vmul.f32 %v3246_v38, %v7081_v32  ;;  %v3549_v17 = vsel %vm3110_vm5, %v3546_v6, %v3548_v56 }
 0x52c   : > { %v3547_v44 = vsel %vm3110_vm5, %v3545_v9, %v3546_v6  ;;  %v3503_v28 = vmul.f32 %v3475_v61, %v7055_v25  ;;  %v3504_v21 = vmul.f32 %v3475_v61, %v7052_v1  ;;  %v3505_v7 = vmul.f32 %v3475_v61, %v7071_v16 }
 0x52d   : > { %3362 = vrot.lane.b32.xlu1 %v3326_v30, %s5828_s12  ;;  %3360 = vrot.lane.b32.xlu0 %v3324_v14, %s5828_s12  ;;  %v3327_v53 = vrot.slane %v3273_v2, 2  ;;  %v3328_v39 = vrot.slane %v3274_v10, 2  ;;  %v3330_v11 = vrot.slane %v3275_v29, 2  ;;  %v3554_v38 = vsel %vm3110_vm5, %v3551_v36, %v3553_v31 }
 0x52e   : > { %v3250_v30 = vpop.permute.xlu1 %3249  ;;  %v3552_v56 = vsel %vm3110_vm5, %v3550_v62, %v3551_v36  ;;  %v3555_v9 = vrot.slane %v3503_v28, 2  ;;  %v3556_v6 = vrot.slane %v3504_v21, 2  ;;  %v3558_v14 = vrot.slane %v3505_v7, 2  ;;  %v3479_v10 = vpop.permute.xlu0 %3478 }
 0x52f   : > { %v3276_v2 = vmul.f32 %v3250_v30, %v7099_v5  ;;  %v3278_v61 = vmul.f32 %v3250_v30, %v7117_v47  ;;  %v3331_v29 = vsel %vm3110_vm5, %v3328_v39, %v3330_v11  ;;  %v3329_v31 = vsel %vm3110_vm5, %v3327_v53, %v3328_v39 }
 0x530   : > { %v3506_v36 = vmul.f32 %v3479_v10, %v7068_v41  ;;  %v3508_v28 = vmul.f32 %v3479_v10, %v7081_v32  ;;  %v3557_v11 = vsel %vm3110_vm5, %v3555_v9, %v3556_v6 }
 0x531   : > { %3587 = vrot.lane.b32.xlu1 %v3549_v17, %s5831_s28  ;;  %3585 = vrot.lane.b32.xlu0 %v3547_v44, %s5831_s28  ;;  %v3277_v17 = vmul.f32 %v3250_v30, %v7096_v37  ;;  %v3332_v62 = vrot.slane %v3276_v2, 2  ;;  %v3507_v44 = vmul.f32 %v3479_v10, %v7084_v13  ;;  %v3335_v7 = vrot.slane %v3278_v61, 2 }
 0x532   : > { %v3559_v30 = vsel %vm3110_vm5, %v3556_v6, %v3558_v14  ;;  %v3560_v53 = vrot.slane %v3506_v36, 2 }
 0x533   : > { %v3333_v21 = vrot.slane %v3277_v17, 2  ;;  %v3561_v39 = vrot.slane %v3507_v44, 2  ;;  %v3483_v17 = vpop.permute.xlu0 %3482 }
 0x534   : > { %v3509_v6 = vmul.f32 %v3483_v17, %v7099_v5  ;;  %v3511_v36 = vmul.f32 %v3483_v17, %v7117_v47 }
 0x535   : > { %3591 = vrot.lane.b32.xlu1 %v3554_v38, %s5831_s28  ;;  %3589 = vrot.lane.b32.xlu0 %v3552_v56, %s5831_s28  ;;  %v3254_v38 = vpop.permute.xlu1 %3253  ;;  %v3563_v56 = vrot.slane %v3508_v28, 2  ;;  %v3336_v61 = vsel %vm3110_vm5, %v3333_v21, %v3335_v7  ;;  %v3334_v14 = vsel %vm3110_vm5, %v3332_v62, %v3333_v21  ;;  %v3562_v7 = vsel %vm3110_vm5, %v3560_v53, %v3561_v39 }
 0x536   : > { %v3279_v2 = vmul.f32 %v3254_v38, %v7114_v24  ;;  %v3281_v10 = vmul.f32 %v3254_v38, %v7129_v19  ;;  %v3565_v62 = vrot.slane %v3509_v6, 2 }
 0x538   : > { %v3337_v9 = vrot.slane %v3279_v2, 2  ;;  %v3340_v28 = vrot.slane %v3281_v10, 2 }
 0x539   : > { %3366 = vrot.lane.b32.xlu1 %v3331_v29, %s5828_s12  ;;  %3364 = vrot.lane.b32.xlu0 %v3329_v31, %s5828_s12  ;;  %v3280_v29 = vmul.f32 %v3254_v38, %v7132_v26  ;;  %v3510_v31 = vmul.f32 %v3483_v17, %v7096_v37  ;;  %v3564_v38 = vsel %vm3110_vm5, %v3561_v39, %v3563_v56 }
 0x53b   : > { %v3338_v44 = vrot.slane %v3280_v29, 2  ;;  %v3566_v21 = vrot.slane %v3510_v31, 2  ;;  %v3487_v29 = vpop.permute.xlu0 %3486 }
 0x53c   : > { %v3512_v39 = vmul.f32 %v3487_v29, %v7114_v24  ;;  %v3514_v6 = vmul.f32 %v3487_v29, %v7129_v19 }
 0x53d   : > { %3595 = vrot.lane.b32.xlu1 %v3559_v30, %s5831_s28  ;;  %3593 = vrot.lane.b32.xlu0 %v3557_v11, %s5831_s28  ;;  %v3258_v30 = vpop.permute.xlu1 %3257  ;;  %v3568_v11 = vrot.slane %v3511_v36, 2  ;;  %v3341_v10 = vsel %vm3110_vm5, %v3338_v44, %v3340_v28  ;;  %v3339_v56 = vsel %vm3110_vm5, %v3337_v9, %v3338_v44  ;;  %v3567_v28 = vsel %vm3110_vm5, %v3565_v62, %v3566_v21 }
 0x53e   : > { %v3282_v2 = vmul.f32 %v3258_v30, %v7147_v51  ;;  %v3284_v17 = vmul.f32 %v3258_v30, %v7165_v12  ;;  %v3570_v9 = vrot.slane %v3512_v39, 2 }
 0x540   : > { %v3342_v53 = vrot.slane %v3282_v2, 2  ;;  %v3345_v36 = vrot.slane %v3284_v17, 2 }
 0x541   : > { %3370 = vrot.lane.b32.xlu1 %v3336_v61, %s5828_s12  ;;  %3368 = vrot.lane.b32.xlu0 %v3334_v14, %s5828_s12  ;;  %v3283_v61 = vmul.f32 %v3258_v30, %v7144_v0  ;;  %v3513_v14 = vmul.f32 %v3487_v29, %v7132_v26  ;;  %v3569_v30 = vsel %vm3110_vm5, %v3566_v21, %v3568_v11 }
 0x543   : > { %v3343_v31 = vrot.slane %v3283_v61, 2  ;;  %v3571_v44 = vrot.slane %v3513_v14, 2  ;;  %v3491_v61 = vpop.permute.xlu0 %3490 }
 0x544   : > { %v3515_v21 = vmul.f32 %v3491_v61, %v7147_v51  ;;  %v3517_v39 = vmul.f32 %v3491_v61, %v7165_v12 }
 0x545   : > { %3599 = vrot.lane.b32.xlu1 %v3564_v38, %s5831_s28  ;;  %3597 = vrot.lane.b32.xlu0 %v3562_v7, %s5831_s28  ;;  %v3262_v38 = vpop.permute.xlu1 %3261  ;;  %v3573_v7 = vrot.slane %v3514_v6, 2  ;;  %v3346_v17 = vsel %vm3110_vm5, %v3343_v31, %v3345_v36  ;;  %v3344_v11 = vsel %vm3110_vm5, %v3342_v53, %v3343_v31  ;;  %v3572_v36 = vsel %vm3110_vm5, %v3570_v9, %v3571_v44 }
 0x546   : > { %v3285_v2 = vmul.f32 %v3262_v38, %v7162_v46  ;;  %v3287_v29 = vmul.f32 %v3262_v38, %v7177_v58  ;;  %v3575_v53 = vrot.slane %v3515_v21, 2 }
 0x548   : > { %v3347_v62 = vrot.slane %v3285_v2, 2  ;;  %v3350_v6 = vrot.slane %v3287_v29, 2 }
 0x549   : > { %3374 = vrot.lane.b32.xlu1 %v3341_v10, %s5828_s12  ;;  %3372 = vrot.lane.b32.xlu0 %v3339_v56, %s5828_s12  ;;  %v3286_v10 = vmul.f32 %v3262_v38, %v7180_v27  ;;  %v3516_v56 = vmul.f32 %v3491_v61, %v7144_v0  ;;  %v3574_v38 = vsel %vm3110_vm5, %v3571_v44, %v3573_v7 }
 0x54b   : > { %v3348_v14 = vrot.slane %v3286_v10, 2  ;;  %v3576_v31 = vrot.slane %v3516_v56, 2 }
 0x54d   : > { %3603 = vrot.lane.b32.xlu1 %v3569_v30, %s5831_s28  ;;  %3601 = vrot.lane.b32.xlu0 %v3567_v28, %s5831_s28  ;;  %v3495_v30 = vpop.permute.xlu1 %3494  ;;  %v3578_v28 = vrot.slane %v3517_v39, 2  ;;  %v3351_v10 = vsel %vm3110_vm5, %v3348_v14, %v3350_v6  ;;  %v3349_v29 = vsel %vm3110_vm5, %v3347_v62, %v3348_v14  ;;  %v3577_v21 = vsel %vm3110_vm5, %v3575_v53, %v3576_v31  ;;  %v8668_v62 = vld [vmem:[#allocation49_spill] sm:$0xff] }
 0x54e   : > { %v3518_v2 = vmul.f32 %v3495_v30, %v7162_v46  ;;  %v3520_v61 = vmul.f32 %v3495_v30, %v7177_v58  ;;  %v2394_v14 = vmul.f32 %v8668_v62, %v7013_v50  ;;  %v8669_v6 = vld [vmem:[#allocation33_spill] sm:$0xff] }
 0x54f   : > { %v3579_v9 = vsel %vm3110_vm5, %v3576_v31, %v3578_v28  ;;  %v2395_v28 = vmul.f32 %v8668_v62, %v7010_v48 }
 0x550   : > { %v3580_v44 = vrot.slane %v3518_v2, 2  ;;  %v2396_v2 = vmul.f32 %v8668_v62, %v7029_v57 }
 0x551   : > { %3378 = vrot.lane.b32.xlu1 %v3346_v17, %s5828_s12  ;;  %3376 = vrot.lane.b32.xlu0 %v3344_v11, %s5828_s12  ;;  %v3519_v17 = vmul.f32 %v3495_v30, %v7180_v27  ;;  %v3583_v11 = vrot.slane %v3520_v61, 2  ;;  %v1944_v30 = vmul.f32 %v8669_v6, %v7010_v48 }
 0x553   : > { %v3581_v7 = vrot.slane %v3519_v17, 2  ;;  %v8671_v17 = vld [vmem:[#allocation42_spill] sm:$0xff] }
 0x554   : > { %v2398_v61 = vmul.f32 %v8671_v17, %v7042_v63 }
 0x555   : > { %3607 = vrot.lane.b32.xlu1 %v3574_v38, %s5831_s28  ;;  %3605 = vrot.lane.b32.xlu0 %v3572_v36, %s5831_s28  ;;  %v3584_v56 = vsel %vm3110_vm5, %v3581_v7, %v3583_v11  ;;  %v3582_v39 = vsel %vm3110_vm5, %v3580_v44, %v3581_v7  ;;  %v1943_v38 = vmul.f32 %v8669_v6, %v7013_v50  ;;  %v8670_v36 = vld [vmem:[#allocation29_spill] sm:$0xff]  ;;  %v2443_v44 = vrot.slane %v2394_v14, 1  ;;  %v8673_v11 = vld [vmem:[#allocation30_spill] sm:$0xff]  ;;  %v8677_v14 = vld [vmem:[#allocation35_spill] sm:$0xff] }
 0x556   : > { %v1945_v53 = vmul.f32 %v8670_v36, %v7026_v22  ;;  %v1946_v31 = vmul.f32 %v8670_v36, %v7042_v63  ;;  %v2397_v7 = vmul.f32 %v8671_v17, %v7026_v22  ;;  %v7671_v36 = vmul.f32 %v8673_v11, %v7084_v13 }
 0x557   : > { %v7679_v58 = vmul.f32 %v8677_v14, %v7099_v5  ;;  %v2449_v23 = vrot.slane %v2398_v61, 1  ;;  %v8687_v61 = vld [vmem:[#allocation32_spill] sm:$0xff] }
 0x558   : > { %8676 = vst [vmem:[#allocation33_spill] sm:$0xff] %v7671_v36 }
 0x559   : > { %3382 = vrot.lane.b32.xlu1 %v3351_v10, %s5828_s12  ;;  %3380 = vrot.lane.b32.xlu0 %v3349_v29, %s5828_s12  ;;  %v8672_v10 = vld [vmem:[#allocation34_spill] sm:$0xff]  ;;  %8679 = vst [vmem:[#allocation42_spill] sm:$0xff] %v7679_v58  ;;  %v8685_v58 = vld [vmem:[#allocation44_spill] sm:$0xff]  ;;  %s5832_s12 = smov [#allocation19]  }
 0x55a   : > { %v7651_v29 = vmul.f32 %v8672_v10, %v7052_v1  ;;  %v2404_v43 = vmul.f32 %v8685_v58, %v7084_v13  ;;  %s5729_s27 = sshll.u32 %s5832_s12, 4  ;;  %s5730_s27 = int_to_ptr.vmem [resolvable:$false] %s5729_s27 }
 0x55b   : > { %s5731_s1 = scalar_lea.vmem %s5730_s27, 2048  ;;  %p5732_p6 = scmp.lt.s32.totalorder %s8384_s29, %s5730_s27 }
 0x55d   : > { %3611 = vrot.lane.b32.xlu1 %v3579_v9, %s5831_s28  ;;  %3609 = vrot.lane.b32.xlu0 %v3577_v21, %s5831_s28  ;;  %v7655_v9 = vmul.f32 %v8672_v10, %v7055_v25  ;;  %v7661_v21 = vmul.f32 %v8673_v11, %v7068_v41  ;;  %v7675_v10 = vmul.f32 %v8677_v14, %v7096_v37  ;;  %v2448_v14 = vrot.slane %v2397_v7, 1 }
 0x55e   : > { %v2403_v7 = vmul.f32 %v8685_v58, %v7068_v41 }
 0x55f   : > { %8674 = vst [vmem:[#allocation49_spill] sm:$0xff] %v7661_v21  ;;  %8678 = vst [vmem:[#allocation29_spill] sm:$0xff] %v7675_v10  ;;  %v8680_v21 = vld [vmem:[#allocation31_spill] sm:$0xff]  ;;  %v8683_v10 = vld [vmem:[#allocation36_spill] sm:$0xff] }
 0x560   : > { %v7685_v12 = vmul.f32 %v8680_v21, %v7114_v24  ;;  %v7689_v11 = vmul.f32 %v8680_v21, %v7132_v26  ;;  %v7693_v36 = vmul.f32 %v8683_v10, %v7144_v0  ;;  %v7705_v21 = vmul.f32 %v8687_v61, %v7162_v46 }
 0x561   : > { %3615 = vrot.lane.b32.xlu1 %v3584_v56, %s5831_s28  ;;  %3613 = vrot.lane.b32.xlu0 %v3582_v39, %s5831_s28  ;;  %v2399_v56 = vmul.f32 %v8671_v17, %v7039_v55  ;;  %v8675_v39 = vld [vmem:[#allocation51_spill] sm:$0xff] }
 0x562   : > { %v2400_v62 = vmul.f32 %v8675_v39, %v7055_v25  ;;  %v2401_v6 = vmul.f32 %v8675_v39, %v7052_v1  ;;  %v2402_v17 = vmul.f32 %v8675_v39, %v7071_v16  ;;  %8681 = vst [vmem:[#allocation34_spill] sm:$0xff] %v7685_v12  ;;  %v2444_v25 = vrot.slane %v2395_v28, 1  ;;  %8682 = vst [vmem:[#allocation30_spill] sm:$0xff] %v7689_v11 }
 0x563   : > { %v2446_v1 = vrot.slane %v2396_v2, 1  ;;  %8684 = vst [vmem:[#allocation51_spill] sm:$0xff] %v7693_v36  ;;  %v2451_v39 = vrot.slane %v2399_v56, 1  ;;  %v2405_v28 = vmul.f32 %v8685_v58, %v7081_v32  ;;  %v7701_v2 = vmul.f32 %v8683_v10, %v7147_v51  ;;  %8688 = vst [vmem:[#allocation31_spill] sm:$0xff] %v7705_v21 }
 0x564   : > { %v2453_v16 = vrot.slane %v2400_v62, 1  ;;  %v2454_v15 = vrot.slane %v2401_v6, 1  ;;  %v2456_v11 = vrot.slane %v2402_v17, 1  ;;  %v7711_v56 = vmul.f32 %v8687_v61, %v7180_v27  ;;  %v8689_v17 = vld [vmem:[#allocation53_spill] sm:$0xff] }
 0x565   : > { %8686 = vst [vmem:[#allocation35_spill] sm:$0xff] %v7701_v2  ;;  %v2445_v62 = vsel %vm2442_vm4, %v2443_v44, %v2444_v25  ;;  %v2447_v6 = vsel %vm2442_vm4, %v2444_v25, %v2446_v1  ;;  %v2450_v36 = vsel %vm2442_vm4, %v2448_v14, %v2449_v23  ;;  %v2121_v10 = vadd.f32 %v7371_v34, %v1944_v30 }
 0x566   : > { %v2120_v2 = vadd.f32 %v7357_v20, %v1943_v38  ;;  %v2459_v12 = vrot.slane %v2404_v43, 1  ;;  %v2406_v21 = vmul.f32 %v8689_v17, %v7099_v5  ;;  %v2452_v58 = vsel %vm2442_vm4, %v2449_v23, %v2451_v39  ;;  %v8690_v23 = vld [vmem:[#allocation46_spill] sm:$0xff] }
 0x567   : > { %v7722_v41 = vsel %vm2442_vm4, %v2453_v16, %v2454_v15  ;;  %v2461_v61 = vrot.slane %v2405_v28, 1  ;;  %v2407_v44 = vmul.f32 %v8689_v17, %v7096_v37  ;;  %v2298_v25 = vadd.f32 %v7427_v60, %v2121_v10 }
 0x568   : > { %v2297_v1 = vadd.f32 %v7425_v42, %v2120_v2  ;;  %v7729_v34 = vsel %vm2442_vm4, %v2454_v15, %v2456_v11  ;;  %v2458_v20 = vrot.slane %v2403_v7, 1  ;;  %v2408_v43 = vmul.f32 %v8689_v17, %v7117_v47  ;;  %v8691_v11 = vld [vmem:[#allocation71_spill] sm:$0xff] }
 0x569   : > { %v7735_v30 = vmul.f32 %v8690_v23, %v7114_v24  ;;  %v7739_v16 = vmul.f32 %v8690_v23, %v7132_v26  ;;  %v7743_v42 = vmul.f32 %v8690_v23, %v7129_v19  ;;  %v2122_v60 = vadd.f32 %v7375_v59, %v1945_v53 }
 0x56a   : > { %v7747_v15 = vsel %vm2442_vm4, %v2458_v20, %v2459_v12  ;;  %v2463_v38 = vrot.slane %v2406_v21, 1  ;;  %v3064_v14 = vmul.f32 %v8691_v11, %v7029_v57  ;;  %v7752_v39 = vsel %vm2442_vm4, %v2459_v12, %v2461_v61 }
 0x56b   : > { %v2464_v28 = vrot.slane %v2407_v44, 1  ;;  %v3063_v2 = vmul.f32 %v8691_v11, %v7010_v48  ;;  %v3062_v10 = vmul.f32 %v8691_v11, %v7013_v50  ;;  %v2123_v59 = vadd.f32 %v7383_v35, %v1946_v31  ;;  %v8692_v35 = vld [vmem:[#allocation55_spill] sm:$0xff] }
 0x56c   : > { %v2299_v53 = vadd.f32 %v7429_v4, %v2122_v60  ;;  %v2499_v21 = vadd.f32 %v2445_v62, %v2297_v1  ;;  %v2500_v20 = vadd.f32 %v2447_v6, %v2298_v25  ;;  %v2466_v23 = vrot.slane %v2408_v43, 1  ;;  %v8693_v6 = vld [vmem:[#allocation68_spill] sm:$0xff] }
 0x56d   : > { %v2468_v57 = vrot.slane %v7735_v30, 1  ;;  %v2469_v12 = vrot.slane %v7739_v16, 1  ;;  %v2300_v48 = vadd.f32 %v7431_v54, %v2123_v59  ;;  %v3114_v11 = vrot.slane %v3064_v14, 2 }
 0x56e   : > { %v2732_v44 = vadd.f32 %v7457_v8, %v2499_v21  ;;  %v2733_v50 = vadd.f32 %v7459_v45, %v2500_v20  ;;  %v7768_v31 = vmul.f32 %v8692_v35, %v7147_v51  ;;  %v3112_v4 = vrot.slane %v3063_v2, 2 }
 0x56f   : > { %v3111_v62 = vrot.slane %v3062_v10, 2  ;;  %v3066_v1 = vmul.f32 %v8693_v6, %v7042_v63  ;;  %v2501_v60 = vadd.f32 %v2450_v36, %v2299_v53  ;;  %v7773_v61 = vsel %vm2442_vm4, %v2463_v38, %v2464_v28 }
 0x570   : > { %v2965_v54 = vadd.f32 %v7489_v33, %v2732_v44  ;;  %v2966_v8 = vadd.f32 %v7491_v3, %v2733_v50  ;;  %v2125_v45 = vadd.f32 %v7397_v18, %v7651_v29  ;;  %v2124_v14 = vadd.f32 %v7389_v49, %v7655_v9  ;;  %v8694_v18 = vld [vmem:[#allocation59_spill] sm:$0xff]  ;;  %v8698_v44 = vld [vmem:[#allocation72_spill] sm:$0xff] }
 0x571   : > { %v3067_v2 = vmul.f32 %v8693_v6, %v7039_v55  ;;  %v3065_v63 = vmul.f32 %v8693_v6, %v7026_v22  ;;  %v2734_v36 = vadd.f32 %v7461_v52, %v2501_v60  ;;  %v2502_v38 = vadd.f32 %v2452_v58, %v2300_v48  ;;  %v8695_v22 = vld [vmem:[#allocation63_spill] sm:$0xff]  ;;  %v8696_v52 = vld [vmem:[#allocation93_spill] sm:$0xff] }
 0x572   : > { %v7787_v10 = vsel %vm2442_vm4, %v2464_v28, %v2466_v23  ;;  %v3115_v3 = vsel %vm3110_vm5, %v3112_v4, %v3114_v11  ;;  %v2301_v33 = vadd.f32 %v7433_v40, %v2124_v14  ;;  %v2302_v29 = vadd.f32 %v8694_v18, %v2125_v45  ;;  %v8697_v48 = vld [vmem:[#allocation77_spill] sm:$0xff]  ;;  %v8699_v11 = vld [vmem:[#allocation94_spill] sm:$0xff] }
 0x573   : > { %v3113_v49 = vsel %vm3110_vm5, %v3111_v62, %v3112_v4  ;;  %v3117_v9 = vrot.slane %v3066_v1, 2  ;;  %v2735_v53 = vadd.f32 %v8695_v22, %v2502_v38  ;;  %v2967_v58 = vadd.f32 %v8696_v52, %v2734_v36  ;;  %v8700_v1 = vld [vmem:[#allocation80_spill] sm:$0xff]  ;;  %v8701_v14 = vld [vmem:[#allocation78_spill] sm:$0xff]  ;;  %v8702_v38 = vld [vmem:[#allocation81_spill] sm:$0xff] }
 0x574   : > { %v3168_v21 = vadd.f32 %v3115_v3, %v2966_v8  ;;  %v3167_v28 = vadd.f32 %v3113_v49, %v2965_v54  ;;  %v7801_v20 = vmul.f32 %v8692_v35, %v7144_v0  ;;  %v3119_v40 = vrot.slane %v3067_v2, 2  ;;  %v8703_v49 = vld [vmem:[#allocation69_spill] sm:$0xff] }
 0x575   : > { %v3116_v23 = vrot.slane %v3065_v63, 2  ;;  %v3069_v50 = vmul.f32 %v8698_v44, %v8697_v48  ;;  %v2968_v4 = vadd.f32 %v8699_v11, %v2735_v53  ;;  %v3070_v60 = vmul.f32 %v8698_v44, %v8700_v1  ;;  %v8707_v48 = vld [vmem:[#allocation33_spill] sm:$0xff] }
 0x576   : > { %v2503_v45 = vadd.f32 %v7722_v41, %v2301_v33  ;;  %v2504_v54 = vadd.f32 %v7729_v34, %v2302_v29  ;;  %v3068_v2 = vmul.f32 %v8698_v44, %v8701_v14  ;;  %v7815_v3 = vmul.f32 %v8692_v35, %v8702_v38  ;;  %v8704_v33 = vld [vmem:[#allocation65_spill] sm:$0xff] }
 0x577   : > { %v3118_v8 = vsel %vm3110_vm5, %v3116_v23, %v3117_v9  ;;  %v3120_v29 = vsel %vm3110_vm5, %v3117_v9, %v3119_v40  ;;  %v3122_v22 = vrot.slane %v3069_v50, 2  ;;  %v8708_v44 = vld [vmem:[#allocation37_spill] sm:$0xff]  ;;  %v8709_v40 = vld [vmem:[#allocation95_spill] sm:$0xff]  ;;  %v8710_v50 = vld [vmem:[#allocation96_spill] sm:$0xff] }
 0x578   : > { %v2736_v41 = vadd.f32 %v8703_v49, %v2503_v45  ;;  %v2737_v34 = vadd.f32 %v8704_v33, %v2504_v54  ;;  %v3170_v53 = vadd.f32 %v3120_v29, %v2968_v4  ;;  %v2127_v11 = vadd.f32 %v8708_v44, %v8707_v48 }
 0x57a   : > { %v2970_v4 = vadd.f32 %v8710_v50, %v2737_v34  ;;  %v8715_v34 = vld [vmem:[#allocation48_spill] sm:$0xff] }
 0x597   : > { %v3355_v7 = vpop.permute.xlu1 %3354  ;;  %v3353_v17 = vpop.permute.xlu0 %3352 }
 0x598   : > { %v3401_v62 = vadd.f32 %v3355_v7, %v3168_v21  ;;  %v3400_v6 = vadd.f32 %v3353_v17, %v3167_v28  ;;  %v3169_v7 = vadd.f32 %v3118_v8, %v2967_v58  ;;  %v8705_v58 = vld [vmem:[#allocation49_spill] sm:$0xff]  ;;  %v8711_v8 = vld [vmem:[#allocation52_spill] sm:$0xff] }
 0x599   : > { %v8706_v28 = vld [vmem:[#allocation41_spill] sm:$0xff] }
 0x59a   : > { %v2126_v23 = vadd.f32 %v8706_v28, %v8705_v58 }
 0x59b   : > { %v3359_v25 = vpop.permute.xlu1 %3358  ;;  %v3357_v43 = vpop.permute.xlu0 %3356 }
 0x59c   : > { %v3402_v52 = vadd.f32 %v3357_v43, %v3169_v7  ;;  %v2969_v43 = vadd.f32 %v8709_v40, %v2736_v41  ;;  %v3403_v45 = vadd.f32 %v3359_v25, %v3170_v53  ;;  %v2303_v14 = vadd.f32 %v8711_v8, %v2126_v23  ;;  %v8714_v41 = vld [vmem:[#allocation70_spill] sm:$0xff] }
 0x59d   : > { %v2473_v25 = vrot.slane %v7768_v31, 1  ;;  %v3072_v33 = vmul.f32 %v8714_v41, %v7084_v13  ;;  %v3073_v13 = vmul.f32 %v8714_v41, %v7081_v32  ;;  %v7874_v23 = vmul.f32 %v8715_v34, %v7180_v27 }
 0x59e   : > { %v2505_v58 = vadd.f32 %v7747_v15, %v2303_v14  ;;  %v8719_v15 = vld [vmem:[#allocation38_spill] sm:$0xff] }
 0x59f   : > { %v7793_v59 = vpop.permute.xlu1 %3362  ;;  %v7795_v55 = vpop.permute.xlu0 %3360  ;;  %v3127_v32 = vrot.slane %v3072_v33, 2  ;;  %v8725_v33 = vld [vmem:[#allocation62_spill] sm:$0xff] }
 0x5a3   : > { %v3588_v63 = vpop.permute.xlu1 %3587  ;;  %v3586_v36 = vpop.permute.xlu0 %3585 }
 0x5a4   : > { %v7817_v17 = vadd.f32 %v3588_v63, %v3401_v62  ;;  %v7819_v18 = vadd.f32 %v3586_v36, %v3400_v6  ;;  %v3124_v62 = vrot.slane %v3070_v60, 2  ;;  %v3121_v6 = vrot.slane %v3068_v2, 2  ;;  %v8712_v63 = vld [vmem:[#allocation61_spill] sm:$0xff] }
 0x5a5   : > { %v2304_v36 = vadd.f32 %v8712_v63, %v2127_v11  ;;  %v7843_v60 = vsel %vm2442_vm4, %v2468_v57, %v2469_v12  ;;  %v8713_v2 = vrot.slane %v7743_v42, 1  ;;  %v2474_v57 = vrot.slane %v7801_v20, 1 }
 0x5a6   : > { %v3668_v21 = vsel %vm971_vm0, %v7817_v17, 0.0  ;;  %v3665_v35 = vsel %vm971_vm0, %v7819_v18, 0.0  ;;  %v7862_v42 = vmul.f32 %v8715_v34, %v7162_v46  ;;  %v3125_v16 = vsel %vm3110_vm5, %v3122_v22, %v3124_v62 }
 0x5a7   : > { %v3592_v1 = vpop.permute.xlu1 %3591  ;;  %3669 = vadd.xlane.f32.xlu1 %v3668_v21  ;;  %3666 = vadd.xlane.f32.xlu0 %v3665_v35  ;;  %v3590_v9 = vpop.permute.xlu0 %3589  ;;  %v7850_v7 = vsel %vm2442_vm4, %v2469_v12, %v8713_v2  ;;  %v3123_v12 = vsel %vm3110_vm5, %v3121_v6, %v3122_v22  ;;  %v3172_v53 = vadd.f32 %v3125_v16, %v2970_v4  ;;  %v8716_v21 = vld [vmem:[#allocation79_spill] sm:$0xff]  ;;  %v8717_v22 = vld [vmem:[#allocation82_spill] sm:$0xff]  ;;  %v8718_v6 = vld [vmem:[#allocation29_spill] sm:$0xff] }
 0x5a8   : > { %v7834_v54 = vadd.f32 %v3590_v9, %v3402_v52  ;;  %v7853_v49 = vadd.f32 %v3592_v1, %v3403_v45  ;;  %v3171_v52 = vadd.f32 %v3123_v12, %v2969_v43  ;;  %v3071_v35 = vmul.f32 %v8714_v41, %v8716_v21  ;;  %v8721_v9 = vld [vmem:[#allocation43_spill] sm:$0xff]  ;;  %v8723_v4 = vld [vmem:[#allocation84_spill] sm:$0xff]  ;;  %v8724_v2 = vld [vmem:[#allocation54_spill] sm:$0xff] }
 0x5a9   : > { %v2506_v28 = vadd.f32 %v7752_v39, %v2304_v36  ;;  %v7878_v48 = vmul.f32 %v8715_v34, %v8717_v22  ;;  %v3405_v44 = vadd.f32 %v7793_v59, %v3172_v53  ;;  %v2129_v1 = vadd.f32 %v8719_v15, %v8718_v6  ;;  %v8720_v39 = vld [vmem:[#allocation42_spill] sm:$0xff]  ;;  %v8722_v43 = vld [vmem:[#allocation83_spill] sm:$0xff]  ;;  %v8726_v34 = vld [vmem:[#allocation97_spill] sm:$0xff] }
 0x5aa   : > { %v3671_v30 = vsel %vm971_vm0, %v7834_v54, 0.0  ;;  %v3404_v11 = vadd.f32 %v7795_v55, %v3171_v52  ;;  %v3674_v62 = vsel %vm971_vm0, %v7853_v49, 0.0  ;;  %v2128_v40 = vadd.f32 %v8721_v9, %v8720_v39  ;;  %v8727_v12 = vld [vmem:[#allocation98_spill] sm:$0xff]  ;;  %v8730_v39 = vld [vmem:[#allocation45_spill] sm:$0xff] }
 0x5ab   : > { %v3367_v29 = vpop.permute.xlu1 %3366  ;;  %3672 = vadd.xlane.f32.xlu0 %v3671_v30  ;;  %v3365_v31 = vpop.permute.xlu0 %3364  ;;  %v2738_v50 = vadd.f32 %v8722_v43, %v2505_v58  ;;  %v2739_v45 = vadd.f32 %v8723_v4, %v2506_v28  ;;  %v3129_v59 = vrot.slane %v3073_v13, 2  ;;  %v3126_v63 = vrot.slane %v3071_v35, 2 }
 0x5ac   : > { %v2305_v41 = vadd.f32 %v8724_v2, %v2128_v40  ;;  %v2306_v30 = vadd.f32 %v8725_v33, %v2129_v1  ;;  %v3770_v13 = vmul.f32 %v7817_v17, %v7817_v17  ;;  %v3769_v35 = vmul.f32 %v7819_v18, %v7819_v18  ;;  %v8729_v1 = vld [vmem:[#allocation34_spill] sm:$0xff] }
 0x5ad   : > { %v2971_v16 = vadd.f32 %v8726_v34, %v2738_v50  ;;  %v2972_v53 = vadd.f32 %v8727_v12, %v2739_v45  ;;  %v7909_v58 = vsel %vm2442_vm4, %v2473_v25, %v2474_v57  ;;  %v2476_v28 = vrot.slane %v7815_v3, 1 }
 0x5ae   : > { %v2130_v9 = vadd.f32 %v8730_v39, %v8729_v1  ;;  %v3130_v40 = vsel %vm3110_vm5, %v3127_v32, %v3129_v59  ;;  %v3128_v25 = vsel %vm3110_vm5, %v3126_v63, %v3127_v32  ;;  %v2508_v43 = vadd.f32 %v7787_v10, %v2306_v30  ;;  %v8731_v32 = vld [vmem:[#allocation30_spill] sm:$0xff]  ;;  %v8732_v59 = vld [vmem:[#allocation39_spill] sm:$0xff]  ;;  %v8738_v39 = vld [vmem:[#allocation100_spill] sm:$0xff] }
 0x5af   : > { %v3596_v8 = vpop.permute.xlu1 %3595  ;;  %3675 = vadd.xlane.f32.xlu0 %v3674_v62  ;;  %v3594_v14 = vpop.permute.xlu0 %3593  ;;  %v3173_v50 = vadd.f32 %v3128_v25, %v2971_v16  ;;  %v3788_v4 = vsel %vm971_vm0, %v3770_v13, 0.0  ;;  %v3785_v45 = vsel %vm971_vm0, %v3769_v35, 0.0  ;;  %v2131_v63 = vadd.f32 %v8732_v59, %v8731_v32  ;;  %v8736_v13 = vld [vmem:[#allocation64_spill] sm:$0xff] }
 0x5b0   : > { %v7890_v55 = vadd.f32 %v3596_v8, %v3405_v44  ;;  %v7892_v36 = vadd.f32 %v3594_v14, %v3404_v11  ;;  %v8728_v44 = vld [vmem:[#allocation74_spill] sm:$0xff]  ;;  %v3772_v8 = vmul.f32 %v7853_v49, %v7853_v49  ;;  %v3771_v14 = vmul.f32 %v7834_v54, %v7834_v54 }
 0x5b1   : > { %v3075_v11 = vmul.f32 %v8728_v44, %v7096_v37  ;;  %v3076_v62 = vmul.f32 %v8728_v44, %v7117_v47  ;;  %v3074_v3 = vmul.f32 %v8728_v44, %v7099_v5  ;;  %v2507_v37 = vadd.f32 %v7773_v61, %v2305_v41  ;;  %v8733_v5 = vld [vmem:[#allocation85_spill] sm:$0xff]  ;;  %v8734_v61 = vld [vmem:[#allocation86_spill] sm:$0xff]  ;;  %v8737_v44 = vld [vmem:[#allocation99_spill] sm:$0xff] }
 0x5b2   : > { %v3680_v52 = vsel %vm971_vm0, %v7890_v55, 0.0  ;;  %v3677_v21 = vsel %vm971_vm0, %v7892_v36, 0.0  ;;  %v3174_v47 = vadd.f32 %v3130_v40, %v2972_v53  ;;  %v2741_v41 = vadd.f32 %v8734_v61, %v2508_v43  ;;  %v8742_v61 = vld [vmem:[#allocation35_spill] sm:$0xff] }
 0x5b3   : > { %v7916_v6 = vpop.permute.xlu1 %3370  ;;  %3681 = vadd.xlane.f32.xlu0 %v3680_v52  ;;  %3678 = vadd.xlane.f32.xlu1 %v3677_v21  ;;  %v3369_v15 = vpop.permute.xlu0 %3368  ;;  %v2740_v2 = vadd.f32 %v8733_v5, %v2507_v37  ;;  %v3132_v10 = vrot.slane %v3075_v11, 2  ;;  %v3406_v16 = vadd.f32 %v3365_v31, %v3173_v50  ;;  %v3134_v12 = vrot.slane %v3076_v62, 2  ;;  %v8735_v52 = vld [vmem:[#allocation56_spill] sm:$0xff]  ;;  %v8739_v62 = vld [vmem:[#allocation73_spill] sm:$0xff] }
 0x5b4   : > { %v3407_v34 = vadd.f32 %v3367_v29, %v3174_v47  ;;  %v3131_v53 = vrot.slane %v3074_v3, 2  ;;  %v2307_v21 = vadd.f32 %v8735_v52, %v2130_v9  ;;  %v2308_v35 = vadd.f32 %v8736_v13, %v2131_v63  ;;  %v8746_v13 = vld [vmem:[#allocation58_spill] sm:$0xff] }
 0x5b5   : > { %v2973_v1 = vadd.f32 %v8737_v44, %v2740_v2  ;;  %v2974_v40 = vadd.f32 %v8738_v39, %v2741_v41  ;;  %v3794_v11 = vsel %vm971_vm0, %v3772_v8, 0.0  ;;  %v3791_v43 = vsel %vm971_vm0, %v3771_v14, 0.0  ;;  %v8747_v44 = vld [vmem:[#allocation66_spill] sm:$0xff]  ;;  %v8748_v39 = vld [vmem:[#allocation101_spill] sm:$0xff] }
 0x5b6   : > { %v2477_v29 = vsel %vm2442_vm4, %v2474_v57, %v2476_v28  ;;  %v2478_v31 = vrot.slane %v7862_v42, 1  ;;  %v3078_v9 = vmul.f32 %v8739_v62, %v7132_v26  ;;  %v3079_v3 = vmul.f32 %v8739_v62, %v7129_v19 }
 0x5b7   : > { %v3600_v33 = vpop.permute.xlu1 %3599  ;;  %3789 = vadd.xlane.f32.xlu0 %v3788_v4  ;;  %3786 = vadd.xlane.f32.xlu1 %v3785_v45  ;;  %v3598_v30 = vpop.permute.xlu0 %3597  ;;  %v8740_v4 = vld [vmem:[#allocation51_spill] sm:$0xff]  ;;  %v8741_v45 = vld [vmem:[#allocation57_spill] sm:$0xff]  ;;  %v3135_v20 = vsel %vm3110_vm5, %v3132_v10, %v3134_v12  ;;  %v3133_v57 = vsel %vm3110_vm5, %v3131_v53, %v3132_v10  ;;  %v3077_v28 = vmul.f32 %v8739_v62, %v7114_v24 }
 0x5b8   : > { %v7940_v25 = vadd.f32 %v3600_v33, %v3407_v34  ;;  %v7942_v37 = vadd.f32 %v3598_v30, %v3406_v16  ;;  %v2133_v8 = vadd.f32 %v8741_v45, %v8740_v4  ;;  %v2509_v26 = vadd.f32 %v7843_v60, %v2307_v21  ;;  %v8743_v24 = vld [vmem:[#allocation47_spill] sm:$0xff] }
 0x5b9   : > { %v2510_v14 = vadd.f32 %v7850_v7, %v2308_v35  ;;  %v3176_v19 = vadd.f32 %v3135_v20, %v2974_v40  ;;  %v3175_v32 = vadd.f32 %v3133_v57, %v2973_v1  ;;  %v3774_v5 = vmul.f32 %v7890_v55, %v7890_v55  ;;  %v8744_v60 = vld [vmem:[#allocation87_spill] sm:$0xff]  ;;  %v8745_v7 = vld [vmem:[#allocation88_spill] sm:$0xff] }
 0x5ba   : > { %v3686_v59 = vsel %vm971_vm0, %v7940_v25, 0.0  ;;  %v3683_v63 = vsel %vm971_vm0, %v7942_v37, 0.0  ;;  %v3773_v2 = vmul.f32 %v7892_v36, %v7892_v36  ;;  %v2132_v41 = vadd.f32 %v8743_v24, %v8742_v61 }
 0x5bb   : > { %v7954_v47 = vpop.permute.xlu1 %3374  ;;  %3795 = vadd.xlane.f32.xlu0 %v3794_v11  ;;  %3792 = vadd.xlane.f32.xlu1 %v3791_v43  ;;  %v3373_v50 = vpop.permute.xlu0 %3372  ;;  %v2742_v10 = vadd.f32 %v8744_v60, %v2509_v26  ;;  %v2743_v33 = vadd.f32 %v8745_v7, %v2510_v14  ;;  %v3137_v30 = vrot.slane %v3078_v9, 2  ;;  %v3409_v12 = vadd.f32 %v7916_v6, %v3176_v19  ;;  %v8749_v11 = vld [vmem:[#allocation102_spill] sm:$0xff]  ;;  %v8751_v26 = vld [vmem:[#allocation31_spill] sm:$0xff]  ;;  %v8752_v14 = vld [vmem:[#allocation40_spill] sm:$0xff] }
 0x5bc   : > { %v3408_v53 = vadd.f32 %v3369_v15, %v3175_v32  ;;  %v3139_v52 = vrot.slane %v3079_v3, 2  ;;  %v3136_v21 = vrot.slane %v3077_v28, 2  ;;  %v2309_v35 = vadd.f32 %v8746_v13, %v2132_v41  ;;  %v8750_v3 = vld [vmem:[#allocation76_spill] sm:$0xff]  ;;  %v8753_v41 = vld [vmem:[#allocation50_spill] sm:$0xff]  ;;  %v8754_v60 = vld [vmem:[#allocation89_spill] sm:$0xff] }
 0x5bd   : > { %v2310_v1 = vadd.f32 %v8747_v44, %v2133_v8  ;;  %v2975_v40 = vadd.f32 %v8748_v39, %v2742_v10  ;;  %v2976_v43 = vadd.f32 %v8749_v11, %v2743_v33  ;;  %v3800_v4 = vsel %vm971_vm0, %v3774_v5, 0.0  ;;  %v8757_v13 = vld [vmem:[#allocation67_spill] sm:$0xff] }
 0x5be   : > { %v3797_v45 = vsel %vm971_vm0, %v3773_v2, 0.0  ;;  %v2479_v6 = vrot.slane %v7874_v23, 1  ;;  %v2481_v15 = vrot.slane %v7878_v48, 1  ;;  %v3081_v20 = vmul.f32 %v8750_v3, %v7144_v0  ;;  %v8758_v44 = vld [vmem:[#allocation103_spill] sm:$0xff] }
 0x5bf   : > { %v3604_v34 = vpop.permute.xlu1 %3603  ;;  %3687 = vadd.xlane.f32.xlu0 %v3686_v59  ;;  %3684 = vadd.xlane.f32.xlu1 %v3683_v63  ;;  %v3602_v16 = vpop.permute.xlu0 %3601  ;;  %v3082_v8 = vmul.f32 %v8750_v3, %v8702_v38  ;;  %v2134_v19 = vadd.f32 %v8752_v14, %v8751_v26  ;;  %v3140_v32 = vsel %vm3110_vm5, %v3137_v30, %v3139_v52  ;;  %v8756_v52 = vld [vmem:[#allocation60_spill] sm:$0xff] }
 0x5c0   : > { %v7981_v62 = vadd.f32 %v3604_v34, %v3409_v12  ;;  %v7983_v9 = vadd.f32 %v3602_v16, %v3408_v53  ;;  %v3138_v59 = vsel %vm3110_vm5, %v3136_v21, %v3137_v30  ;;  %v3080_v23 = vmul.f32 %v8750_v3, %v7147_v51 }
 0x5c1   : > { %v2511_v48 = vadd.f32 %v7909_v58, %v2309_v35  ;;  %v2512_v0 = vadd.f32 %v2477_v29, %v2310_v1  ;;  %v3178_v63 = vadd.f32 %v3140_v32, %v2976_v43  ;;  %v3177_v5 = vadd.f32 %v3138_v59, %v2975_v40  ;;  %v8755_v29 = vld [vmem:[#allocation90_spill] sm:$0xff]  ;;  %v8759_v1 = vld [vmem:[#allocation104_spill] sm:$0xff] }
 0x5c2   : > { %v3692_v38 = vsel %vm971_vm0, %v7981_v62, 0.0  ;;  %v3689_v2 = vsel %vm971_vm0, %v7983_v9, 0.0  ;;  %v3776_v61 = vmul.f32 %v7940_v25, %v7940_v25  ;;  %v3775_v24 = vmul.f32 %v7942_v37, %v7942_v37 }
 0x5c3   : > { %v3379_v57 = vpop.permute.xlu1 %3378  ;;  %3801 = vadd.xlane.f32.xlu0 %v3800_v4  ;;  %3798 = vadd.xlane.f32.xlu1 %v3797_v45  ;;  %v3377_v28 = vpop.permute.xlu0 %3376  ;;  %v2135_v51 = vadd.f32 %v8753_v41, %v7711_v56  ;;  %v2744_v58 = vadd.f32 %v8754_v60, %v2511_v48  ;;  %v2745_v10 = vadd.f32 %v8755_v29, %v2512_v0  ;;  %v3142_v7 = vrot.slane %v3081_v20, 2  ;;  %v8760_v45 = vld [vmem:[#allocation75_spill] sm:$0xff] }
 0x5c4   : > { %v3411_v34 = vadd.f32 %v7954_v47, %v3178_v63  ;;  %v3410_v16 = vadd.f32 %v3373_v50, %v3177_v5  ;;  %v3144_v12 = vrot.slane %v3082_v8, 2  ;;  %v3141_v53 = vrot.slane %v3080_v23, 2  ;;  %v8762_v63 = vld [vmem:[#allocation92_spill] sm:$0xff] }
 0x5c5   : > { %v2311_v21 = vadd.f32 %v8756_v52, %v2134_v19  ;;  %v2312_v35 = vadd.f32 %v8757_v13, %v2135_v51  ;;  %v2977_v56 = vadd.f32 %v8758_v44, %v2744_v58  ;;  %v2978_v39 = vadd.f32 %v8759_v1, %v2745_v10  ;;  %v8763_v51 = vld [vmem:[#allocation105_spill] sm:$0xff]  ;;  %v8764_v58 = vld [vmem:[#allocation106_spill] sm:$0xff] }
 0x5c6   : > { %v3806_v43 = vsel %vm971_vm0, %v3776_v61, 0.0  ;;  %v3803_v4 = vsel %vm971_vm0, %v3775_v24, 0.0  ;;  %v2480_v47 = vsel %vm2442_vm4, %v2478_v31, %v2479_v6  ;;  %v2482_v50 = vsel %vm2442_vm4, %v2479_v6, %v2481_v15 }
 0x5c7   : > { %v3608_v33 = vpop.permute.xlu1 %3607  ;;  %3693 = vadd.xlane.f32.xlu0 %v3692_v38  ;;  %3690 = vadd.xlane.f32.xlu1 %v3689_v2  ;;  %v3606_v30 = vpop.permute.xlu0 %3605  ;;  %v3084_v3 = vmul.f32 %v8760_v45, %v7180_v27  ;;  %v3145_v26 = vsel %vm3110_vm5, %v3142_v7, %v3144_v12  ;;  %v3143_v14 = vsel %vm3110_vm5, %v3141_v53, %v3142_v7 }
 0x5c8   : > { %v8017_v40 = vadd.f32 %v3608_v33, %v3411_v34  ;;  %v8019_v11 = vadd.f32 %v3606_v30, %v3410_v16  ;;  %v3085_v19 = vmul.f32 %v8760_v45, %v8717_v22  ;;  %v3083_v42 = vmul.f32 %v8760_v45, %v7162_v46  ;;  %v8761_v22 = vld [vmem:[#allocation91_spill] sm:$0xff] }
 0x5c9   : > { %v2513_v31 = vadd.f32 %v2480_v47, %v2311_v21  ;;  %v2514_v32 = vadd.f32 %v2482_v50, %v2312_v35  ;;  %v3180_v6 = vadd.f32 %v3145_v26, %v2978_v39  ;;  %v3179_v15 = vadd.f32 %v3143_v14, %v2977_v56 }
 0x5ca   : > { %v3698_v27 = vsel %vm971_vm0, %v8017_v40, 0.0  ;;  %v3695_v59 = vsel %vm971_vm0, %v8019_v11, 0.0  ;;  %v3778_v23 = vmul.f32 %v7981_v62, %v7981_v62  ;;  %v3777_v48 = vmul.f32 %v7983_v9, %v7983_v9 }
 0x5cb   : > { %v3383_v20 = vpop.permute.xlu1 %3382  ;;  %3807 = vadd.xlane.f32.xlu0 %v3806_v43  ;;  %3804 = vadd.xlane.f32.xlu1 %v3803_v4  ;;  %v3381_v8 = vpop.permute.xlu0 %3380  ;;  %v2746_v0 = vadd.f32 %v8761_v22, %v2513_v31  ;;  %v2747_v46 = vadd.f32 %v8762_v63, %v2514_v32  ;;  %v3413_v2 = vadd.f32 %v3379_v57, %v3180_v6  ;;  %v3147_v24 = vrot.slane %v3084_v3, 2  ;;  %v5202_v32 = vld [vmem:[#allocation13] ss:$0 sm:$0xff]  ;;  %v5204_v6 = vld [vmem:[#allocation13 + $0x2] ss:$0 sm:$0xff] }
 0x5cc   : > { %v3412_v61 = vadd.f32 %v3377_v28, %v3179_v15  ;;  %v3149_v41 = vrot.slane %v3085_v19, 2  ;;  %v3146_v10 = vrot.slane %v3083_v42, 2  ;;  %v3812_v30 = vsel %vm971_vm0, %v3778_v23, 0.0  ;;  %v5203_v15 = vld [vmem:[#allocation13 + $0x1] ss:$0 sm:$0xff] }
 0x5cd   : > { %v2979_v60 = vadd.f32 %v8763_v51, %v2746_v0  ;;  %v2980_v29 = vadd.f32 %v8764_v58, %v2747_v46  ;;  %v3809_v34 = vsel %vm971_vm0, %v3777_v48, 0.0  ;;  %v3780_v21 = vmul.f32 %v8017_v40, %v8017_v40  ;;  %v5212_v23 = vld [vmem:[#allocation14 + $0x2] ss:$0 sm:$0xff]  ;;  %v5206_v48 = vld [vmem:[#allocation13 + $0x4] ss:$0 sm:$0xff] }
 0x5ce   : > { %v3150_v57 = vsel %vm3110_vm5, %v3147_v24, %v3149_v41  ;;  %v3148_v28 = vsel %vm3110_vm5, %v3146_v10, %v3147_v24  ;;  %v3779_v13 = vmul.f32 %v8019_v11, %v8019_v11  ;;  %v5214_v22 = vld [vmem:[#allocation14 + $0x4] ss:$0 sm:$0xff]  ;;  %v5211_v0 = vld [vmem:[#allocation14 + $0x1] ss:$0 sm:$0xff]  ;;  %v5216_v63 = vld [vmem:[#allocation14 + $0x6] ss:$0 sm:$0xff] }
 0x5cf   : > { %v3612_v5 = vpop.permute.xlu1 %3611  ;;  %3699 = vadd.xlane.f32.xlu0 %v3698_v27  ;;  %3696 = vadd.xlane.f32.xlu1 %v3695_v59  ;;  %v3610_v38 = vpop.permute.xlu0 %3609  ;;  %v3182_v16 = vadd.f32 %v3150_v57, %v2980_v29  ;;  %v3181_v12 = vadd.f32 %v3148_v28, %v2979_v60  ;;  %v3818_v4 = vsel %vm971_vm0, %v3780_v21, 0.0  ;;  %v5210_v27 = vld [vmem:[#allocation14] ss:$0 sm:$0xff]  ;;  %v5205_v59 = vld [vmem:[#allocation13 + $0x3] ss:$0 sm:$0xff] }
 0x5d0   : > { %v8047_v7 = vadd.f32 %v3612_v5, %v3413_v2  ;;  %v8049_v33 = vadd.f32 %v3610_v38, %v3412_v61  ;;  %v3815_v47 = vsel %vm971_vm0, %v3779_v13, 0.0  ;;  %v5213_v46 = vld [vmem:[#allocation14 + $0x3] ss:$0 sm:$0xff]  ;;  %v5218_v5 = vld [vmem:[#allocation14 + $0x8] ss:$0 sm:$0xff] }
 0x5d1   : > { %v3415_v56 = vadd.f32 %v3383_v20, %v3182_v16  ;;  %v3414_v1 = vadd.f32 %v3381_v8, %v3181_v12  ;;  %v5215_v38 = vld [vmem:[#allocation14 + $0x5] ss:$0 sm:$0xff]  ;;  %v5220_v2 = vld [vmem:[#allocation14 + $0xa] ss:$0 sm:$0xff]  ;;  %v5217_v61 = vld [vmem:[#allocation14 + $0x7] ss:$0 sm:$0xff] }
 0x5d2   : > { %v3704_v53 = vsel %vm971_vm0, %v8047_v7, 0.0  ;;  %v3701_v52 = vsel %vm971_vm0, %v8049_v33, 0.0  ;;  %v3782_v3 = vmul.f32 %v8047_v7, %v8047_v7  ;;  %v3781_v20 = vmul.f32 %v8049_v33, %v8049_v33  ;;  %v5222_v24 = vld [vmem:[#allocation14 + $0xc] ss:$0 sm:$0xff]  ;;  %v5207_v41 = vld [vmem:[#allocation13 + $0x5] ss:$0 sm:$0xff] }
 0x5d3   : > { %3813 = vadd.xlane.f32.xlu0 %v3812_v30  ;;  %3810 = vadd.xlane.f32.xlu1 %v3809_v34  ;;  %v3616_v35 = vpop.permute.xlu1 %3615  ;;  %v3614_v44 = vpop.permute.xlu0 %3613  ;;  %v5224_v51 = vld [vmem:[#allocation14 + $0xe] ss:$0 sm:$0xff]  ;;  %v5219_v60 = vld [vmem:[#allocation14 + $0x9] ss:$0 sm:$0xff]  ;;  %v5209_v58 = vld [vmem:[#allocation13 + $0x7] ss:$0 sm:$0xff] }
 0x5d4   : > { %v8063_v39 = vadd.f32 %v3616_v35, %v3415_v56  ;;  %v8065_v43 = vadd.f32 %v3614_v44, %v3414_v1  ;;  %v3824_v8 = vsel %vm971_vm0, %v3782_v3, 0.0  ;;  %v3821_v26 = vsel %vm971_vm0, %v3781_v20, 0.0  ;;  %v5221_v29 = vld [vmem:[#allocation14 + $0xb] ss:$0 sm:$0xff]  ;;  %v5227_v10 = vld [vmem:[#allocation14 + $0x11] ss:$0 sm:$0xff] }
 0x5d5   : > { %v5208_v30 = vld [vmem:[#allocation13 + $0x6] ss:$0 sm:$0xff]  ;;  %v5229_v34 = vld [vmem:[#allocation14 + $0x13] ss:$0 sm:$0xff]  ;;  %v5223_v57 = vld [vmem:[#allocation14 + $0xd] ss:$0 sm:$0xff] }
 0x5d6   : > { %8765 = vst [vmem:[#allocation36_spill] sm:$0xff] %v8063_v39  ;;  %8766 = vst [vmem:[#allocation44_spill] sm:$0xff] %v8065_v43  ;;  %v3710_v50 = vsel %vm971_vm0, %v8063_v39, 0.0  ;;  %v3707_v45 = vsel %vm971_vm0, %v8065_v43, 0.0  ;;  %v3784_v14 = vmul.f32 %v8063_v39, %v8063_v39  ;;  %v3783_v19 = vmul.f32 %v8065_v43, %v8065_v43  ;;  %v5231_v28 = vld [vmem:[#allocation14 + $0x15] ss:$0 sm:$0xff] }
 0x5d7   : > { %3705 = vadd.xlane.f32.xlu0 %v3704_v53  ;;  %3702 = vadd.xlane.f32.xlu1 %v3701_v52  ;;  %v5225_v16 = vld [vmem:[#allocation14 + $0xf] ss:$0 sm:$0xff]  ;;  %v5233_v12 = vld [vmem:[#allocation14 + $0x17] ss:$0 sm:$0xff]  ;;  %v5226_v53 = vld [vmem:[#allocation14 + $0x10] ss:$0 sm:$0xff] }
 0x5d8   : > { %v3830_v42 = vsel %vm971_vm0, %v3784_v14, 0.0  ;;  %v3827_v31 = vsel %vm971_vm0, %v3783_v19, 0.0  ;;  %v5228_v52 = vld [vmem:[#allocation14 + $0x12] ss:$0 sm:$0xff]  ;;  %v5230_v44 = vld [vmem:[#allocation14 + $0x14] ss:$0 sm:$0xff] }
 0x5db   : > { %3819 = vadd.xlane.f32.xlu0 %v3818_v4  ;;  %3816 = vadd.xlane.f32.xlu1 %v3815_v47  ;;  %v5232_v4 = vld [vmem:[#allocation14 + $0x16] ss:$0 sm:$0xff] }
 0x5df   : > { %3711 = vadd.xlane.f32.xlu0 %v3710_v50  ;;  %3708 = vadd.xlane.f32.xlu1 %v3707_v45 }
 0x5e3   : > { %3825 = vadd.xlane.f32.xlu0 %v3824_v8  ;;  %3822 = vadd.xlane.f32.xlu1 %v3821_v26 }
 0x5e7   : > { %3831 = vadd.xlane.f32.xlu0 %v3830_v42  ;;  %3828 = vadd.xlane.f32.xlu1 %v3827_v31 }
 0x5f8   : > { %4090 = vperm.xlu1 %5402, %v5202_v32  }
 0x5fc   : > { %4098 = vperm.xlu1 %5402, %v5204_v6  }
 0x5fd   : > { %4094 = vperm.xlu0 %5401, %v5203_v15  }
 0x600   : > { %4194 = vperm.xlu1 %5402, %v5210_v27  }
 0x601   : > { %4102 = vperm.xlu0 %5401, %v5205_v59  }
 0x604   : > { %4202 = vperm.xlu1 %5402, %v5212_v23  }
 0x605   : > { %4106 = vperm.xlu0 %5401, %v5206_v48  }
 0x608   : > { %4243 = vperm.xlu1 %5402, %v5214_v22  }
 0x609   : > { %4198 = vperm.xlu0 %5401, %v5211_v0  }
 0x60c   : > { %4251 = vperm.xlu1 %5402, %v5216_v63  }
 0x60d   : > { %4206 = vperm.xlu0 %5401, %v5213_v46  }
 0x610   : > { %4300 = vperm.xlu1 %5402, %v5218_v5  }
 0x611   : > { %4247 = vperm.xlu0 %5401, %v5215_v38  }
 0x614   : > { %4308 = vperm.xlu1 %5402, %v5220_v2  }
 0x615   : > { %4255 = vperm.xlu0 %5401, %v5217_v61  }
 0x618   : > { %4357 = vperm.xlu1 %5402, %v5222_v24  }
 0x619   : > { %4110 = vperm.xlu0 %5401, %v5207_v41  }
 0x61c   : > { %4365 = vperm.xlu1 %5402, %v5224_v51  }
 0x61d   : > { %4304 = vperm.xlu0 %5401, %v5219_v60  }
 0x620   : > { %4118 = vperm.xlu1 %5402, %v5209_v58  }
 0x621   : > { %4312 = vperm.xlu0 %5401, %v5221_v29  }
 0x624   : > { %4418 = vperm.xlu1 %5402, %v5227_v10  }
 0x625   : > { %4114 = vperm.xlu0 %5401, %v5208_v30  }
 0x628   : > { %4426 = vperm.xlu1 %5402, %v5229_v34  }
 0x629   : > { %4361 = vperm.xlu0 %5401, %v5223_v57  }
 0x62c   : > { %4475 = vperm.xlu1 %5402, %v5231_v28  }
 0x62d   : > { %4369 = vperm.xlu0 %5401, %v5225_v16  }
 0x630   : > { %4483 = vperm.xlu1 %5402, %v5233_v12  }
 0x631   : > { %4414 = vperm.xlu0 %5401, %v5226_v53  }
 0x634   : > { %v3670_v21 = vpop.xlane.xlu1 %3669  ;;  %v3667_v13 = vpop.xlane.xlu0 %3666 }
 0x635   : > { %v3713_v35 = vadd.f32 %v3670_v21, %v3667_v13  ;;  %4422 = vperm.xlu0 %5401, %v5228_v52  }
 0x637   : > { %v3714_v56 = vrot.slane %v3713_v35, 4 }
 0x638   : > { %v3673_v1 = vpop.xlane.xlu0 %3672 }
 0x639   : > { %4471 = vperm.xlu0 %5401, %v5230_v44   ;;  %v3715_v47 = vadd.f32 %v3714_v56, %v3713_v35 }
 0x63b   : > { %v3716_v3 = vrot.slane %v3715_v47, 2 }
 0x63c   : > { %v3676_v50 = vpop.xlane.xlu0 %3675 }
 0x63d   : > { %v3720_v45 = vadd.f32 %v3676_v50, %v3673_v1  ;;  %4479 = vperm.xlu0 %5401, %v5232_v4   ;;  %v3717_v42 = vadd.f32 %v3716_v3, %v3715_v47 }
 0x63f   : > { %v3721_v20 = vrot.slane %v3720_v45, 4  ;;  %v3718_v48 = vrot.slane %v3717_v42, 1 }
 0x640   : > { %v3679_v8 = vpop.xlane.xlu1 %3678  ;;  %v3682_v26 = vpop.xlane.xlu0 %3681 }
 0x641   : > { %v3722_v14 = vadd.f32 %v3721_v20, %v3720_v45  ;;  %v3727_v19 = vadd.f32 %v3682_v26, %v3679_v8  ;;  %v3719_v61 = vadd.f32 %v3718_v48, %v3717_v42 }
 0x643   : > { %v3723_v31 = vrot.slane %v3722_v14, 2  ;;  %v3728_v32 = vrot.slane %v3727_v19, 4  ;;  %v8085_v57 = vmul.f32 0.00390625, %v3719_v61 }
 0x644   : > { %v3787_v6 = vpop.xlane.xlu1 %3786  ;;  %v3790_v15 = vpop.xlane.xlu0 %3789 }
 0x645   : > { %v3833_v27 = vadd.f32 %v3790_v15, %v3787_v6  ;;  %v3724_v59 = vadd.f32 %v3723_v31, %v3722_v14  ;;  %v3729_v23 = vadd.f32 %v3728_v32, %v3727_v19  ;;  %v3905_v4 = vmul.f32 %v8085_v57, %v8085_v57 }
 0x647   : > { %v3834_v22 = vrot.slane %v3833_v27, 4  ;;  %v3725_v38 = vrot.slane %v3724_v59, 1  ;;  %v3730_v2 = vrot.slane %v3729_v23, 2 }
 0x648   : > { %v3793_v0 = vpop.xlane.xlu1 %3792  ;;  %v3796_v63 = vpop.xlane.xlu0 %3795 }
 0x649   : > { %v3835_v46 = vadd.f32 %v3834_v22, %v3833_v27  ;;  %v3840_v5 = vadd.f32 %v3796_v63, %v3793_v0  ;;  %v3726_v10 = vadd.f32 %v3725_v38, %v3724_v59  ;;  %v3731_v30 = vadd.f32 %v3730_v2, %v3729_v23 }
 0x64b   : > { %v3836_v24 = vrot.slane %v3835_v46, 2  ;;  %v3841_v41 = vrot.slane %v3840_v5, 4  ;;  %v8087_v44 = vmul.f32 0.00390625, %v3726_v10  ;;  %v3732_v56 = vrot.slane %v3731_v30, 1 }
 0x64c   : > { %v3685_v51 = vpop.xlane.xlu1 %3684  ;;  %v3688_v60 = vpop.xlane.xlu0 %3687 }
 0x64d   : > { %v3837_v58 = vadd.f32 %v3836_v24, %v3835_v46  ;;  %v3842_v29 = vadd.f32 %v3841_v41, %v3840_v5  ;;  %v3734_v34 = vadd.f32 %v3688_v60, %v3685_v51  ;;  %v3733_v31 = vadd.f32 %v3732_v56, %v3731_v30 }
 0x64e   : > { %v3906_v32 = vmul.f32 %v8087_v44, %v8087_v44 }
 0x64f   : > { %v3838_v28 = vrot.slane %v3837_v58, 1  ;;  %v3843_v16 = vrot.slane %v3842_v29, 2  ;;  %v3735_v12 = vrot.slane %v3734_v34, 4  ;;  %v8093_v38 = vmul.f32 0.00390625, %v3733_v31 }
 0x650   : > { %v3799_v53 = vpop.xlane.xlu1 %3798  ;;  %v3802_v52 = vpop.xlane.xlu0 %3801 }
 0x651   : > { %v3839_v21 = vadd.f32 %v3838_v28, %v3837_v58  ;;  %v3844_v13 = vadd.f32 %v3843_v16, %v3842_v29  ;;  %v3847_v35 = vadd.f32 %v3802_v52, %v3799_v53  ;;  %v3736_v1 = vadd.f32 %v3735_v12, %v3734_v34 }
 0x652   : > { %v3907_v34 = vmul.f32 %v8093_v38, %v8093_v38 }
 0x653   : > { %v3897_v47 = vmul.f32 0.00390625, %v3839_v21  ;;  %v3845_v50 = vrot.slane %v3844_v13, 1  ;;  %v3848_v45 = vrot.slane %v3847_v35, 4  ;;  %v3737_v3 = vrot.slane %v3736_v1, 2 }
 0x654   : > { %v3691_v20 = vpop.xlane.xlu1 %3690  ;;  %v3694_v8 = vpop.xlane.xlu0 %3693 }
 0x655   : > { %v3913_v26 = vsub.f32 %v3897_v47, %v3905_v4  ;;  %v3846_v14 = vadd.f32 %v3845_v50, %v3844_v13  ;;  %v3849_v19 = vadd.f32 %v3848_v45, %v3847_v35  ;;  %v3741_v42 = vadd.f32 %v3694_v8, %v3691_v20  ;;  %v3649_v4 = vld [vmem:[#allocation11] sm:$0x1] }
 0x656   : > { %v3738_v23 = vadd.f32 %v3737_v3, %v3736_v1 }
 0x657   : > { %v3921_v6 = vadd.f32 1e-05, %v3913_v26  ;;  %v3898_v15 = vmul.f32 0.00390625, %v3846_v14  ;;  %v3850_v27 = vrot.slane %v3849_v19, 2  ;;  %v3742_v59 = vrot.slane %v3741_v42, 4 }
 0x658   : > { %v3805_v48 = vpop.xlane.xlu1 %3804  ;;  %v3808_v22 = vpop.xlane.xlu0 %3807  ;;  %v3739_v41 = vrot.slane %v3738_v23, 1 }
 0x659   : > { %5419 = vrsqrt.f32 %v3921_v6  ;;  %v3914_v0 = vsub.f32 %v3898_v15, %v3906_v32  ;;  %v3851_v63 = vadd.f32 %v3850_v27, %v3849_v19  ;;  %v3743_v46 = vadd.f32 %v3742_v59, %v3741_v42  ;;  %v3650_v6 = vld [vmem:[#allocation11 + $0x1] sm:$0x1] }
 0x65a   : > { %v3854_v5 = vadd.f32 %v3808_v22, %v3805_v48  ;;  %v3740_v53 = vadd.f32 %v3739_v41, %v3738_v23  ;;  %v8767_v23 = vld [vmem:[#allocation28_spill] sm:$0xff] }
 0x65b   : > { %v3922_v2 = vadd.f32 1e-05, %v3914_v0  ;;  %v3852_v61 = vrot.slane %v3851_v63, 1  ;;  %v3744_v24 = vrot.slane %v3743_v46, 2 }
 0x65c   : > { %v3855_v51 = vrot.slane %v3854_v5, 4  ;;  %v3697_v60 = vpop.xlane.xlu1 %3696  ;;  %v3700_v58 = vpop.xlane.xlu0 %3699  ;;  %v8097_v26 = vmul.f32 0.00390625, %v3740_v53 }
 0x65d   : > { %5421 = vrsqrt.f32 %v3922_v2  ;;  %v3853_v29 = vadd.f32 %v3852_v61, %v3851_v63  ;;  %v3748_v10 = vadd.f32 %v3700_v58, %v3697_v60  ;;  %v3745_v16 = vadd.f32 %v3744_v24, %v3743_v46 }
 0x65e   : > { %v3856_v30 = vadd.f32 %v3855_v51, %v3854_v5  ;;  %v3908_v46 = vmul.f32 %v8097_v26, %v8097_v26 }
 0x65f   : > { %v3899_v28 = vmul.f32 0.00390625, %v3853_v29  ;;  %v3749_v12 = vrot.slane %v3748_v10, 4  ;;  %v3746_v3 = vrot.slane %v3745_v16, 1 }
 0x660   : > { %v3857_v52 = vrot.slane %v3856_v30, 2  ;;  %v3811_v21 = vpop.xlane.xlu1 %3810  ;;  %v3814_v13 = vpop.xlane.xlu0 %3813 }
 0x661   : > { %v3915_v35 = vsub.f32 %v3899_v28, %v3907_v34  ;;  %v3750_v56 = vadd.f32 %v3749_v12, %v3748_v10  ;;  %v3861_v1 = vadd.f32 %v3814_v13, %v3811_v21  ;;  %v3747_v0 = vadd.f32 %v3746_v3, %v3745_v16 }
 0x662   : > { %v3858_v47 = vadd.f32 %v3857_v52, %v3856_v30 }
 0x663   : > { %v5420_v50 = vpop.eup %5419  ;;  %v3923_v45 = vadd.f32 1e-05, %v3915_v35  ;;  %v3751_v20 = vrot.slane %v3750_v56, 2  ;;  %v3862_v8 = vrot.slane %v3861_v1, 4  ;;  %v8103_v34 = vmul.f32 0.00390625, %v3747_v0 }
 0x664   : > { %v3859_v14 = vrot.slane %v3858_v47, 1  ;;  %v3703_v19 = vpop.xlane.xlu1 %3702  ;;  %v3706_v42 = vpop.xlane.xlu0 %3705  ;;  %v3953_v31 = vmul.f32 %v5420_v50, %v3649_v4 }
 0x665   : > { %5423 = vrsqrt.f32 %v3923_v45  ;;  %v3863_v32 = vadd.f32 %v3862_v8, %v3861_v1  ;;  %v3752_v27 = vadd.f32 %v3751_v20, %v3750_v56  ;;  %v3755_v59 = vadd.f32 %v3706_v42, %v3703_v19  ;;  %v3651_v1 = vld [vmem:[#allocation11 + $0x2] sm:$0x1] }
 0x666   : > { %v3860_v15 = vadd.f32 %v3859_v14, %v3858_v47  ;;  %v3972_v48 = vrot.slane %v3953_v31, %v8767_v23  ;;  %v3909_v45 = vmul.f32 %v8103_v34, %v8103_v34 }
 0x667   : > { %v5422_v22 = vpop.eup %5421  ;;  %v3864_v63 = vrot.slane %v3863_v32, 2  ;;  %v3756_v2 = vrot.slane %v3755_v59, 4  ;;  %v3753_v29 = vrot.slane %v3752_v27, 1 }
 0x668   : > { %v3900_v5 = vmul.f32 0.00390625, %v3860_v15  ;;  %v3817_v61 = vpop.xlane.xlu1 %3816  ;;  %4002 = vperm.xlu1 %5402, %v3972_v48   ;;  %v3820_v24 = vpop.xlane.xlu0 %3819  ;;  %v3954_v41 = vmul.f32 %v5422_v22, %v3650_v6 }
 0x669   : > { %v3865_v51 = vadd.f32 %v3864_v63, %v3863_v32  ;;  %v3868_v60 = vadd.f32 %v3820_v24, %v3817_v61  ;;  %v3757_v10 = vadd.f32 %v3756_v2, %v3755_v59  ;;  %v3754_v4 = vadd.f32 %v3753_v29, %v3752_v27 }
 0x66a   : > { %v3916_v58 = vsub.f32 %v3900_v5, %v3908_v46  ;;  %v3976_v30 = vrot.slane %v3954_v41, %v8767_v23 }
 0x66b   : > { %v3866_v28 = vrot.slane %v3865_v51, 1  ;;  %v3869_v16 = vrot.slane %v3868_v60, 4  ;;  %v3758_v53 = vrot.slane %v3757_v10, 2  ;;  %v8107_v59 = vmul.f32 0.00390625, %v3754_v4 }
 0x66c   : > { %v3924_v12 = vadd.f32 1e-05, %v3916_v58  ;;  %v3709_v52 = vpop.xlane.xlu1 %3708  ;;  %4006 = vperm.xlu0 %5401, %v3976_v30   ;;  %v3712_v21 = vpop.xlane.xlu0 %3711 }
 0x66d   : > { %v3867_v13 = vadd.f32 %v3866_v28, %v3865_v51  ;;  %v3870_v35 = vadd.f32 %v3869_v16, %v3868_v60  ;;  %v3762_v56 = vadd.f32 %v3712_v21, %v3709_v52  ;;  %v3759_v47 = vadd.f32 %v3758_v53, %v3757_v10  ;;  %v3652_v60 = vld [vmem:[#allocation11 + $0x3] sm:$0x1] }
 0x66e   : > { %5425 = vrsqrt.f32 %v3924_v12  ;;  %v3910_v29 = vmul.f32 %v8107_v59, %v8107_v59 }
 0x66f   : > { %v5424_v50 = vpop.eup %5423  ;;  %v3901_v3 = vmul.f32 0.00390625, %v3867_v13  ;;  %v3871_v20 = vrot.slane %v3870_v35, 2  ;;  %v3763_v8 = vrot.slane %v3762_v56, 4  ;;  %v3760_v48 = vrot.slane %v3759_v47, 1 }
 0x670   : > { %v3823_v14 = vpop.xlane.xlu1 %3822  ;;  %v3826_v19 = vpop.xlane.xlu0 %3825  ;;  %v3955_v42 = vmul.f32 %v5424_v50, %v3651_v1 }
 0x671   : > { %v3917_v31 = vsub.f32 %v3901_v3, %v3909_v45  ;;  %v3872_v32 = vadd.f32 %v3871_v20, %v3870_v35  ;;  %v3764_v6 = vadd.f32 %v3763_v8, %v3762_v56  ;;  %v3875_v15 = vadd.f32 %v3826_v19, %v3823_v14  ;;  %v3653_v3 = vld [vmem:[#allocation11 + $0x4] sm:$0x1]  ;;  %v5235_v8 = vld [vmem:[#allocation14 + $0x19] ss:$0 sm:$0xff] }
 0x672   : > { %v3980_v27 = vrot.slane %v3955_v42, %v8767_v23  ;;  %v3761_v58 = vadd.f32 %v3760_v48, %v3759_v47 }
 0x673   : > { %v3925_v22 = vadd.f32 1e-05, %v3917_v31  ;;  %v3873_v0 = vrot.slane %v3872_v32, 1  ;;  %v3765_v63 = vrot.slane %v3764_v6, 2  ;;  %v3876_v46 = vrot.slane %v3875_v15, 4 }
 0x674   : > { %v3829_v5 = vpop.xlane.xlu1 %3828  ;;  %4010 = vperm.xlu1 %5402, %v3980_v27   ;;  %v3832_v2 = vpop.xlane.xlu0 %3831  ;;  %v8112_v35 = vmul.f32 0.00390625, %v3761_v58  ;;  %v5237_v27 = vld [vmem:[#allocation14 + $0x1b] ss:$0 sm:$0xff]  ;;  %v5236_v58 = vld [vmem:[#allocation14 + $0x1a] ss:$0 sm:$0xff] }
 0x675   : > { %5427 = vrsqrt.f32 %v3925_v22  ;;  %v3874_v61 = vadd.f32 %v3873_v0, %v3872_v32  ;;  %v3766_v24 = vadd.f32 %v3765_v63, %v3764_v6  ;;  %v3877_v41 = vadd.f32 %v3876_v46, %v3875_v15 }
 0x676   : > { %v3882_v51 = vadd.f32 %v3832_v2, %v3829_v5  ;;  %v3911_v19 = vmul.f32 %v8112_v35, %v8112_v35  ;;  %v5234_v5 = vld [vmem:[#allocation14 + $0x18] ss:$0 sm:$0xff]  ;;  %v3654_v2 = vld [vmem:[#allocation11 + $0x5] sm:$0x1] }
 0x677   : > { %v3902_v10 = vmul.f32 0.00390625, %v3874_v61  ;;  %v3878_v30 = vrot.slane %v3877_v41, 2  ;;  %v3767_v16 = vrot.slane %v3766_v24, 1 }
 0x678   : > { %v5426_v28 = vpop.eup %5425  ;;  %v3883_v12 = vrot.slane %v3882_v51, 4 }
 0x679   : > { %v3918_v53 = vsub.f32 %v3902_v10, %v3910_v29  ;;  %v3879_v52 = vadd.f32 %v3878_v30, %v3877_v41  ;;  %v3956_v21 = vmul.f32 %v5426_v28, %v3652_v60  ;;  %v3768_v50 = vadd.f32 %v3767_v16, %v3766_v24  ;;  %v5238_v30 = vld [vmem:[#allocation14 + $0x1c] ss:$0 sm:$0xff]  ;;  %v3655_v28 = vld [vmem:[#allocation11 + $0x6] sm:$0x1] }
 0x67a   : > { %v3884_v13 = vadd.f32 %v3883_v12, %v3882_v51  ;;  %v4091_v12 = vpop.permute.xlu1 %4090 }
 0x67b   : > { %v3926_v56 = vadd.f32 1e-05, %v3918_v53  ;;  %v3880_v1 = vrot.slane %v3879_v52, 1  ;;  %v3984_v4 = vrot.slane %v3956_v21, %v8767_v23  ;;  %v8117_v31 = vmul.f32 0.00390625, %v3768_v50 }
 0x67c   : > { %v3885_v47 = vrot.slane %v3884_v13, 2  ;;  %v8122_v41 = vpop.permute.xlu0 %4094 }
 0x67d   : > { %5429 = vrsqrt.f32 %v3926_v56  ;;  %v3881_v45 = vadd.f32 %v3880_v1, %v3879_v52  ;;  %4014 = vperm.xlu1 %5402, %v3984_v4   ;;  %8768 = vst [vmem:[#allocation32_spill] sm:$0xff] %v8117_v31  ;;  %v3912_v63 = vmul.f32 %v8117_v31, %v8117_v31  ;;  %v5240_v52 = vld [vmem:[#allocation14 + $0x1e] ss:$0 sm:$0xff] }
 0x67e   : > { %v3886_v20 = vadd.f32 %v3885_v47, %v3884_v13  ;;  %v3656_v13 = vld [vmem:[#allocation11 + $0x7] sm:$0x1]  ;;  %v8130_v4 = vpop.permute.xlu1 %4098 }
 0x67f   : > { %v5428_v14 = vpop.eup %5427  ;;  %v3903_v42 = vmul.f32 0.00390625, %v3881_v45 }
 0x680   : > { %v3887_v32 = vrot.slane %v3886_v20, 1  ;;  %v3957_v6 = vmul.f32 %v5428_v14, %v3653_v3  ;;  %v8125_v10 = vpop.permute.xlu0 %4102  ;;  %v5239_v3 = vld [vmem:[#allocation14 + $0x1d] ss:$0 sm:$0xff] }
 0x681   : > { %v3919_v15 = vsub.f32 %v3903_v42, %v3911_v19  ;;  %4532 = vperm.xlu1 %5402, %v5235_v8   ;;  %v5241_v8 = vld [vmem:[#allocation14 + $0x1f] ss:$0 sm:$0xff] }
 0x682   : > { %v3888_v48 = vadd.f32 %v3887_v32, %v3886_v20  ;;  %v3988_v22 = vrot.slane %v3957_v6, %v8767_v23  ;;  %v4195_v20 = vpop.permute.xlu1 %4194 }
 0x683   : > { %v3927_v0 = vadd.f32 1e-05, %v3919_v15 }
 0x684   : > { %v3904_v46 = vmul.f32 0.00390625, %v3888_v48  ;;  %4018 = vperm.xlu0 %5401, %v3988_v22   ;;  %v8128_v56 = vpop.permute.xlu0 %4106 }
 0x685   : > { %5431 = vrsqrt.f32 %v3927_v0  ;;  %4540 = vperm.xlu1 %5402, %v5237_v27  }
 0x686   : > { %v3920_v61 = vsub.f32 %v3904_v46, %v3912_v63  ;;  %v4203_v19 = vpop.permute.xlu1 %4202 }
 0x687   : > { %v5430_v24 = vpop.eup %5429 }
 0x688   : > { %v3928_v51 = vadd.f32 1e-05, %v3920_v61  ;;  %4528 = vperm.xlu0 %5401, %v5234_v5   ;;  %v3958_v60 = vmul.f32 %v5430_v24, %v3654_v2  ;;  %v4199_v45 = vpop.permute.xlu0 %4198 }
 0x68a   : > { %5433 = vrsqrt.f32 %v3928_v51  ;;  %v3992_v29 = vrot.slane %v3958_v60, %v8767_v23  ;;  %v4244_v32 = vpop.permute.xlu1 %4243 }
 0x68c   : > { %4536 = vperm.xlu0 %5401, %v5236_v58   ;;  %4022 = vperm.xlu1 %5402, %v3992_v29   ;;  %v4207_v14 = vpop.permute.xlu0 %4206 }
 0x68e   : > { %v4252_v15 = vpop.permute.xlu1 %4251 }
 0x68f   : > { %v5432_v16 = vpop.eup %5431 }
 0x690   : > { %4585 = vperm.xlu0 %5401, %v5238_v30   ;;  %v3959_v53 = vmul.f32 %v5432_v16, %v3655_v28  ;;  %v4248_v42 = vpop.permute.xlu0 %4247 }
 0x692   : > { %v3996_v21 = vrot.slane %v3959_v53, %v8767_v23  ;;  %v8137_v27 = vpop.permute.xlu1 %4300 }
 0x694   : > { %v5434_v1 = vpop.eup %5433  ;;  %4593 = vperm.xlu0 %5401, %v5240_v52   ;;  %4026 = vperm.xlu1 %5402, %v3996_v21   ;;  %v8133_v6 = vpop.permute.xlu0 %4255  ;;  %v3937_v52 = vsub.f32 %v7819_v18, %v8085_v57  ;;  %v3938_v21 = vsub.f32 %v7817_v17, %v8085_v57 }
 0x695   : > { %v3960_v50 = vmul.f32 %v5434_v1, %v3656_v13 }
 0x696   : > { %v8141_v0 = vpop.permute.xlu1 %4308 }
 0x697   : > { %v4000_v47 = vrot.slane %v3960_v50, %v8767_v23  ;;  %v3939_v23 = vsub.f32 %v7834_v54, %v8087_v44  ;;  %v3942_v54 = vsub.f32 %v7890_v55, %v8093_v38 }
 0x698   : > { %v8135_v48 = vpop.permute.xlu0 %4110 }
 0x699   : > { %4030 = vperm.xlu1 %5402, %v4000_v47  }
 0x69a   : > { %v8145_v46 = vpop.permute.xlu1 %4357 }
 0x69c   : > { %v8139_v22 = vpop.permute.xlu0 %4304 }
 0x69d   : > { %4589 = vperm.xlu1 %5402, %v5239_v3  }
 0x69e   : > { %v8149_v2 = vpop.permute.xlu1 %4365 }
 0x6a0   : > { %v8143_v63 = vpop.permute.xlu0 %4312 }
 0x6a1   : > { %4597 = vperm.xlu1 %5402, %v5241_v8  }
 0x6a2   : > { %v8153_v24 = vpop.permute.xlu1 %4118 }
 0x6a3   : > { %8770 = vst [vmem:[#allocation46_spill] sm:$0xff] %v8153_v24  ;;  %v3940_v24 = vsub.f32 %v7853_v49, %v8087_v44 }
 0x6a4   : > { %v8147_v5 = vpop.permute.xlu0 %4114 }
 0x6a5   : > { %8769 = vst [vmem:[#allocation53_spill] sm:$0xff] %v8147_v5 }
 0x6a6   : > { %v8157_v60 = vpop.permute.xlu1 %4418 }
 0x6a8   : > { %v8151_v61 = vpop.permute.xlu0 %4361 }
 0x6aa   : > { %v8161_v29 = vpop.permute.xlu1 %4426 }
 0x6ac   : > { %v8155_v51 = vpop.permute.xlu0 %4369 }
 0x6ae   : > { %v8165_v28 = vpop.permute.xlu1 %4475 }
 0x6af   : > { %8771 = vst [vmem:[#allocation71_spill] sm:$0xff] %v8165_v28 }
 0x6b0   : > { %v8159_v58 = vpop.permute.xlu0 %4414 }
 0x6b2   : > { %v8169_v53 = vpop.permute.xlu1 %4483 }
 0x6b3   : > { %8773 = vst [vmem:[#allocation68_spill] sm:$0xff] %v8169_v53 }
 0x6b4   : > { %v8163_v30 = vpop.permute.xlu0 %4422 }
 0x6b8   : > { %v8167_v16 = vpop.permute.xlu0 %4471 }
 0x6b9   : > { %8772 = vst [vmem:[#allocation55_spill] sm:$0xff] %v8167_v16 }
 0x6bc   : > { %v8175_v13 = vpop.permute.xlu0 %4479 }
 0x6bd   : > { %8774 = vst [vmem:[#allocation59_spill] sm:$0xff] %v8175_v13 }
 0x6e7   : > { %v4003_v1 = vpop.permute.xlu1 %4002 }
 0x6e8   : > { %v4033_v50 = vmul.f32 %v4003_v1, %v3937_v52  ;;  %v4034_v47 = vmul.f32 %v4003_v1, %v3938_v21 }
 0x6ea   : > { %v4121_v3 = vadd.f32 %v4091_v12, %v4033_v50  ;;  %v4122_v8 = vadd.f32 %v4091_v12, %v4034_v47  ;;  %v3941_v12 = vsub.f32 %v7892_v36, %v8093_v38 }
 0x6eb   : > { %v4007_v16 = vpop.permute.xlu0 %4006 }
 0x6ec   : > { %v4137_v5 = vmax.f32 %v4121_v3, 0.0  ;;  %v4138_v53 = vmax.f32 %v4122_v8, 0.0  ;;  %v4035_v18 = vmul.f32 %v4007_v16, %v3939_v23  ;;  %v4036_v28 = vmul.f32 %v4007_v16, %v3940_v24 }
 0x6ee   : > { %v4123_v17 = vadd.f32 %v8122_v41, %v4035_v18  ;;  %v4124_v57 = vadd.f32 %v8122_v41, %v4036_v28  ;;  %v4153_v13 = vmin.f32 %v4137_v5, 6.0  ;;  %v4154_v52 = vmin.f32 %v4138_v53, 6.0 }
 0x6f0   : > { %v4139_v21 = vmax.f32 %v4123_v17, 0.0  ;;  %v4140_v1 = vmax.f32 %v4124_v57, 0.0  ;;  %v4209_v49 = vmul.f32 %v4195_v20, %v4153_v13  ;;  %v4210_v44 = vmul.f32 %v4195_v20, %v4154_v52 }
 0x6f1   : > { %v4211_v50 = vmul.f32 %v4199_v45, %v4153_v13  ;;  %v4212_v47 = vmul.f32 %v4199_v45, %v4154_v52  ;;  %v4213_v24 = vmul.f32 %v4203_v19, %v4153_v13  ;;  %v4214_v16 = vmul.f32 %v4203_v19, %v4154_v52 }
 0x6f2   : > { %v4155_v3 = vmin.f32 %v4139_v21, 6.0  ;;  %v4156_v8 = vmin.f32 %v4140_v1, 6.0  ;;  %v4215_v41 = vmul.f32 %v4207_v14, %v4153_v13  ;;  %v4216_v5 = vmul.f32 %v4207_v14, %v4154_v52 }
 0x6f3   : > { %v4011_v23 = vpop.permute.xlu1 %4010 }
 0x6f4   : > { %v4037_v28 = vmul.f32 %v4011_v23, %v3941_v12  ;;  %v4038_v53 = vmul.f32 %v4011_v23, %v3942_v54  ;;  %v4258_v18 = vmul.f32 %v4244_v32, %v4155_v3  ;;  %v4259_v17 = vmul.f32 %v4244_v32, %v4156_v8 }
 0x6f5   : > { %v4260_v57 = vmul.f32 %v4248_v42, %v4155_v3  ;;  %v4261_v36 = vmul.f32 %v4248_v42, %v4156_v8  ;;  %v4262_v39 = vmul.f32 %v4252_v15, %v4155_v3  ;;  %v4263_v43 = vmul.f32 %v4252_v15, %v4156_v8 }
 0x6f6   : > { %v4264_v55 = vmul.f32 %v8133_v6, %v4155_v3  ;;  %v4265_v38 = vmul.f32 %v8133_v6, %v4156_v8  ;;  %v4266_v45 = vadd.f32 %v4258_v18, %v4209_v49  ;;  %v4267_v20 = vadd.f32 %v4259_v17, %v4210_v44 }
 0x6f7   : > { %v4268_v31 = vadd.f32 %v4260_v57, %v4211_v50  ;;  %v4269_v19 = vadd.f32 %v4261_v36, %v4212_v47  ;;  %v4270_v21 = vadd.f32 %v4262_v39, %v4213_v24  ;;  %v4271_v1 = vadd.f32 %v4263_v43, %v4214_v16 }
 0x6f8   : > { %v4272_v13 = vadd.f32 %v4264_v55, %v4215_v41  ;;  %v4273_v14 = vadd.f32 %v4265_v38, %v4216_v5  ;;  %v4125_v52 = vadd.f32 %v8130_v4, %v4037_v28  ;;  %v4126_v32 = vadd.f32 %v8130_v4, %v4038_v53 }
 0x6f9   : > { %v3943_v42 = vsub.f32 %v7942_v37, %v8097_v26  ;;  %v3944_v15 = vsub.f32 %v7940_v25, %v8097_v26  ;;  %v3945_v4 = vsub.f32 %v7983_v9, %v8103_v34  ;;  %v3946_v37 = vsub.f32 %v7981_v62, %v8103_v34 }
 0x6fa   : > { %v4141_v12 = vmax.f32 %v4125_v52, 0.0  ;;  %v4142_v6 = vmax.f32 %v4126_v32, 0.0 }
 0x6fc   : > { %v4015_v54 = vpop.permute.xlu1 %4014  ;;  %v4157_v50 = vmin.f32 %v4141_v12, 6.0  ;;  %v4158_v39 = vmin.f32 %v4142_v6, 6.0 }
 0x6fd   : > { %v4039_v49 = vmul.f32 %v4015_v54, %v3943_v42  ;;  %v4040_v44 = vmul.f32 %v4015_v54, %v3944_v15 }
 0x6fe   : > { %v4315_v23 = vmul.f32 %v8137_v27, %v4157_v50  ;;  %v4316_v25 = vmul.f32 %v8137_v27, %v4158_v39  ;;  %v4317_v26 = vmul.f32 %v8139_v22, %v4157_v50  ;;  %v4318_v24 = vmul.f32 %v8139_v22, %v4158_v39 }
 0x6ff   : > { %v4127_v43 = vadd.f32 %v8125_v10, %v4039_v49  ;;  %v4128_v47 = vadd.f32 %v8125_v10, %v4040_v44  ;;  %v4319_v16 = vmul.f32 %v8141_v0, %v4157_v50  ;;  %v4320_v3 = vmul.f32 %v8141_v0, %v4158_v39 }
 0x700   : > { %v4321_v10 = vmul.f32 %v8143_v63, %v4157_v50  ;;  %v4322_v8 = vmul.f32 %v8143_v63, %v4158_v39  ;;  %v8209_v9 = vpop.permute.xlu1 %4532  ;;  %v4323_v41 = vadd.f32 %v4315_v23, %v4266_v45  ;;  %v4324_v62 = vadd.f32 %v4316_v25, %v4267_v20 }
 0x701   : > { %v4143_v34 = vmax.f32 %v4127_v43, 0.0  ;;  %v4144_v5 = vmax.f32 %v4128_v47, 0.0  ;;  %v4327_v28 = vadd.f32 %v4319_v16, %v4270_v21  ;;  %v4328_v27 = vadd.f32 %v4320_v3, %v4271_v1 }
 0x702   : > { %v4325_v18 = vadd.f32 %v4317_v26, %v4268_v31  ;;  %v4326_v17 = vadd.f32 %v4318_v24, %v4269_v19  ;;  %v3947_v0 = vsub.f32 %v8019_v11, %v8107_v59  ;;  %v3948_v63 = vsub.f32 %v8017_v40, %v8107_v59 }
 0x703   : > { %v4019_v53 = vpop.permute.xlu0 %4018  ;;  %v4159_v22 = vmin.f32 %v4143_v34, 6.0  ;;  %v4160_v57 = vmin.f32 %v4144_v5, 6.0  ;;  %v4329_v38 = vadd.f32 %v4321_v10, %v4272_v13  ;;  %v4330_v45 = vadd.f32 %v4322_v8, %v4273_v14 }
 0x704   : > { %v4041_v36 = vmul.f32 %v4019_v53, %v3945_v4  ;;  %v4042_v55 = vmul.f32 %v4019_v53, %v3946_v37  ;;  %v8223_v42 = vpop.permute.xlu1 %4540  ;;  %v3949_v47 = vsub.f32 %v8049_v33, %v8112_v35 }
 0x705   : > { %v4372_v20 = vmul.f32 %v8145_v46, %v4159_v22  ;;  %v4373_v21 = vmul.f32 %v8145_v46, %v4160_v57  ;;  %v4374_v1 = vmul.f32 %v8151_v61, %v4159_v22  ;;  %v4375_v31 = vmul.f32 %v8151_v61, %v4160_v57 }
 0x706   : > { %v4376_v19 = vmul.f32 %v8149_v2, %v4159_v22  ;;  %v4377_v52 = vmul.f32 %v8149_v2, %v4160_v57  ;;  %v4378_v32 = vmul.f32 %v8155_v51, %v4159_v22  ;;  %v4379_v11 = vmul.f32 %v8155_v51, %v4160_v57  ;;  %v8776_v57 = vld [vmem:[#allocation44_spill] sm:$0xff] }
 0x707   : > { %v4129_v40 = vadd.f32 %v8128_v56, %v4041_v36  ;;  %v4130_v59 = vadd.f32 %v8128_v56, %v4042_v55  ;;  %v4382_v13 = vadd.f32 %v4374_v1, %v4325_v18  ;;  %v4383_v46 = vadd.f32 %v4375_v31, %v4326_v17  ;;  %v4529_v26 = vpop.permute.xlu0 %4528  ;;  %v8780_v31 = vld [vmem:[#allocation53_spill] sm:$0xff] }
 0x708   : > { %v4386_v14 = vadd.f32 %v4378_v32, %v4329_v38  ;;  %v4387_v15 = vadd.f32 %v4379_v11, %v4330_v45  ;;  %v4381_v12 = vadd.f32 %v4373_v21, %v4324_v62  ;;  %v4380_v61 = vadd.f32 %v4372_v20, %v4323_v41  ;;  %v8779_v20 = vld [vmem:[#allocation68_spill] sm:$0xff]  ;;  %v8781_v32 = vld [vmem:[#allocation55_spill] sm:$0xff] }
 0x709   : > { %v4145_v6 = vmax.f32 %v4129_v40, 0.0  ;;  %v4146_v54 = vmax.f32 %v4130_v59, 0.0  ;;  %v4384_v49 = vadd.f32 %v4376_v19, %v4327_v28  ;;  %v4385_v2 = vadd.f32 %v4377_v52, %v4328_v27 }
 0x70a   : > { %v3950_v56 = vsub.f32 %v8047_v7, %v8112_v35 }
 0x70b   : > { %v4023_v44 = vpop.permute.xlu1 %4022  ;;  %v4161_v50 = vmin.f32 %v4145_v6, 6.0  ;;  %v4162_v39 = vmin.f32 %v4146_v54, 6.0 }
 0x70c   : > { %v4043_v51 = vmul.f32 %v4023_v44, %v3947_v0  ;;  %v4044_v43 = vmul.f32 %v4023_v44, %v3948_v63  ;;  %v4537_v0 = vpop.permute.xlu0 %4536  ;;  %v8778_v63 = vld [vmem:[#allocation71_spill] sm:$0xff] }
 0x70d   : > { %v4429_v4 = vmul.f32 %v8159_v58, %v4161_v50  ;;  %v4430_v37 = vmul.f32 %v8159_v58, %v4162_v39  ;;  %v4433_v23 = vmul.f32 %v8163_v30, %v4161_v50  ;;  %v4434_v25 = vmul.f32 %v8163_v30, %v4162_v39  ;;  %v8782_v44 = vld [vmem:[#allocation59_spill] sm:$0xff] }
 0x70e   : > { %v4131_v24 = vadd.f32 %v8135_v48, %v4043_v51  ;;  %v4132_v16 = vadd.f32 %v8135_v48, %v4044_v43  ;;  %v4431_v3 = vmul.f32 %v8157_v60, %v4161_v50  ;;  %v4432_v33 = vmul.f32 %v8157_v60, %v4162_v39  ;;  %v8775_v60 = vld [vmem:[#allocation32_spill] sm:$0xff] }
 0x70f   : > { %v4435_v10 = vmul.f32 %v8161_v29, %v4161_v50  ;;  %v4436_v7 = vmul.f32 %v8161_v29, %v4162_v39  ;;  %v4438_v35 = vadd.f32 %v4430_v37, %v4381_v12  ;;  %v4437_v8 = vadd.f32 %v4429_v4, %v4380_v61  ;;  %v8777_v29 = vld [vmem:[#allocation36_spill] sm:$0xff] }
 0x710   : > { %v4147_v58 = vmax.f32 %v4131_v24, 0.0  ;;  %v4148_v41 = vmax.f32 %v4132_v16, 0.0  ;;  %v4439_v62 = vadd.f32 %v4431_v3, %v4382_v13  ;;  %v4440_v34 = vadd.f32 %v4432_v33, %v4383_v46 }
 0x711   : > { %v4443_v30 = vadd.f32 %v4435_v10, %v4386_v14  ;;  %v4444_v5 = vadd.f32 %v4436_v7, %v4387_v15  ;;  %v4441_v28 = vadd.f32 %v4433_v23, %v4384_v49  ;;  %v4442_v27 = vadd.f32 %v4434_v25, %v4385_v2 }
 0x712   : > { %v4163_v53 = vmin.f32 %v4147_v58, 6.0  ;;  %v4164_v48 = vmin.f32 %v4148_v41, 6.0  ;;  %v3951_v36 = vsub.f32 %v8776_v57, %v8775_v60  ;;  %v3952_v55 = vsub.f32 %v8777_v29, %v8775_v60 }
 0x713   : > { %v4027_v18 = vpop.permute.xlu1 %4026 }
 0x714   : > { %v4045_v17 = vmul.f32 %v4027_v18, %v3949_v47  ;;  %v4046_v22 = vmul.f32 %v4027_v18, %v3950_v56  ;;  %v4488_v38 = vmul.f32 %v8778_v63, %v4163_v53  ;;  %v4489_v45 = vmul.f32 %v8778_v63, %v4164_v48  ;;  %v4586_v47 = vpop.permute.xlu0 %4585  ;;  %v8783_v56 = vld [vmem:[#allocation46_spill] sm:$0xff] }
 0x715   : > { %v4492_v21 = vmul.f32 %v8779_v20, %v4163_v53  ;;  %v4493_v1 = vmul.f32 %v8779_v20, %v4164_v48  ;;  %v4487_v11 = vmul.f32 %v8781_v32, %v4164_v48  ;;  %v4486_v40 = vmul.f32 %v8781_v32, %v4163_v53 }
 0x716   : > { %v4133_v19 = vadd.f32 %v8780_v31, %v4045_v17  ;;  %v4134_v52 = vadd.f32 %v8780_v31, %v4046_v22  ;;  %v4496_v59 = vadd.f32 %v4488_v38, %v4439_v62  ;;  %v4497_v13 = vadd.f32 %v4489_v45, %v4440_v34 }
 0x717   : > { %v4500_v46 = vadd.f32 %v4492_v21, %v4443_v30  ;;  %v4501_v14 = vadd.f32 %v4493_v1, %v4444_v5  ;;  %v4495_v6 = vadd.f32 %v4487_v11, %v4438_v35  ;;  %v4494_v54 = vadd.f32 %v4486_v40, %v4437_v8 }
 0x718   : > { %v4149_v15 = vmax.f32 %v4133_v19, 0.0  ;;  %v4150_v12 = vmax.f32 %v4134_v52, 0.0  ;;  %v4031_v61 = vpop.permute.xlu1 %4030  ;;  %v4490_v50 = vmul.f32 %v8782_v44, %v4163_v53  ;;  %v4491_v39 = vmul.f32 %v8782_v44, %v4164_v48 }
 0x719   : > { %v4047_v49 = vmul.f32 %v4031_v61, %v3951_v36  ;;  %v4048_v2 = vmul.f32 %v4031_v61, %v3952_v55 }
 0x71a   : > { %v4165_v51 = vmin.f32 %v4149_v15, 6.0  ;;  %v4166_v43 = vmin.f32 %v4150_v12, 6.0  ;;  %v4498_v23 = vadd.f32 %v4490_v50, %v4441_v28  ;;  %v4499_v25 = vadd.f32 %v4491_v39, %v4442_v27 }
 0x71b   : > { %v4135_v4 = vadd.f32 %v8783_v56, %v4047_v49  ;;  %v4136_v37 = vadd.f32 %v8783_v56, %v4048_v2 }
 0x71c   : > { %v4590_v24 = vpop.permute.xlu1 %4589  ;;  %v4545_v16 = vmul.f32 %v8209_v9, %v4165_v51  ;;  %v4546_v3 = vmul.f32 %v8209_v9, %v4166_v43  ;;  %v4549_v33 = vmul.f32 %v8223_v42, %v4165_v51  ;;  %v4550_v10 = vmul.f32 %v8223_v42, %v4166_v43  ;;  %v4594_v9 = vpop.permute.xlu0 %4593 }
 0x71d   : > { %v4151_v7 = vmax.f32 %v4135_v4, 0.0  ;;  %v4152_v35 = vmax.f32 %v4136_v37, 0.0  ;;  %v4544_v8 = vmul.f32 %v4529_v26, %v4166_v43  ;;  %v4543_v58 = vmul.f32 %v4529_v26, %v4165_v51 }
 0x71e   : > { %v4553_v41 = vadd.f32 %v4545_v16, %v4496_v59  ;;  %v4554_v62 = vadd.f32 %v4546_v3, %v4497_v13  ;;  %v4557_v34 = vadd.f32 %v4549_v33, %v4500_v46  ;;  %v4558_v30 = vadd.f32 %v4550_v10, %v4501_v14 }
 0x71f   : > { %v4167_v5 = vmin.f32 %v4151_v7, 6.0  ;;  %v4168_v28 = vmin.f32 %v4152_v35, 6.0  ;;  %v4552_v27 = vadd.f32 %v4544_v8, %v4495_v6  ;;  %v4551_v53 = vadd.f32 %v4543_v58, %v4494_v54 }
 0x720   : > { %v4598_v48 = vpop.permute.xlu1 %4597  ;;  %v4547_v18 = vmul.f32 %v4537_v0, %v4165_v51  ;;  %v4548_v17 = vmul.f32 %v4537_v0, %v4166_v43 }
 0x721   : > { %v4602_v22 = vmul.f32 %v4590_v24, %v4167_v5  ;;  %v4603_v60 = vmul.f32 %v4590_v24, %v4168_v28  ;;  %v4606_v57 = vmul.f32 %v4598_v48, %v4167_v5  ;;  %v4607_v42 = vmul.f32 %v4598_v48, %v4168_v28  ;;  %v5242_v24 = vld [vmem:[#allocation17] ss:$0 sm:$0xff] }
 0x722   : > { %v4601_v36 = vmul.f32 %v4586_v47, %v4168_v28  ;;  %v4600_v29 = vmul.f32 %v4586_v47, %v4167_v5  ;;  %v4555_v55 = vadd.f32 %v4547_v18, %v4498_v23  ;;  %v4604_v26 = vmul.f32 %v4594_v9, %v4167_v5 }
 0x723   : > { %v8261_v63 = vadd.f32 %v4602_v22, %v4553_v41  ;;  %v8263_v38 = vadd.f32 %v4603_v60, %v4554_v62  ;;  %v8265_v45 = vadd.f32 %v4606_v57, %v4557_v34  ;;  %v8267_v20 = vadd.f32 %v4607_v42, %v4558_v30 }
 0x724   : > { %v8269_v21 = vadd.f32 %v4601_v36, %v4552_v27  ;;  %v8271_v0 = vadd.f32 %v4600_v29, %v4551_v53  ;;  %v8273_v1 = vadd.f32 %v4604_v26, %v4555_v55  ;;  %v4556_v31 = vadd.f32 %v4548_v17, %v4499_v25  ;;  %v5243_v25 = vld [vmem:[#allocation17 + $0x1] ss:$0 sm:$0xff] }
 0x725   : > { %v4605_v19 = vmul.f32 %v4594_v9, %v4168_v28  ;;  %v4630_v40 = vsel %vm971_vm0, %v8261_v63, 0.0  ;;  %v4633_v13 = vsel %vm971_vm0, %v8263_v38, 0.0  ;;  %v4642_v46 = vsel %vm971_vm0, %v8265_v45, 0.0 }
 0x726   : > { %v4627_v52 = vsel %vm971_vm0, %v8269_v21, 0.0  ;;  %v4624_v32 = vsel %vm971_vm0, %v8271_v0, 0.0  ;;  %v4636_v59 = vsel %vm971_vm0, %v8273_v1, 0.0  ;;  %v4676_v14 = vmul.f32 %v8271_v0, %v8271_v0 }
 0x727   : > { %4628 = vadd.xlane.f32.xlu1 %v4627_v52  ;;  %4625 = vadd.xlane.f32.xlu0 %v4624_v32  ;;  %v8279_v11 = vadd.f32 %v4605_v19, %v4556_v31  ;;  %v4678_v61 = vmul.f32 %v8261_v63, %v8261_v63  ;;  %v4645_v6 = vsel %vm971_vm0, %v8267_v20, 0.0  ;;  %v4677_v49 = vmul.f32 %v8269_v21, %v8269_v21 }
 0x728   : > { %v4684_v12 = vsel %vm971_vm0, %v4676_v14, 0.0  ;;  %v4680_v2 = vmul.f32 %v8273_v1, %v8273_v1  ;;  %v4679_v39 = vmul.f32 %v8263_v38, %v8263_v38  ;;  %v4682_v51 = vmul.f32 %v8265_v45, %v8265_v45 }
 0x729   : > { %v4639_v15 = vsel %vm971_vm0, %v8279_v11, 0.0  ;;  %v4690_v54 = vsel %vm971_vm0, %v4678_v61, 0.0  ;;  %v4687_v44 = vsel %vm971_vm0, %v4677_v49, 0.0  ;;  %v4681_v56 = vmul.f32 %v8279_v11, %v8279_v11 }
 0x72a   : > { %v4696_v50 = vsel %vm971_vm0, %v4680_v2, 0.0  ;;  %v4693_v43 = vsel %vm971_vm0, %v4679_v39, 0.0  ;;  %v4702_v47 = vsel %vm971_vm0, %v4682_v51, 0.0  ;;  %v4683_v37 = vmul.f32 %v8267_v20, %v8267_v20 }
 0x72b   : > { %4631 = vadd.xlane.f32.xlu0 %v4630_v40  ;;  %4637 = vadd.xlane.f32.xlu1 %v4636_v59  ;;  %v4699_v4 = vsel %vm971_vm0, %v4681_v56, 0.0 }
 0x72c   : > { %v4705_v23 = vsel %vm971_vm0, %v4683_v37, 0.0 }
 0x72f   : > { %4634 = vadd.xlane.f32.xlu0 %v4633_v13  ;;  %4643 = vadd.xlane.f32.xlu1 %v4642_v46 }
 0x733   : > { %4640 = vadd.xlane.f32.xlu0 %v4639_v15  ;;  %4685 = vadd.xlane.f32.xlu1 %v4684_v12 }
 0x737   : > { %4646 = vadd.xlane.f32.xlu0 %v4645_v6  ;;  %4691 = vadd.xlane.f32.xlu1 %v4690_v54 }
 0x73b   : > { %4688 = vadd.xlane.f32.xlu0 %v4687_v44  ;;  %4697 = vadd.xlane.f32.xlu1 %v4696_v50 }
 0x73f   : > { %4694 = vadd.xlane.f32.xlu0 %v4693_v43  ;;  %4703 = vadd.xlane.f32.xlu1 %v4702_v47 }
 0x743   : > { %4700 = vadd.xlane.f32.xlu0 %v4699_v4 }
 0x747   : > { %4706 = vadd.xlane.f32.xlu0 %v4705_v23 }
 0x750   : > { %4841 = vperm.xlu1 %5402, %v5243_v25  }
 0x75d   : > { %4837 = vperm.xlu0 %5401, %v5242_v24  }
 0x7b4   : > { %v4629_v16 = vpop.xlane.xlu1 %4628  ;;  %v4626_v3 = vpop.xlane.xlu0 %4625 }
 0x7b5   : > { %v4648_v33 = vadd.f32 %v4629_v16, %v4626_v3 }
 0x7b7   : > { %v4649_v35 = vrot.slane %v4648_v33, 4 }
 0x7b8   : > { %v4638_v10 = vpop.xlane.xlu1 %4637  ;;  %v4632_v7 = vpop.xlane.xlu0 %4631 }
 0x7b9   : > { %v4650_v62 = vadd.f32 %v4649_v35, %v4648_v33 }
 0x7bb   : > { %v4651_v28 = vrot.slane %v4650_v62, 2 }
 0x7bc   : > { %v4644_v8 = vpop.xlane.xlu1 %4643  ;;  %v4635_v58 = vpop.xlane.xlu0 %4634 }
 0x7bd   : > { %v4655_v41 = vadd.f32 %v4635_v58, %v4632_v7  ;;  %v4652_v9 = vadd.f32 %v4651_v28, %v4650_v62 }
 0x7bf   : > { %v4656_v34 = vrot.slane %v4655_v41, 4  ;;  %v4653_v55 = vrot.slane %v4652_v9, 1 }
 0x7c0   : > { %v4641_v30 = vpop.xlane.xlu0 %4640  ;;  %v4686_v27 = vpop.xlane.xlu1 %4685 }
 0x7c1   : > { %v4662_v5 = vadd.f32 %v4641_v30, %v4638_v10  ;;  %v4657_v48 = vadd.f32 %v4656_v34, %v4655_v41  ;;  %v4654_v59 = vadd.f32 %v4653_v55, %v4652_v9 }
 0x7c3   : > { %v4663_v53 = vrot.slane %v4662_v5, 4  ;;  %v4658_v57 = vrot.slane %v4657_v48, 2  ;;  %v8317_v44 = vmul.f32 0.00390625, %v4654_v59 }
 0x7c4   : > { %v4647_v18 = vpop.xlane.xlu0 %4646  ;;  %v4692_v42 = vpop.xlane.xlu1 %4691 }
 0x7c5   : > { %v4669_v17 = vadd.f32 %v4647_v18, %v4644_v8  ;;  %v4664_v22 = vadd.f32 %v4663_v53, %v4662_v5  ;;  %v4659_v52 = vadd.f32 %v4658_v57, %v4657_v48  ;;  %v4744_v33 = vmul.f32 %v8317_v44, %v8317_v44 }
 0x7c7   : > { %v4670_v60 = vrot.slane %v4669_v17, 4  ;;  %v4665_v26 = vrot.slane %v4664_v22, 2  ;;  %v4660_v61 = vrot.slane %v4659_v52, 1 }
 0x7c8   : > { %v4689_v36 = vpop.xlane.xlu0 %4688  ;;  %v4698_v46 = vpop.xlane.xlu1 %4697 }
 0x7c9   : > { %v4708_v29 = vadd.f32 %v4689_v36, %v4686_v27  ;;  %v4671_v31 = vadd.f32 %v4670_v60, %v4669_v17  ;;  %v4666_v13 = vadd.f32 %v4665_v26, %v4664_v22  ;;  %v4661_v56 = vadd.f32 %v4660_v61, %v4659_v52  ;;  %v8784_v61 = vld [vmem:[#allocation28_spill] sm:$0xff] }
 0x7cb   : > { %v4709_v19 = vrot.slane %v4708_v29, 4  ;;  %v4672_v15 = vrot.slane %v4671_v31, 2  ;;  %v4667_v50 = vrot.slane %v4666_v13, 1  ;;  %v8321_v41 = vmul.f32 0.00390625, %v4661_v56  ;;  %v5244_v56 = vld [vmem:[#allocation17 + $0x2] ss:$0 sm:$0xff] }
 0x7cc   : > { %v4695_v32 = vpop.xlane.xlu0 %4694  ;;  %v4704_v4 = vpop.xlane.xlu1 %4703 }
 0x7cd   : > { %v4710_v40 = vadd.f32 %v4709_v19, %v4708_v29  ;;  %v4715_v14 = vadd.f32 %v4695_v32, %v4692_v42  ;;  %v4673_v51 = vadd.f32 %v4672_v15, %v4671_v31  ;;  %v4668_v3 = vadd.f32 %v4667_v50, %v4666_v13  ;;  %v4618_v50 = vld [vmem:[#allocation16 + $0x2] sm:$0x1] }
 0x7ce   : > { %v4745_v9 = vmul.f32 %v8321_v41, %v8321_v41 }
 0x7cf   : > { %v4711_v12 = vrot.slane %v4710_v40, 2  ;;  %v4716_v6 = vrot.slane %v4715_v14, 4  ;;  %v4674_v7 = vrot.slane %v4673_v51, 1  ;;  %v8323_v28 = vmul.f32 0.00390625, %v4668_v3 }
 0x7d0   : > { %v4701_v54 = vpop.xlane.xlu0 %4700  ;;  %v4760_v3 = vsub.f32 %v8271_v0, %v8317_v44  ;;  %v4763_v0 = vsub.f32 %v8263_v38, %v8321_v41 }
 0x7d1   : > { %v4712_v49 = vadd.f32 %v4711_v12, %v4710_v40  ;;  %v4722_v2 = vadd.f32 %v4701_v54, %v4698_v46  ;;  %v4717_v39 = vadd.f32 %v4716_v6, %v4715_v14  ;;  %v4675_v53 = vadd.f32 %v4674_v7, %v4673_v51  ;;  %v4616_v46 = vld [vmem:[#allocation16] sm:$0x1]  ;;  %v4617_v54 = vld [vmem:[#allocation16 + $0x1] sm:$0x1] }
 0x7d2   : > { %v4746_v29 = vmul.f32 %v8323_v28, %v8323_v28  ;;  %v4764_v38 = vsub.f32 %v8273_v1, %v8323_v28 }
 0x7d3   : > { %v4713_v43 = vrot.slane %v4712_v49, 1  ;;  %v4723_v47 = vrot.slane %v4722_v2, 4  ;;  %v4718_v37 = vrot.slane %v4717_v39, 2  ;;  %v8327_v36 = vmul.f32 0.00390625, %v4675_v53 }
 0x7d4   : > { %v4707_v23 = vpop.xlane.xlu0 %4706 }
 0x7d5   : > { %v4714_v25 = vadd.f32 %v4713_v43, %v4712_v49  ;;  %v4724_v24 = vadd.f32 %v4723_v47, %v4722_v2  ;;  %v4729_v16 = vadd.f32 %v4707_v23, %v4704_v4  ;;  %v4719_v10 = vadd.f32 %v4718_v37, %v4717_v39  ;;  %v4619_v47 = vld [vmem:[#allocation16 + $0x3] sm:$0x1] }
 0x7d6   : > { %v4747_v40 = vmul.f32 %v8327_v36, %v8327_v36 }
 0x7d7   : > { %v4740_v35 = vmul.f32 0.00390625, %v4714_v25  ;;  %v4725_v8 = vrot.slane %v4724_v24, 2  ;;  %v4730_v58 = vrot.slane %v4729_v16, 4  ;;  %v4720_v62 = vrot.slane %v4719_v10, 1 }
 0x7d9   : > { %v4748_v34 = vsub.f32 %v4740_v35, %v4744_v33  ;;  %v4726_v30 = vadd.f32 %v4725_v8, %v4724_v24  ;;  %v4731_v5 = vadd.f32 %v4730_v58, %v4729_v16  ;;  %v4721_v27 = vadd.f32 %v4720_v62, %v4719_v10  ;;  %v5245_v24 = vld [vmem:[#allocation17 + $0x3] ss:$0 sm:$0xff]  ;;  %v4842_v16 = vpop.permute.xlu1 %4841  ;;  %v4860_v58 = vld [vmem:[%s6226_s25] sm:$0xff] }
 0x7da   : > { %v4761_v33 = vsub.f32 %v8269_v21, %v8317_v44  ;;  %v4861_v62 = vld [vmem:[%s6226_s25 + $0x8] sm:$0xff] }
 0x7db   : > { %v4752_v48 = vadd.f32 1e-05, %v4748_v34  ;;  %v4727_v18 = vrot.slane %v4726_v30, 1  ;;  %v4732_v17 = vrot.slane %v4731_v5, 2  ;;  %v4741_v22 = vmul.f32 0.00390625, %v4721_v27 }
 0x7dc   : > { %v4838_v7 = vpop.permute.xlu0 %4837 }
 0x7dd   : > { %5435 = vrsqrt.f32 %v4752_v48  ;;  %v4728_v60 = vadd.f32 %v4727_v18, %v4726_v30  ;;  %v4733_v57 = vadd.f32 %v4732_v17, %v4731_v5  ;;  %v4749_v42 = vsub.f32 %v4741_v22, %v4745_v9  ;;  %v4863_v18 = vld [vmem:[%s6226_s25 + $0x18] sm:$0xff] }
 0x7de   : > { %v4762_v5 = vsub.f32 %v8261_v63, %v8321_v41  ;;  %v4862_v63 = vld [vmem:[%s6226_s25 + $0x10] sm:$0xff]  ;;  %v4765_v41 = vsub.f32 %v8279_v11, %v8323_v28 }
 0x7df   : > { %v4742_v55 = vmul.f32 0.00390625, %v4728_v60  ;;  %v4734_v26 = vrot.slane %v4733_v57, 1  ;;  %v4753_v31 = vadd.f32 1e-05, %v4749_v42 }
 0x7e1   : > { %v4750_v19 = vsub.f32 %v4742_v55, %v4746_v29  ;;  %v4735_v52 = vadd.f32 %v4734_v26, %v4733_v57  ;;  %5437 = vrsqrt.f32 %v4753_v31  ;;  %v4864_v55 = vld [vmem:[%s6226_s25 + $0x20] sm:$0xff]  ;;  %v4865_v26 = vld [vmem:[%s6226_s25 + $0x28] sm:$0xff] }
 0x7e3   : > { %v4754_v32 = vadd.f32 1e-05, %v4750_v19  ;;  %v4743_v59 = vmul.f32 0.00390625, %v4735_v52 }
 0x7e5   : > { %5439 = vrsqrt.f32 %v4754_v32  ;;  %v4751_v13 = vsub.f32 %v4743_v59, %v4747_v40  ;;  %v4766_v32 = vsub.f32 %v8265_v45, %v8327_v36  ;;  %v4767_v40 = vsub.f32 %v8267_v20, %v8327_v36 }
 0x7e7   : > { %v5436_v14 = vpop.eup %5435  ;;  %v4755_v15 = vadd.f32 1e-05, %v4751_v13 }
 0x7e8   : > { %v4768_v12 = vmul.f32 %v5436_v14, %v4616_v46  ;;  %v4866_v46 = vld [vmem:[%s6226_s25 + $0x30] sm:$0xff]  ;;  %v4867_v14 = vld [vmem:[%s6226_s25 + $0x38] sm:$0xff]  ;;  %s5725_s25 = scalar_lea.vmem %s8384_s29, 1024 }
 0x7e9   : > { %5441 = vrsqrt.f32 %v4755_v15  ;;  %p5726_p13 = scmp.ne.s32.totalorder %s8384_s29, %s5725_s25  ;;  %p5733_p10 = scmp.lt.s32.totalorder %s5731_s1, %s5725_s25 }
 0x7ea   : > { %v4779_v6 = vrot.slane %v4768_v12, %v8784_v61 }
 0x7eb   : > { %v5438_v49 = vpop.eup %5437  ;;  %p5727_p2 = pnand %p5726_p13, %p8786_p0  ;;  %p5734_p11 = por %p5733_p10, %p5732_p6 }
 0x7ec   : > { %4793 = vperm.xlu1 %5402, %v4779_v6   ;;  %v4769_v2 = vmul.f32 %v5438_v49, %v4617_v54 }
 0x7ed   : > { %p5728_p8 = pneg %p5727_p2 }
 0x7ee   : > { %v4783_v51 = vrot.slane %v4769_v2, %v8784_v61 }
 0x7ef   : > { %v5440_v39 = vpop.eup %5439  ;;  %p5735_p3 = pnand %p5734_p11, %p5728_p8 }
 0x7f0   : > { %v4770_v43 = vmul.f32 %v5440_v39, %v4618_v50  ;;  %4797 = vperm.xlu0 %5401, %v4783_v51  }
 0x7f2   : > { %v4787_v4 = vrot.slane %v4770_v43, %v8784_v61 }
 0x7f3   : > { %v5442_v37 = vpop.eup %5441 }
 0x7f4   : > { %4801 = vperm.xlu1 %5402, %v4787_v4   ;;  %v4771_v23 = vmul.f32 %v5442_v37, %v4619_v47  ;;  %4845 = vperm.xlu0 %5401, %v5244_v56  }
 0x7f6   : > { %v4791_v25 = vrot.slane %v4771_v23, %v8784_v61 }
 0x7f8   : > { %4805 = vperm.xlu1 %5402, %v4791_v25  }
 0x7fc   : > { %4849 = vperm.xlu1 %5402, %v5245_v24  }
 0x86b   : > { %v4794_v10 = vpop.permute.xlu1 %4793 }
 0x86c   : > { %v4808_v35 = vmul.f32 %v4794_v10, %v4760_v3  ;;  %v4809_v8 = vmul.f32 %v4794_v10, %v4761_v33 }
 0x86e   : > { %v4852_v34 = vadd.f32 %v4838_v7, %v4808_v35  ;;  %v4853_v30 = vadd.f32 %v4838_v7, %v4809_v8 }
 0x86f   : > { %v4798_v21 = vpop.permute.xlu0 %4797 }
 0x870   : > { %v4868_v27 = vadd.f32 %v4860_v58, %v4852_v34  ;;  %v4869_v53 = vadd.f32 %v4861_v62, %v4853_v30  ;;  %v4810_v44 = vmul.f32 %v4798_v21, %v4762_v5  ;;  %v4811_v48 = vmul.f32 %v4798_v21, %v4763_v0 }
 0x872   : > { %4876 = vst.msk [vmem:[%s8349_s23] sm:$0xff] %vm971_vm0, %v4868_v27  ;;  %4877 = vst.msk [vmem:[%s8349_s23 + $0x8] sm:$0xff] %vm971_vm0, %v4869_v53  ;;  %v4854_v17 = vadd.f32 %v4842_v16, %v4810_v44  ;;  %v4855_v9 = vadd.f32 %v4842_v16, %v4811_v48 }
 0x873   : > { %v4802_v22 = vpop.permute.xlu1 %4801  ;;  %v4846_v31 = vpop.permute.xlu0 %4845 }
 0x874   : > { %v4812_v60 = vmul.f32 %v4802_v22, %v4764_v38  ;;  %v4813_v57 = vmul.f32 %v4802_v22, %v4765_v41  ;;  %v4870_v42 = vadd.f32 %v4862_v63, %v4854_v17  ;;  %v4871_v29 = vadd.f32 %v4863_v18, %v4855_v9 }
 0x876   : > { %v4856_v19 = vadd.f32 %v4846_v31, %v4812_v60  ;;  %v4857_v1 = vadd.f32 %v4846_v31, %v4813_v57  ;;  %4878 = vst.msk [vmem:[%s8349_s23 + $0x10] sm:$0xff] %vm971_vm0, %v4870_v42  ;;  %4879 = vst.msk [vmem:[%s8349_s23 + $0x18] sm:$0xff] %vm971_vm0, %v4871_v29 }
 0x877   : > { %v4806_v11 = vpop.permute.xlu1 %4805 }
 0x878   : > { %v4872_v28 = vadd.f32 %v4864_v55, %v4856_v19  ;;  %v4873_v52 = vadd.f32 %v4865_v26, %v4857_v1  ;;  %v4814_v59 = vmul.f32 %v4806_v11, %v4766_v32  ;;  %v4815_v13 = vmul.f32 %v4806_v11, %v4767_v40 }
 0x87a   : > { %4880 = vst.msk [vmem:[%s8349_s23 + $0x20] sm:$0xff] %vm971_vm0, %v4872_v28  ;;  %4881 = vst.msk [vmem:[%s8349_s23 + $0x28] sm:$0xff] %vm971_vm0, %v4873_v52 }
 0x87b   : > { %v4850_v15 = vpop.permute.xlu1 %4849 }
 0x87c   : > { %v4858_v12 = vadd.f32 %v4850_v15, %v4814_v59  ;;  %v4859_v45 = vadd.f32 %v4850_v15, %v4815_v13 }
 0x87e   : > { %v4874_v20 = vadd.f32 %v4866_v46, %v4858_v12  ;;  %v4875_v36 = vadd.f32 %v4867_v14, %v4859_v45 }
 0x880   : > { %4882 = vst.msk [vmem:[%s8349_s23 + $0x30] sm:$0xff] %vm971_vm0, %v4874_v20  ;;  %4883 = vst.msk [vmem:[%s8349_s23 + $0x38] sm:$0xff] %vm971_vm0, %v4875_v36 }
 0x881   : > { %5738 = shalt.err (!%p5735_p3)
}
 0x882   : > { %s5739_s28 = scalar_lea.hbm %s8382_s10, 1024  ;;  %s5743_s21 = scalar_lea.hbm %s8785_s26, 2048 }
 0x883   : > { %p5740_p5 = scmp.ne.s32.totalorder %s8382_s10, %s5739_s28  ;;  %p5744_p4 = scmp.lt.u32.totalorder %s8382_s10, %s8785_s26 }
 0x884   : > { %p5745_p12 = scmp.lt.u32.totalorder %s5743_s21, %s5739_s28  ;;  %p5747_p13 = scmp.lt.u32.totalorder %s5739_s28, %s8382_s10 }
 0x885   : > { %p5741_p9 = pnand %p5740_p5, %p8786_p0 }
 0x886   : > { %p5746_p1 = por %p5745_p12, %p5744_p4 }
 0x887   : > { %p5742_p7 = pneg %p5741_p9 }
 0x888   : > { %p5748_p2 = por %p5747_p13, %p5746_p1 }
 0x88a   : > { %p5749_p8 = pnand %p5748_p2, %p5742_p7 }
 0x88c   : > { %5752 = shalt.err (!%p5749_p8)
}
 0x88d   : > { %s5833_s25 = smov 128   ;;  %s5834_s27 = smov 8  }
 0x88e   : > { %5291 = dma.vmem_to_hbm [thread:$0]  (%p8786_p0), %s8384_s29, 1024, %s8382_s10, %s4885_s19, %s5833_s25, %s5833_s25, %s5834_s27  }
 0x88f PF: > { %s4913_s1 = sand.u32 1, %s5799_s13   ;;  %p8787_p6 = scmp.ne.s32.totalorder %s8527_s30, 0 }
 0x890   : > { %p8788_p10 = scmp.ge.s32.totalorder %s5811_s16, 2  ;;  %s4914_s28 = scalar_lea.sflag [#allocation4], %s4913_s1 }
 0x892   : > { %p5326_p11 = pnand %p8788_p10, %p8787_p6 }
 0x894   : > { %5794 = dma.done.wait (!%p5326_p11), %s4914_s28, 1024  }
 0x895   : > { %5796 = vsyncadd (!%p5326_p11), %s4914_s28, 4294966272  ;;  %p28_p3 = scmp.ge.s32.totalorder %s6147_s11, 4   ;;  %s8789_s13 = smov %s5803_s14 }
 0x896   : > { %s8790_s14 = smov %s5807_s15  ;;  %s8791_s15 = smov %s6159_s20 }
 0x897   : > { %s8792_s16 = smov %s6147_s11  ;;  %30 = sbr.rel (!%p28_p3) target bundleno = 13 (0xd), region = 162 }
 0x89e   :  { %4919 = vsyncpa [#allocation3], 1 }
 0x89f   :  { %4921 = vsyncpa [#allocation3 + $0x1], 1 }
 0x8a0   :  { %4922 = vsyncpa [#allocation6], 1 }
 0x8a1   :  { %4923 = vsyncpa [#allocation9], 1 }
 0x8a2   :  { %4924 = vsyncpa [#allocation12], 1 }
 0x8a3   :  { %4925 = vsyncpa [#allocation15], 1 }
 0x8a4   :  { %4926 = vsyncpa [#allocation18], 1 }
 0x8a5   :  { %4927 = vsyncpa [#allocation4], 1 }
 0x8a6   :  { %4929 = vsyncpa [#allocation4 + $0x1], 1 }

</bundles_post_ra>
